<compile_context>
chip_gen: v6e
topology: v6e:2x2x1
jax: 0.10.0
libtpu: 0.0.40
codegen_flags: <defaults>
</compile_context>

<pallas_src>
import functools
from types import SimpleNamespace

import jax
import jax.numpy as jnp
from jax.experimental import pallas as pl
from jax.experimental.pallas import tpu as pltpu


NUM_SPLITS = 2                   # leading "parallel" grid axis (v7x megacore split)
MAX_ANCHORS_PER_STEP = 16384     # big tiles to amortize ~0.35 us per-step overhead
_ANCHOR_TILE = 1024              # int8 c=4 slabs need (32,128) min tile -> t % 1024 == 0
_LANES = 128
_ACC_ROWS = 8                    # one full (8,128) f32 vreg of partials per loss
_VMEM_LIMIT = 48 * 1024 * 1024   # cap only; actual use ~7-15 MiB, fits v7x's 64 MiB


# --------------------------------------------------------------------------
# Fused Pallas kernel: masked smooth-L1 + 3x masked sigmoid-focal sums.
# All inputs are lane-dense (rows, 128) slabs; masks/labels are int8.
# Resident (32,128) output block per split holds vreg partials:
#   rows 0-7: smooth-L1, 8-15: agent focal, 16-23: loc focal, 24-31: action.
# --------------------------------------------------------------------------
def _fused_loss_kernel(*refs, alpha, gamma, beta, share_loc_mask):
    if share_loc_mask:
        (ap_ref, al_ref, lp_ref, ll_ref, cp_ref, cl_ref,
         rp_ref, rg_ref, ma_ref, mc_ref, mp_ref, out_ref) = refs
        ml_ref = ma_ref                     # reuse the agent mask slab (no 2nd DMA)
    else:
        (ap_ref, al_ref, lp_ref, ll_ref, cp_ref, cl_ref,
         rp_ref, rg_ref, ma_ref, ml_ref, mc_ref, mp_ref, out_ref) = refs

    @pl.when(pl.program_id(1) == 0)
    def _init():
        out_ref[...] = jnp.zeros_like(out_ref)

    def acc8(x):
        # Reduce a (R,128) slab to one (8,128) vreg by summing whole vregs:
        # pure VALU adds, no cross-sublane XLU reduce, unmasked aligned store.
        r = x.shape[0]
        return x.reshape(r // _ACC_ROWS, _ACC_ROWS, _LANES).sum(axis=0)

    def focal8(x_ref, y_ref, m_ref):
        # All math in f32 (safe on v5e); preds may be bf16/f32, labels/masks int8.
        x = x_ref[...].astype(jnp.float32)          # raw logits, as in the reference
        y = y_ref[...].astype(jnp.float32)          # one-hot 0/1 labels
        m = m_ref[...].astype(jnp.float32)
        xy = x * y
        one_m_y = 1.0 - y
        # Stable binary_cross_entropy_with_logits(reduction='none').
        bce = jnp.maximum(x, 0.0) - xy + jnp.log1p(jnp.exp(-jnp.abs(x)))
        alpha_factor = alpha * y + (1.0 - alpha) * one_m_y
        # NOTE: the reference computes pt from the raw (un-sigmoided) logits;
        # reproduced exactly rather than textbook sigmoid focal loss.
        pt = xy + (1.0 - x) * one_m_y
        one_minus_pt = 1.0 - pt
        if gamma == 2.0:   # multiply specialization: no jnp.power, safe for <0 base
            pow_term = one_minus_pt * one_minus_pt
        else:
            # TODO(synk): with raw-logit pt, (1-pt) can be negative; non-integer
            # gamma then yields NaN exactly as the PyTorch reference would.
            pow_term = jnp.power(one_minus_pt, gamma)
        w = alpha_factor * pow_term * m            # fold weight + mask once
        return acc8(bce * w)

    # Smooth-L1 (masked to positive anchors).
    d = jnp.abs(rp_ref[...].astype(jnp.float32) - rg_ref[...].astype(jnp.float32))
    sl1 = jnp.where(d < beta, (0.5 / beta) * d * d, d - 0.5 * beta)
    m_pos = mp_ref[...].astype(jnp.float32)

    out_ref[0:8, :] += acc8(sl1 * m_pos)
    out_ref[8:16, :] += focal8(ap_ref, al_ref, ma_ref)
    out_ref[16:24, :] += focal8(lp_ref, ll_ref, ml_ref)
    out_ref[24:32, :] += focal8(cp_ref, cl_ref, mc_ref)


def _choose_tiling(n_anchors):
    """Anchors per grid step (multiple of 1024 so every lane-dense view meets
    its min tile), total padded anchors, and inner-grid step count."""
    chunk_unit = NUM_SPLITS * _ANCHOR_TILE
    if n_anchors % chunk_unit == 0:
        # No padding: largest tile <= MAX that divides each split's share.
        per_split = n_anchors // NUM_SPLITS
        t = min(MAX_ANCHORS_PER_STEP, per_split)
        t = (t // _ANCHOR_TILE) * _ANCHOR_TILE
        while per_split % t != 0:
            t -= _ANCHOR_TILE
        n_pad = n_anchors
    else:
        # TODO(synk): a dedicated tail step would avoid the padded copies for
        # the (uncommon) case where N is not a multiple of NUM_SPLITS*1024.
        t = max(_ANCHOR_TILE, -(-n_anchors // NUM_SPLITS))
        t = min(MAX_ANCHORS_PER_STEP, -(-t // _ANCHOR_TILE) * _ANCHOR_TILE)
        n_pad = -(-n_anchors // (NUM_SPLITS * t)) * (NUM_SPLITS * t)
    steps = n_pad // (NUM_SPLITS * t)
    return t, n_pad, steps


def _fused_detection_loss_sums(agent_preds, agent_labels, loc_preds, loc_labels,
                               action_preds, action_labels, pred_locs, gt_locs,
                               valid_row, pos_row, *, alpha, gamma, beta):
    """Inputs are (N, C) tensors and (N,) bool masks.  Returns the four masked
    sums (smooth-L1, agent focal, loc focal, action focal)."""
    n = agent_preds.shape[0]
    ca = agent_preds.shape[1]
    cl = loc_preds.shape[1]
    cc = action_preds.shape[1]
    t, n_pad, steps = _choose_tiling(n)
    share_loc_mask = (cl == ca)

    def lane_dense(x):
        if n_pad != n:                       # padding only when unavoidable
            x = jnp.pad(x, ((0, n_pad - n), (0, 0)))
        return x.reshape(-1, _LANES)

    def lane_dense_mask(row_mask, c):
        # Per-element int8 mask slab (exact for 0/1); padded anchors -> 0,
        # so padded elements contribute exactly 0 to every sum.
        m = row_mask.astype(jnp.int8)
        if n_pad != n:
            m = jnp.pad(m, (0, n_pad - n))
        return jnp.broadcast_to(m[:, None], (n_pad, c)).reshape(-1, _LANES)

    m_agent = lane_dense_mask(valid_row, ca)
    m_action = lane_dense_mask(valid_row, cc)
    m_pos = lane_dense_mask(pos_row, 4)

    operands = [
        lane_dense(agent_preds), lane_dense(agent_labels),
        lane_dense(loc_preds), lane_dense(loc_labels),
        lane_dense(action_preds), lane_dense(action_labels),
        lane_dense(pred_locs), lane_dense(gt_locs),
        m_agent,
    ]
    if not share_loc_mask:
        operands.append(lane_dense_mask(valid_row, cl))
    operands += [m_action, m_pos]

    def in_spec(c):
        rows = (t * c) // _LANES
        return pl.BlockSpec((rows, _LANES), lambda s, i: (s * steps + i, 0))

    in_specs = [in_spec(ca), in_spec(ca), in_spec(cl), in_spec(cl),
                in_spec(cc), in_spec(cc), in_spec(4), in_spec(4),
                in_spec(ca)]
    if not share_loc_mask:
        in_specs.append(in_spec(cl))
    in_specs += [in_spec(cc), in_spec(4)]

    kernel = functools.partial(_fused_loss_kernel, alpha=alpha, gamma=gamma,
                               beta=beta, share_loc_mask=share_loc_mask)
    out = pl.pallas_call(
        kernel,
        out_shape=jax.ShapeDtypeStruct((NUM_SPLITS * 4 * _ACC_ROWS, _LANES),
                                       jnp.float32),
        grid=(NUM_SPLITS, steps),
        in_specs=in_specs,
        out_specs=pl.BlockSpec((4 * _ACC_ROWS, _LANES), lambda s, i: (s, 0)),
        # TODO(synk): on v7x, verify the leading "parallel" axis is really
        # sharded across both TensorCores; if not, switch to CORE_PARALLEL.
        compiler_params=pltpu.CompilerParams(
            dimension_semantics=("parallel", "arbitrary"),
            vmem_limit_bytes=_VMEM_LIMIT),
    )(*operands)

    # Tiny final reduction (per-split, per-vreg partials) done in the wrapper.
    sums = out.reshape(NUM_SPLITS, 4, _ACC_ROWS, _LANES).sum(axis=(0, 2, 3))
    return sums[0], sums[1], sums[2], sums[3]


# --------------------------------------------------------------------------
# Plain-JAX glue: anchor matching + label gathering (the torch.no_grad() block)
# --------------------------------------------------------------------------
def _iou_xyxy(gt, anchors):
    lt = jnp.maximum(gt[:, None, :2], anchors[None, :, :2])
    rb = jnp.minimum(gt[:, None, 2:], anchors[None, :, 2:])
    wh = jnp.clip(rb - lt, 0.0)
    inter = wh[..., 0] * wh[..., 1]
    area_g = (gt[:, 2] - gt[:, 0]) * (gt[:, 3] - gt[:, 1])
    area_a = (anchors[:, 2] - anchors[:, 0]) * (anchors[:, 3] - anchors[:, 1])
    union = area_g[:, None] + area_a[None, :] - inter
    return inter / jnp.maximum(union, 1e-8)


def _match_anchors_wignore(gt_b, count, anchors, pos_th, neg_th):
    # TODO(synk): box_utils.match_anchors_wIgnore is an external dependency of
    # the reference; this is a standard IoU matcher reconstruction (conf =
    # gt_idx+1 for positives, 0 for background, -1 for ignored) with raw gt
    # boxes as regression targets.
    g = gt_b.shape[0]
    valid = (jnp.arange(g) < count)[:, None]
    ious = jnp.where(valid, _iou_xyxy(gt_b, anchors), -1.0)
    best_iou = ious.max(axis=0)
    best_gt = ious.argmax(axis=0)
    conf = jnp.where(best_iou >= pos_th, best_gt + 1,
                     jnp.where(best_iou < neg_th, 0, -1)).astype(jnp.int32)
    conf = jnp.where(count > 0, conf, -jnp.ones_like(conf))
    loc = jnp.where(count > 0, gt_b[best_gt], jnp.zeros_like(anchors))
    return conf, loc


def _gather_labels(gt_labels_b, conf):
    # torch.cat((zeros, gt_labels), 0)[dumy_conf, :].  Labels are one-hot 0/1
    # (per the reference docstring), so gather in int8: exact, and a quarter
    # of the f32 HBM traffic into the kernel.
    zeros = jnp.zeros((1, gt_labels_b.shape[-1]), gt_labels_b.dtype)
    table = jnp.concatenate([zeros, gt_labels_b], axis=0).astype(jnp.int8)
    return table[jnp.maximum(conf, 0)]


# --------------------------------------------------------------------------
# FocalLoss module (forward semantics of the PyTorch reference)
# --------------------------------------------------------------------------
class FocalLossPallas:
    def __init__(self, args, alpha=0.25, gamma=2.0):
        self.positive_threshold = args.POSTIVE_THRESHOLD
        self.negative_threshold = args.NEGTIVE_THRESHOLD
        self.num_agent_classes = args.num_agent_classes
        self.num_loc_classes = args.num_loc_classes
        self.num_action_classes = args.num_action_classes
        self.num_label_types = args.num_label_types
        # NOTE: mirrors the PyTorch reference, which hardcodes alpha/gamma and
        # ignores the constructor arguments.
        self.alpha = 0.25
        self.gamma = 2.0
        self.beta = 1.0 / 9

    def forward(self, agent_confidence, loc_confidence, action_confidence,
                predicted_locations, gt_boxes, agent_gt_labels, loc_gt_labels,
                action_gt_labels, counts, anchors):
        B, S, A = agent_confidence.shape[:3]
        BS = B * S
        N = BS * A

        # ----- label assignment (no-grad glue in the reference) -----
        gt_boxes_f = gt_boxes.reshape(BS, gt_boxes.shape[2], 4)
        counts_f = counts.reshape(BS)
        conf, gt_locations = jax.vmap(
            lambda g, c: _match_anchors_wignore(
                g, c, anchors, self.positive_threshold, self.negative_threshold)
        )(gt_boxes_f, counts_f)                              # (BS, A), (BS, A, 4)

        agent_all = jax.vmap(_gather_labels)(
            agent_gt_labels.reshape(BS, -1, self.num_agent_classes), conf)
        loc_all = jax.vmap(_gather_labels)(
            loc_gt_labels.reshape(BS, -1, self.num_loc_classes), conf)
        action_all = jax.vmap(_gather_labels)(
            action_gt_labels.reshape(BS, -1, self.num_action_classes), conf)

        pos_row = (conf > 0).reshape(-1)          # (N,) positive anchors
        valid_row = (conf > -1).reshape(-1)       # (N,) non-ignored anchors
        num_pos = jnp.maximum(1.0, jnp.sum(pos_row.astype(jnp.float32)))

        # ----- single fused Pallas kernel for all four masked sums -----
        reg_sum, agent_sum, loc_sum, action_sum = _fused_detection_loss_sums(
            agent_confidence.reshape(N, self.num_agent_classes),
            agent_all.reshape(N, self.num_agent_classes),
            loc_confidence.reshape(N, self.num_loc_classes),
            loc_all.reshape(N, self.num_loc_classes),
            action_confidence.reshape(N, self.num_action_classes),
            action_all.reshape(N, self.num_action_classes),
            predicted_locations.reshape(N, 4),
            gt_locations.reshape(N, 4).astype(jnp.float32),
            valid_row, pos_row,
            alpha=self.alpha, gamma=self.gamma, beta=self.beta)

        regression_loss = reg_sum / (num_pos * 4.0)
        agent_cls_loss = agent_sum / num_pos
        loc_cls_loss = loc_sum / num_pos
        action_cls_loss = action_sum / num_pos
        return (regression_loss, agent_cls_loss, loc_cls_loss, action_cls_loss)


# --------------------------------------------------------------------------
if __name__ == "__main__":
    key = jax.random.PRNGKey(0)
    B, S, A, Gmax = 2, 2, 128, 6
    Ca, Cl, Cact = 8, 8, 16

    args = SimpleNamespace(
        POSTIVE_THRESHOLD=0.5, NEGTIVE_THRESHOLD=0.4,
        num_agent_classes=Ca, num_loc_classes=Cl,
        num_action_classes=Cact, num_label_types=3)

    keys = jax.random.split(key, 9)
    agent_conf = jax.random.normal(keys[0], (B, S, A, Ca), jnp.float32)
    loc_conf = jax.random.normal(keys[1], (B, S, A, Cl), jnp.float32)
    action_conf = jax.random.normal(keys[2], (B, S, A, Cact), jnp.float32)
    pred_locs = jax.random.normal(keys[3], (B, S, A, 4), jnp.float32) * 0.1

    xy = jax.random.uniform(keys[4], (B, S, Gmax, 2), minval=0.05, maxval=0.6)
    wh = jax.random.uniform(keys[5], (B, S, Gmax, 2), minval=0.1, maxval=0.35)
    gt_boxes = jnp.concatenate([xy, xy + wh], axis=-1)

    agent_gt = (jax.random.uniform(keys[6], (B, S, Gmax, Ca)) > 0.5).astype(jnp.float32)
    loc_gt = (jax.random.uniform(keys[7], (B, S, Gmax, Cl)) > 0.5).astype(jnp.float32)
    action_gt = (jax.random.uniform(keys[8], (B, S, Gmax, Cact)) > 0.5).astype(jnp.float32)

    counts = jnp.array([[3, 0], [5, 2]], dtype=jnp.int32)

    # 16x8 grid of 0.2x0.2 anchors in xyxy, A = 128
    cols = (jnp.tile(jnp.arange(16), 8) + 0.5) / 16.0
    rows = (jnp.repeat(jnp.arange(8), 16) + 0.5) / 8.0
    half = 0.1
    anchors = jnp.stack([cols - half, rows - half, cols + half, rows + half],
                        axis=-1).astype(jnp.float32)

    loss_mod = FocalLossPallas(args)
    out = loss_mod.forward(agent_conf, loc_conf, action_conf, pred_locs,
                           gt_boxes, agent_gt, loc_gt, action_gt, counts, anchors)
    out = jax.block_until_ready(out)
    print("KERNEL_OK")
</pallas_src>

<mosaic_0001>
module attributes {stable_mosaic.version = 11 : i64} {
  func.func @_fused_loss_kernel(%arg0: i32, %arg1: i32, %arg2: memref<64x128xf32, #tpu.memory_space<vmem>>, %arg3: memref<64x128xi8, #tpu.memory_space<vmem>>, %arg4: memref<64x128xf32, #tpu.memory_space<vmem>>, %arg5: memref<64x128xi8, #tpu.memory_space<vmem>>, %arg6: memref<128x128xf32, #tpu.memory_space<vmem>>, %arg7: memref<128x128xi8, #tpu.memory_space<vmem>>, %arg8: memref<32x128xf32, #tpu.memory_space<vmem>>, %arg9: memref<32x128xf32, #tpu.memory_space<vmem>>, %arg10: memref<64x128xi8, #tpu.memory_space<vmem>>, %arg11: memref<128x128xi8, #tpu.memory_space<vmem>>, %arg12: memref<32x128xi8, #tpu.memory_space<vmem>>, %arg13: memref<32x128xf32, #tpu.memory_space<vmem>>) attributes {dimension_semantics = [#tpu.dimension_semantics<parallel>, #tpu.dimension_semantics<arbitrary>], iteration_bounds = array<i64: 2, 1>, scalar_prefetch = 0 : i64, scratch_operands = 0 : i64, tpu.core_type = #tpu.core_type<tc>, window_params = [{transform_indices = @transform_0, window_bounds = array<i64: 64, 128>}, {transform_indices = @transform_1, window_bounds = array<i64: 64, 128>}, {transform_indices = @transform_2, window_bounds = array<i64: 64, 128>}, {transform_indices = @transform_3, window_bounds = array<i64: 64, 128>}, {transform_indices = @transform_4, window_bounds = array<i64: 128, 128>}, {transform_indices = @transform_5, window_bounds = array<i64: 128, 128>}, {transform_indices = @transform_6, window_bounds = array<i64: 32, 128>}, {transform_indices = @transform_7, window_bounds = array<i64: 32, 128>}, {transform_indices = @transform_8, window_bounds = array<i64: 64, 128>}, {transform_indices = @transform_9, window_bounds = array<i64: 128, 128>}, {transform_indices = @transform_10, window_bounds = array<i64: 32, 128>}, {transform_indices = @transform_11, window_bounds = array<i64: 32, 128>}]} {
    %c0_i32 = arith.constant 0 : i32
    %0 = arith.cmpi eq, %arg1, %c0_i32 : i32
    %1 = arith.extui %0 : i1 to i32
    %c0_i32_0 = arith.constant 0 : i32
    %2 = arith.cmpi ne, %1, %c0_i32_0 : i32
    scf.if %2 {
      %cst_64 = arith.constant 0.000000e+00 : f32
      %134 = vector.broadcast %cst_64 : f32 to vector<32x128xf32>
      %c0_65 = arith.constant 0 : index
      %c0_66 = arith.constant 0 : index
      %135 = vector.load %arg13[%c0_65, %c0_66] : memref<32x128xf32, #tpu.memory_space<vmem>>, vector<32x128xf32>
      tpu.vector_store %arg13[%c0_65, %c0_66], %134 {strides = array<i32>} : memref<32x128xf32, #tpu.memory_space<vmem>>, vector<32x128xf32>,
    } else {
    }
    %c0 = arith.constant 0 : index
    %c0_1 = arith.constant 0 : index
    %3 = vector.load %arg8[%c0, %c0_1] : memref<32x128xf32, #tpu.memory_space<vmem>>, vector<32x128xf32>
    %c0_2 = arith.constant 0 : index
    %c0_3 = arith.constant 0 : index
    %4 = vector.load %arg9[%c0_2, %c0_3] : memref<32x128xf32, #tpu.memory_space<vmem>>, vector<32x128xf32>
    %5 = arith.subf %3, %4 : vector<32x128xf32>
    %6 = math.absf %5 : vector<32x128xf32>
    %cst = arith.constant 0.111111112 : f32
    %7 = vector.broadcast %cst : f32 to vector<32x128xf32>
    %8 = arith.cmpf olt, %6, %7 : vector<32x128xf32>
    %cst_4 = arith.constant 4.500000e+00 : f32
    %9 = vector.broadcast %cst_4 : f32 to vector<32x128xf32>
    %10 = arith.mulf %9, %6 : vector<32x128xf32>
    %11 = arith.mulf %10, %6 : vector<32x128xf32>
    %cst_5 = arith.constant 0.055555556 : f32
    %12 = vector.broadcast %cst_5 : f32 to vector<32x128xf32>
    %13 = arith.subf %6, %12 : vector<32x128xf32>
    %14 = arith.select %8, %11, %13 : vector<32x128xi1>, vector<32x128xf32>
    %c0_6 = arith.constant 0 : index
    %c0_7 = arith.constant 0 : index
    %15 = vector.load %arg12[%c0_6, %c0_7] : memref<32x128xi8, #tpu.memory_space<vmem>>, vector<32x128xi8>
    %16 = arith.sitofp %15 : vector<32x128xi8> to vector<32x128xf32>
    %c0_8 = arith.constant 0 : index
    %c0_9 = arith.constant 0 : index
    %17 = vector.load %arg13[%c0_8, %c0_9] : memref<32x128xf32, #tpu.memory_space<vmem>>, vector<8x128xf32>
    %18 = arith.mulf %14, %16 : vector<32x128xf32>
    %19 = vector.shape_cast %18 : vector<32x128xf32> to vector<4x8x128xf32>
    %cst_10 = arith.constant dense<0.000000e+00> : vector<8x128xf32>
    %20 = vector.multi_reduction <add>, %19, %cst_10 [0] : vector<4x8x128xf32> to vector<8x128xf32>
    %21 = arith.addf %17, %20 : vector<8x128xf32>
    %c0_11 = arith.constant 0 : index
    %c0_12 = arith.constant 0 : index
    %22 = vector.load %arg13[%c0_11, %c0_12] : memref<32x128xf32, #tpu.memory_space<vmem>>, vector<8x128xf32>
    tpu.vector_store %arg13[%c0_11, %c0_12], %21 {strides = array<i32>} : memref<32x128xf32, #tpu.memory_space<vmem>>, vector<8x128xf32>,
    %c8 = arith.constant 8 : index
    %c0_13 = arith.constant 0 : index
    %23 = vector.load %arg13[%c8, %c0_13] : memref<32x128xf32, #tpu.memory_space<vmem>>, vector<8x128xf32>
    %c0_14 = arith.constant 0 : index
    %c0_15 = arith.constant 0 : index
    %24 = vector.load %arg2[%c0_14, %c0_15] : memref<64x128xf32, #tpu.memory_space<vmem>>, vector<64x128xf32>
    %c0_16 = arith.constant 0 : index
    %c0_17 = arith.constant 0 : index
    %25 = vector.load %arg3[%c0_16, %c0_17] : memref<64x128xi8, #tpu.memory_space<vmem>>, vector<64x128xi8>
    %26 = arith.sitofp %25 : vector<64x128xi8> to vector<64x128xf32>
    %c0_18 = arith.constant 0 : index
    %c0_19 = arith.constant 0 : index
    %27 = vector.load %arg10[%c0_18, %c0_19] : memref<64x128xi8, #tpu.memory_space<vmem>>, vector<64x128xi8>
    %28 = arith.sitofp %27 : vector<64x128xi8> to vector<64x128xf32>
    %29 = arith.mulf %24, %26 : vector<64x128xf32>
    %cst_20 = arith.constant 1.000000e+00 : f32
    %30 = vector.broadcast %cst_20 : f32 to vector<64x128xf32>
    %31 = arith.subf %30, %26 : vector<64x128xf32>
    %cst_21 = arith.constant 0.000000e+00 : f32
    %32 = vector.broadcast %cst_21 : f32 to vector<64x128xf32>
    %33 = arith.maximumf %24, %32 : vector<64x128xf32>
    %34 = arith.subf %33, %29 : vector<64x128xf32>
    %35 = math.absf %24 : vector<64x128xf32>
    %cst_22 = arith.constant 0.000000e+00 : f32
    %36 = vector.broadcast %cst_22 : f32 to vector<64x128xf32>
    %37 = arith.subf %36, %35 : vector<64x128xf32>
    %38 = math.exp %37 : vector<64x128xf32>
    %39 = math.log1p %38 : vector<64x128xf32>
    %40 = arith.addf %34, %39 : vector<64x128xf32>
    %cst_23 = arith.constant 2.500000e-01 : f32
    %41 = vector.broadcast %cst_23 : f32 to vector<64x128xf32>
    %42 = arith.mulf %41, %26 : vector<64x128xf32>
    %cst_24 = arith.constant 7.500000e-01 : f32
    %43 = vector.broadcast %cst_24 : f32 to vector<64x128xf32>
    %44 = arith.mulf %43, %31 : vector<64x128xf32>
    %45 = arith.addf %42, %44 : vector<64x128xf32>
    %cst_25 = arith.constant 1.000000e+00 : f32
    %46 = vector.broadcast %cst_25 : f32 to vector<64x128xf32>
    %47 = arith.subf %46, %24 : vector<64x128xf32>
    %48 = arith.mulf %47, %31 : vector<64x128xf32>
    %49 = arith.addf %29, %48 : vector<64x128xf32>
    %cst_26 = arith.constant 1.000000e+00 : f32
    %50 = vector.broadcast %cst_26 : f32 to vector<64x128xf32>
    %51 = arith.subf %50, %49 : vector<64x128xf32>
    %52 = arith.mulf %51, %51 : vector<64x128xf32>
    %53 = arith.mulf %45, %52 : vector<64x128xf32>
    %54 = arith.mulf %53, %28 : vector<64x128xf32>
    %55 = arith.mulf %40, %54 : vector<64x128xf32>
    %56 = vector.shape_cast %55 : vector<64x128xf32> to vector<8x8x128xf32>
    %cst_27 = arith.constant dense<0.000000e+00> : vector<8x128xf32>
    %57 = vector.multi_reduction <add>, %56, %cst_27 [0] : vector<8x8x128xf32> to vector<8x128xf32>
    %58 = arith.addf %23, %57 : vector<8x128xf32>
    %c8_28 = arith.constant 8 : index
    %c0_29 = arith.constant 0 : index
    %59 = vector.load %arg13[%c8_28, %c0_29] : memref<32x128xf32, #tpu.memory_space<vmem>>, vector<8x128xf32>
    tpu.vector_store %arg13[%c8_28, %c0_29], %58 {strides = array<i32>} : memref<32x128xf32, #tpu.memory_space<vmem>>, vector<8x128xf32>,
    %c16 = arith.constant 16 : index
    %c0_30 = arith.constant 0 : index
    %60 = vector.load %arg13[%c16, %c0_30] : memref<32x128xf32, #tpu.memory_space<vmem>>, vector<8x128xf32>
    %c0_31 = arith.constant 0 : index
    %c0_32 = arith.constant 0 : index
    %61 = vector.load %arg4[%c0_31, %c0_32] : memref<64x128xf32, #tpu.memory_space<vmem>>, vector<64x128xf32>
    %c0_33 = arith.constant 0 : index
    %c0_34 = arith.constant 0 : index
    %62 = vector.load %arg5[%c0_33, %c0_34] : memref<64x128xi8, #tpu.memory_space<vmem>>, vector<64x128xi8>
    %63 = arith.sitofp %62 : vector<64x128xi8> to vector<64x128xf32>
    %c0_35 = arith.constant 0 : index
    %c0_36 = arith.constant 0 : index
    %64 = vector.load %arg10[%c0_35, %c0_36] : memref<64x128xi8, #tpu.memory_space<vmem>>, vector<64x128xi8>
    %65 = arith.sitofp %64 : vector<64x128xi8> to vector<64x128xf32>
    %66 = arith.mulf %61, %63 : vector<64x128xf32>
    %cst_37 = arith.constant 1.000000e+00 : f32
    %67 = vector.broadcast %cst_37 : f32 to vector<64x128xf32>
    %68 = arith.subf %67, %63 : vector<64x128xf32>
    %cst_38 = arith.constant 0.000000e+00 : f32
    %69 = vector.broadcast %cst_38 : f32 to vector<64x128xf32>
    %70 = arith.maximumf %61, %69 : vector<64x128xf32>
    %71 = arith.subf %70, %66 : vector<64x128xf32>
    %72 = math.absf %61 : vector<64x128xf32>
    %cst_39 = arith.constant 0.000000e+00 : f32
    %73 = vector.broadcast %cst_39 : f32 to vector<64x128xf32>
    %74 = arith.subf %73, %72 : vector<64x128xf32>
    %75 = math.exp %74 : vector<64x128xf32>
    %76 = math.log1p %75 : vector<64x128xf32>
    %77 = arith.addf %71, %76 : vector<64x128xf32>
    %cst_40 = arith.constant 2.500000e-01 : f32
    %78 = vector.broadcast %cst_40 : f32 to vector<64x128xf32>
    %79 = arith.mulf %78, %63 : vector<64x128xf32>
    %cst_41 = arith.constant 7.500000e-01 : f32
    %80 = vector.broadcast %cst_41 : f32 to vector<64x128xf32>
    %81 = arith.mulf %80, %68 : vector<64x128xf32>
    %82 = arith.addf %79, %81 : vector<64x128xf32>
    %cst_42 = arith.constant 1.000000e+00 : f32
    %83 = vector.broadcast %cst_42 : f32 to vector<64x128xf32>
    %84 = arith.subf %83, %61 : vector<64x128xf32>
    %85 = arith.mulf %84, %68 : vector<64x128xf32>
    %86 = arith.addf %66, %85 : vector<64x128xf32>
    %cst_43 = arith.constant 1.000000e+00 : f32
    %87 = vector.broadcast %cst_43 : f32 to vector<64x128xf32>
    %88 = arith.subf %87, %86 : vector<64x128xf32>
    %89 = arith.mulf %88, %88 : vector<64x128xf32>
    %90 = arith.mulf %82, %89 : vector<64x128xf32>
    %91 = arith.mulf %90, %65 : vector<64x128xf32>
    %92 = arith.mulf %77, %91 : vector<64x128xf32>
    %93 = vector.shape_cast %92 : vector<64x128xf32> to vector<8x8x128xf32>
    %cst_44 = arith.constant dense<0.000000e+00> : vector<8x128xf32>
    %94 = vector.multi_reduction <add>, %93, %cst_44 [0] : vector<8x8x128xf32> to vector<8x128xf32>
    %95 = arith.addf %60, %94 : vector<8x128xf32>
    %c16_45 = arith.constant 16 : index
    %c0_46 = arith.constant 0 : index
    %96 = vector.load %arg13[%c16_45, %c0_46] : memref<32x128xf32, #tpu.memory_space<vmem>>, vector<8x128xf32>
    tpu.vector_store %arg13[%c16_45, %c0_46], %95 {strides = array<i32>} : memref<32x128xf32, #tpu.memory_space<vmem>>, vector<8x128xf32>,
    %c24 = arith.constant 24 : index
    %c0_47 = arith.constant 0 : index
    %97 = vector.load %arg13[%c24, %c0_47] : memref<32x128xf32, #tpu.memory_space<vmem>>, vector<8x128xf32>
    %c0_48 = arith.constant 0 : index
    %c0_49 = arith.constant 0 : index
    %98 = vector.load %arg6[%c0_48, %c0_49] : memref<128x128xf32, #tpu.memory_space<vmem>>, vector<128x128xf32>
    %c0_50 = arith.constant 0 : index
    %c0_51 = arith.constant 0 : index
    %99 = vector.load %arg7[%c0_50, %c0_51] : memref<128x128xi8, #tpu.memory_space<vmem>>, vector<128x128xi8>
    %100 = arith.sitofp %99 : vector<128x128xi8> to vector<128x128xf32>
    %c0_52 = arith.constant 0 : index
    %c0_53 = arith.constant 0 : index
    %101 = vector.load %arg11[%c0_52, %c0_53] : memref<128x128xi8, #tpu.memory_space<vmem>>, vector<128x128xi8>
    %102 = arith.sitofp %101 : vector<128x128xi8> to vector<128x128xf32>
    %103 = arith.mulf %98, %100 : vector<128x128xf32>
    %cst_54 = arith.constant 1.000000e+00 : f32
    %104 = vector.broadcast %cst_54 : f32 to vector<128x128xf32>
    %105 = arith.subf %104, %100 : vector<128x128xf32>
    %cst_55 = arith.constant 0.000000e+00 : f32
    %106 = vector.broadcast %cst_55 : f32 to vector<128x128xf32>
    %107 = arith.maximumf %98, %106 : vector<128x128xf32>
    %108 = arith.subf %107, %103 : vector<128x128xf32>
    %109 = math.absf %98 : vector<128x128xf32>
    %cst_56 = arith.constant 0.000000e+00 : f32
    %110 = vector.broadcast %cst_56 : f32 to vector<128x128xf32>
    %111 = arith.subf %110, %109 : vector<128x128xf32>
    %112 = math.exp %111 : vector<128x128xf32>
    %113 = math.log1p %112 : vector<128x128xf32>
    %114 = arith.addf %108, %113 : vector<128x128xf32>
    %cst_57 = arith.constant 2.500000e-01 : f32
    %115 = vector.broadcast %cst_57 : f32 to vector<128x128xf32>
    %116 = arith.mulf %115, %100 : vector<128x128xf32>
    %cst_58 = arith.constant 7.500000e-01 : f32
    %117 = vector.broadcast %cst_58 : f32 to vector<128x128xf32>
    %118 = arith.mulf %117, %105 : vector<128x128xf32>
    %119 = arith.addf %116, %118 : vector<128x128xf32>
    %cst_59 = arith.constant 1.000000e+00 : f32
    %120 = vector.broadcast %cst_59 : f32 to vector<128x128xf32>
    %121 = arith.subf %120, %98 : vector<128x128xf32>
    %122 = arith.mulf %121, %105 : vector<128x128xf32>
    %123 = arith.addf %103, %122 : vector<128x128xf32>
    %cst_60 = arith.constant 1.000000e+00 : f32
    %124 = vector.broadcast %cst_60 : f32 to vector<128x128xf32>
    %125 = arith.subf %124, %123 : vector<128x128xf32>
    %126 = arith.mulf %125, %125 : vector<128x128xf32>
    %127 = arith.mulf %119, %126 : vector<128x128xf32>
    %128 = arith.mulf %127, %102 : vector<128x128xf32>
    %129 = arith.mulf %114, %128 : vector<128x128xf32>
    %130 = vector.shape_cast %129 : vector<128x128xf32> to vector<16x8x128xf32>
    %cst_61 = arith.constant dense<0.000000e+00> : vector<8x128xf32>
    %131 = vector.multi_reduction <add>, %130, %cst_61 [0] : vector<16x8x128xf32> to vector<8x128xf32>
    %132 = arith.addf %97, %131 : vector<8x128xf32>
    %c24_62 = arith.constant 24 : index
    %c0_63 = arith.constant 0 : index
    %133 = vector.load %arg13[%c24_62, %c0_63] : memref<32x128xf32, #tpu.memory_space<vmem>>, vector<8x128xf32>
    tpu.vector_store %arg13[%c24_62, %c0_63], %132 {strides = array<i32>} : memref<32x128xf32, #tpu.memory_space<vmem>>, vector<8x128xf32>,
    return
  }
  func.func @transform_0(%arg0: i32, %arg1: i32) -> (i32, i32) {
    %c1_i32 = arith.constant 1 : i32
    %0 = arith.muli %arg0, %c1_i32 : i32
    %1 = arith.addi %0, %arg1 : i32
    %c0_i32 = arith.constant 0 : i32
    %c0_i32_0 = arith.constant 0 : i32
    return %1, %c0_i32 : i32, i32
  }
  func.func @transform_1(%arg0: i32, %arg1: i32) -> (i32, i32) {
    %c1_i32 = arith.constant 1 : i32
    %0 = arith.muli %arg0, %c1_i32 : i32
    %1 = arith.addi %0, %arg1 : i32
    %c0_i32 = arith.constant 0 : i32
    %c0_i32_0 = arith.constant 0 : i32
    return %1, %c0_i32 : i32, i32
  }
  func.func @transform_2(%arg0: i32, %arg1: i32) -> (i32, i32) {
    %c1_i32 = arith.constant 1 : i32
    %0 = arith.muli %arg0, %c1_i32 : i32
    %1 = arith.addi %0, %arg1 : i32
    %c0_i32 = arith.constant 0 : i32
    %c0_i32_0 = arith.constant 0 : i32
    return %1, %c0_i32 : i32, i32
  }
  func.func @transform_3(%arg0: i32, %arg1: i32) -> (i32, i32) {
    %c1_i32 = arith.constant 1 : i32
    %0 = arith.muli %arg0, %c1_i32 : i32
    %1 = arith.addi %0, %arg1 : i32
    %c0_i32 = arith.constant 0 : i32
    %c0_i32_0 = arith.constant 0 : i32
    return %1, %c0_i32 : i32, i32
  }
  func.func @transform_4(%arg0: i32, %arg1: i32) -> (i32, i32) {
    %c1_i32 = arith.constant 1 : i32
    %0 = arith.muli %arg0, %c1_i32 : i32
    %1 = arith.addi %0, %arg1 : i32
    %c0_i32 = arith.constant 0 : i32
    %c0_i32_0 = arith.constant 0 : i32
    return %1, %c0_i32 : i32, i32
  }
  func.func @transform_5(%arg0: i32, %arg1: i32) -> (i32, i32) {
    %c1_i32 = arith.constant 1 : i32
    %0 = arith.muli %arg0, %c1_i32 : i32
    %1 = arith.addi %0, %arg1 : i32
    %c0_i32 = arith.constant 0 : i32
    %c0_i32_0 = arith.constant 0 : i32
    return %1, %c0_i32 : i32, i32
  }
  func.func @transform_6(%arg0: i32, %arg1: i32) -> (i32, i32) {
    %c1_i32 = arith.constant 1 : i32
    %0 = arith.muli %arg0, %c1_i32 : i32
    %1 = arith.addi %0, %arg1 : i32
    %c0_i32 = arith.constant 0 : i32
    %c0_i32_0 = arith.constant 0 : i32
    return %1, %c0_i32 : i32, i32
  }
  func.func @transform_7(%arg0: i32, %arg1: i32) -> (i32, i32) {
    %c1_i32 = arith.constant 1 : i32
    %0 = arith.muli %arg0, %c1_i32 : i32
    %1 = arith.addi %0, %arg1 : i32
    %c0_i32 = arith.constant 0 : i32
    %c0_i32_0 = arith.constant 0 : i32
    return %1, %c0_i32 : i32, i32
  }
  func.func @transform_8(%arg0: i32, %arg1: i32) -> (i32, i32) {
    %c1_i32 = arith.constant 1 : i32
    %0 = arith.muli %arg0, %c1_i32 : i32
    %1 = arith.addi %0, %arg1 : i32
    %c0_i32 = arith.constant 0 : i32
    %c0_i32_0 = arith.constant 0 : i32
    return %1, %c0_i32 : i32, i32
  }
  func.func @transform_9(%arg0: i32, %arg1: i32) -> (i32, i32) {
    %c1_i32 = arith.constant 1 : i32
    %0 = arith.muli %arg0, %c1_i32 : i32
    %1 = arith.addi %0, %arg1 : i32
    %c0_i32 = arith.constant 0 : i32
    %c0_i32_0 = arith.constant 0 : i32
    return %1, %c0_i32 : i32, i32
  }
  func.func @transform_10(%arg0: i32, %arg1: i32) -> (i32, i32) {
    %c1_i32 = arith.constant 1 : i32
    %0 = arith.muli %arg0, %c1_i32 : i32
    %1 = arith.addi %0, %arg1 : i32
    %c0_i32 = arith.constant 0 : i32
    %c0_i32_0 = arith.constant 0 : i32
    return %1, %c0_i32 : i32, i32
  }
  func.func @transform_11(%arg0: i32, %arg1: i32) -> (i32, i32) {
    %c0_i32 = arith.constant 0 : i32
    %c0_i32_0 = arith.constant 0 : i32
    return %arg0, %c0_i32 : i32, i32
  }
}

</mosaic_0001>

<bundles_post_ra>
// kernel: tpu_custom_call.1
= control target key start
LH: loop header
LB: loop body
LE: loop exit
PB: predicated region body
PF: predicated region fallthrough
CT: control target
= control target key end

     0   :  { %s4972_s0 = inlined_call_operand.hbm [shape: f32[128,128], index: 0, kind: input, shape index: {}]   ;;  %s4973_s1 = inlined_call_operand.hbm [shape: s8[128,128], index: 1, kind: input, shape index: {}]   ;;  %s4974_s2 = inlined_call_operand.hbm [shape: f32[128,128], index: 2, kind: input, shape index: {}]   ;;  %s4975_s3 = inlined_call_operand.hbm [shape: s8[128,128], index: 3, kind: input, shape index: {}]   ;;  %s4976_s4 = inlined_call_operand.hbm [shape: f32[256,128], index: 4, kind: input, shape index: {}]   ;;  %s4977_s5 = inlined_call_operand.hbm [shape: s8[256,128], index: 5, kind: input, shape index: {}]   ;;  %s4978_s6 = inlined_call_operand.hbm [shape: f32[64,128], index: 6, kind: input, shape index: {}]   ;;  %s4979_s7 = inlined_call_operand.hbm [shape: f32[64,128], index: 7, kind: input, shape index: {}]   ;;  %s4980_s8 = inlined_call_operand.hbm [shape: s8[128,128], index: 8, kind: input, shape index: {}]   ;;  %s4981_s9 = inlined_call_operand.hbm [shape: s8[256,128], index: 9, kind: input, shape index: {}]   ;;  %s4982_s10 = inlined_call_operand.vmem [shape: s8[64,128], index: 10, kind: input, shape index: {}]   ;;  %s4983_s11 = inlined_call_operand.hbm [shape: f32[64,128], index: 11, kind: output, shape index: {}]  }
   0x1   :  { %5073 = sst [smem:[#allocation131_spill]] %s4973_s1 }
   0x2   :  { %5074 = sst [smem:[#allocation132_spill]] %s4975_s3 }
   0x3   :  { %5075 = sst [smem:[#allocation133_spill]] %s4977_s5 }
   0x4   :  { %5076 = sst [smem:[#allocation134_spill]] %s4979_s7 }
   0x5   :  { %5077 = sst [smem:[#allocation135_spill]] %s4981_s9 }
   0x6   :  { %5078 = sst [smem:[#allocation136_spill]] %s4982_s10 }
   0x7   :  { %5079 = sst [smem:[#allocation137_spill]] %s4983_s11 }
   0x8   :  { %16 = vsyncpa [#allocation3], 0 }
   0x9   :  { %18 = vsyncpa [#allocation3 + $0x1], 0 }
   0xa   :  { %19 = vsyncpa [#allocation6], 0 }
   0xb   :  { %21 = vsyncpa [#allocation6 + $0x1], 0 }
   0xc   :  { %22 = vsyncpa [#allocation9], 0 }
   0xd   :  { %24 = vsyncpa [#allocation9 + $0x1], 0 }
   0xe   :  { %25 = vsyncpa [#allocation12], 0 }
   0xf   :  { %27 = vsyncpa [#allocation12 + $0x1], 0 }
  0x10   :  { %28 = vsyncpa [#allocation15], 0 }
  0x11   :  { %30 = vsyncpa [#allocation15 + $0x1], 0 }
  0x12   :  { %31 = vsyncpa [#allocation18], 0 }
  0x13   :  { %33 = vsyncpa [#allocation18 + $0x1], 0 }
  0x14   :  { %34 = vsyncpa [#allocation4], 0 }
  0x15   :  { %36 = vsyncpa [#allocation4 + $0x1], 0  ;;  %s3121_s17 = smov 0   ;;  %s3123_s18 = smov 0  }
  0x16   :  { %s3125_s19 = smov 0   ;;  %s3127_s20 = smov 0  }
  0x17   :  { %s3129_s21 = smov 0   ;;  %s3131_s22 = smov 0  }
  0x18 LB: > { %5080 = sst [smem:[#allocation27_spill]] %s3024_s17  ;;  %s3152_s23 = sadd.s32 4294967295, %s3044_s22   ;;  %s3044_s22 = sphi %s3131_s22, %s42_s22   ;;  %s3040_s21 = sphi %s3129_s21, %s5469_s21   ;;  %s3036_s20 = sphi %s3127_s20, %s5468_s20   ;;  %s3032_s19 = sphi %s3125_s19, %s5466_s19   ;;  %s3028_s18 = sphi %s3123_s18, %s5465_s18   ;;  %s3024_s17 = sphi %s3121_s17, %s5464_s17  }
  0x19   : > { %5081 = sst [smem:[#allocation28_spill]] %s3028_s18  ;;  %s2358_s24 = sadd.s32 4294967294, %s3044_s22  }
  0x1a   : > { %5082 = sst [smem:[#allocation29_spill]] %s3032_s19  ;;  %s54_s25 = sadd.s32 1, %s3040_s21 }
  0x1b   : > { %5083 = sst [smem:[#allocation30_spill]] %s3036_s20  ;;  %s63_s26 = sadd.s32 1, %s3032_s19 }
  0x1c   : > { %5084 = sst [smem:[#allocation31_spill]] %s3044_s22  ;;  %p56_p0 = scmp.ge.s32.totalorder %s54_s25, 2 }
  0x1d   : > { %5085 = sst [smem:[#allocation32_spill]] %s3152_s23  ;;  %p70_p1 = scmp.ne.s32.totalorder %s3032_s19, %s3028_s18 }
  0x1e   : > { %p71_p2 = scmp.eq.s32.totalorder %s3044_s22, 0  ;;  %p76_p3 = scmp.ne.s32.totalorder %s3028_s18, %s3024_s17 }
  0x1f   : > { %s5471_s25 = smov (%p56_p0, %s54_s25), 0  ;;  %p77_p5 = scmp.eq.s32.totalorder %s3152_s23, 0 }
  0x20   : > { %5086 = sst [smem:[#allocation33_spill]] %s5471_s25  ;;  %p3164_p4 = por %p71_p2, %p70_p1 }
  0x21   : > { %s60_s28 = ssub.s32 %s3040_s21, %s5471_s25  ;;  %p380_p6 = scmp.eq.s32.totalorder %s3152_s23, 1 }
  0x22   : > { %p61_p7 = scmp.eq.s32.totalorder %s60_s28, 0  ;;  %p3172_p8 = por %p77_p5, %p76_p3 }
  0x23   : > { %p3176_p9 = por %p380_p6, %p70_p1  ;;  %p386_p10 = scmp.eq.s32.totalorder %s2358_s24, 1 }
  0x24   : > { %s5088_s29 = scalar_select %p3172_p8, 1, 0 }
  0x25   : > { %s5090_s30 = scalar_select %p3176_p9, 1, 0 }
  0x26   : > { %5089 = sst [smem:[#allocation34_spill]] %s5088_s29  ;;  %p3183_p11 = por %p386_p10, %p76_p3 }
  0x27   : > { %5091 = sst [smem:[#allocation35_spill]] %s5090_s30  ;;  %p2360_p12 = scmp.ge.s32.totalorder %s3044_s22, 2 }
  0x28   : > { %s3181_s12 = scalar_select %p61_p7, %s3032_s19, %s63_s26  }
  0x29   : > { %s5093_s13 = scalar_select %p3183_p11, 1, 0 }
  0x2a   : > { %5092 = sst [smem:[#allocation36_spill]] %s3181_s12  ;;  %p2481_p13 = scmp.lt.s32.totalorder %s3044_s22, 2 }
  0x2b   : > { %5094 = sst [smem:[#allocation37_spill]] %s5093_s13  ;;  %s3190_s14 = sand.u32 1, %s3032_s19  }
  0x2c   : > { %p3194_p0 = pnand %p2481_p13, %p3164_p4  ;;  %s3199_s16 = sand.u32 1, %s3044_s22  }
  0x2d   : > { %s3202_s24 = sshll.u32 %s3190_s14, 4  ;;  %s3205_s26 = sshll.u32 %s3040_s21, 8 }
  0x2e   : > { %s432_s28 = scalar_lea.vmem [#allocation5], %s3202_s24  ;;  %s5096_s1 = sld [smem:[#allocation131_spill]] }
  0x2f   : > { %s440_s25 = sshll.u32 %s432_s28, 4  ;;  %s4996_s13 = scalar_lea.sflag [#allocation6], %s3199_s16  ;;  %s441_s25 = int_to_ptr.vmem [resolvable:$true] %s440_s25 }
  0x30   : > { %p3215_p1 = pneg %p3194_p0  ;;  %s2677_s11 = scalar_lea.vmem %s441_s25, 256 }
  0x31   : > { %p2678_p2 = scmp.ne.s32.totalorder %s441_s25, %s2677_s11  ;;  %s3046_s30 = smov [#allocation5]  }
  0x32   : > { %s2682_s10 = sshll.u32 %s3046_s30, 4  ;;  %s2683_s10 = int_to_ptr.vmem [resolvable:$false] %s2682_s10 }
  0x33   : > { %p2680_p3 = pnand %p2678_p2, %p3215_p1  ;;  %s2684_s28 = scalar_lea.vmem %s2683_s10, 512 }
  0x34   : > { %s439_s27 = scalar_lea.hbm %s5096_s1, %s3205_s26  ;;  %p2685_p5 = scmp.lt.s32.totalorder %s441_s25, %s2683_s10 }
  0x35   : > { %p2681_p4 = pneg %p2680_p3  ;;  %p2686_p6 = scmp.lt.s32.totalorder %s2684_s28, %s2677_s11 }
  0x37   : > { %p2687_p7 = por %p2686_p6, %p2685_p5 }
  0x39   : > { %p2688_p10 = pnand %p2687_p7, %p2681_p4 }
  0x3b   : > { %2691 = shalt.err (!%p2688_p10)
}
  0x3c   : > { %s3047_s19 = smov 128   ;;  %s3048_s12 = smov 8  }
  0x3d   : > { %2452 = dma.hbm_to_vmem [thread:$0]  (!%p3194_p0), %s439_s27, 256, %s441_s25, %s4996_s13, %s3047_s19, %s3047_s19, %s3048_s12  }
  0x3e   : > { %p2391_p13 = scmp.ge.s32.totalorder %s3044_s22, 1  ;;  %p633_p2 = scmp.lt.s32.totalorder %s3044_s22, 3 }
  0x3f   : > { %s5100_s3 = sld [smem:[#allocation132_spill]]  ;;  %s476_s1 = scalar_lea.vmem [#allocation8], %s3202_s24 }
  0x40   : > { %p3230_p3 = pnand %p2391_p13, %p633_p2  ;;  %s484_s20 = sshll.u32 %s476_s1, 4  ;;  %s485_s20 = int_to_ptr.vmem [resolvable:$true] %s484_s20 }
  0x41   : > { %s3240_s23 = sshll.u32 %s3190_s14, 5  ;;  %s5000_s29 = scalar_lea.sflag [#allocation9], %s3199_s16 }
  0x42   : > { %s5098_s10 = scalar_select %p3230_p3, 1, 0 }
  0x43   : > { %s2705_s18 = scalar_lea.vmem %s485_s20, 256  ;;  %s3049_s25 = smov [#allocation8]  }
  0x44   : > { %5099 = sst [smem:[#allocation38_spill]] %s5098_s10  ;;  %p2706_p4 = scmp.ne.s32.totalorder %s485_s20, %s2705_s18 }
  0x45   : > { %s483_s28 = scalar_lea.hbm %s5100_s3, %s3205_s26  ;;  %s2710_s27 = sshll.u32 %s3049_s25, 4  ;;  %s2711_s27 = int_to_ptr.vmem [resolvable:$false] %s2710_s27 }
  0x46   : > { %p2708_p5 = pnand %p2706_p4, %p3215_p1  ;;  %s2712_s13 = scalar_lea.vmem %s2711_s27, 512 }
  0x47   : > { %p2713_p7 = scmp.lt.s32.totalorder %s485_s20, %s2711_s27  ;;  %p2714_p10 = scmp.lt.s32.totalorder %s2712_s13, %s2705_s18 }
  0x48   : > { %p2709_p6 = pneg %p2708_p5 }
  0x49   : > { %p2715_p13 = por %p2714_p10, %p2713_p7 }
  0x4b   : > { %p2716_p2 = pnand %p2715_p13, %p2709_p6 }
  0x4d   : > { %2719 = shalt.err (!%p2716_p2)
}
  0x4e   : > { %2458 = dma.hbm_to_vmem [thread:$0]  (!%p3194_p0), %s483_s28, 256, %s485_s20, %s5000_s29, %s3047_s19, %s3047_s19, %s3048_s12  }
  0x4f   : > { %s3253_s1 = sshll.u32 %s3040_s21, 9  ;;  %s5101_s5 = sld [smem:[#allocation133_spill]] }
  0x50   : > { %s520_s30 = scalar_lea.vmem [#allocation11], %s3240_s23  ;;  %s5001_s27 = scalar_lea.sflag [#allocation12], %s3199_s16 }
  0x51   : > { %s528_s25 = sshll.u32 %s520_s30, 4  ;;  %s3050_s22 = smov [#allocation11]   ;;  %s529_s25 = int_to_ptr.vmem [resolvable:$true] %s528_s25 }
  0x52   : > { %s2733_s3 = scalar_lea.vmem %s529_s25, 512  ;;  %s2738_s10 = sshll.u32 %s3050_s22, 4  ;;  %s2739_s10 = int_to_ptr.vmem [resolvable:$false] %s2738_s10 }
  0x53   : > { %p2734_p4 = scmp.ne.s32.totalorder %s529_s25, %s2733_s3  ;;  %s2740_s20 = scalar_lea.vmem %s2739_s10, 1024 }
  0x54   : > { %p2741_p7 = scmp.lt.s32.totalorder %s529_s25, %s2739_s10  ;;  %p2742_p10 = scmp.lt.s32.totalorder %s2740_s20, %s2733_s3 }
  0x55   : > { %s527_s13 = scalar_lea.hbm %s5101_s5, %s3253_s1  ;;  %p2736_p5 = pnand %p2734_p4, %p3215_p1 }
  0x56   : > { %p2743_p13 = por %p2742_p10, %p2741_p7 }
  0x57   : > { %p2737_p6 = pneg %p2736_p5 }
  0x59   : > { %p2744_p2 = pnand %p2743_p13, %p2737_p6 }
  0x5b   : > { %2747 = shalt.err (!%p2744_p2)
}
  0x5c   : > { %2464 = dma.hbm_to_vmem [thread:$0]  (!%p3194_p0), %s527_s13, 512, %s529_s25, %s5001_s27, %s3047_s19, %s3047_s19, %s3048_s12  }
  0x5d   : > { %s5102_s7 = sld [smem:[#allocation134_spill]]  ;;  %s564_s3 = scalar_lea.vmem [#allocation14], %s3240_s23 }
  0x5e   : > { %s572_s11 = sshll.u32 %s564_s3, 4  ;;  %s5002_s18 = scalar_lea.sflag [#allocation15], %s3199_s16  ;;  %s573_s11 = int_to_ptr.vmem [resolvable:$true] %s572_s11 }
  0x5f   : > { %s2761_s30 = scalar_lea.vmem %s573_s11, 512  ;;  %s3051_s20 = smov [#allocation14]  }
  0x60   : > { %p2762_p4 = scmp.ne.s32.totalorder %s573_s11, %s2761_s30  ;;  %s2766_s29 = sshll.u32 %s3051_s20, 4  ;;  %s2767_s29 = int_to_ptr.vmem [resolvable:$false] %s2766_s29 }
  0x61   : > { %s2768_s5 = scalar_lea.vmem %s2767_s29, 1024  ;;  %p2769_p7 = scmp.lt.s32.totalorder %s573_s11, %s2767_s29 }
  0x62   : > { %p2764_p5 = pnand %p2762_p4, %p3215_p1  ;;  %p2770_p10 = scmp.lt.s32.totalorder %s2768_s5, %s2761_s30 }
  0x63   : > { %s571_s10 = scalar_lea.hbm %s5102_s7, %s3253_s1 }
  0x64   : > { %p2765_p6 = pneg %p2764_p5  ;;  %p2771_p13 = por %p2770_p10, %p2769_p7 }
  0x66   : > { %p2772_p2 = pnand %p2771_p13, %p2765_p6 }
  0x68   : > { %2775 = shalt.err (!%p2772_p2)
}
  0x69   : > { %2470 = dma.hbm_to_vmem [thread:$0]  (!%p3194_p0), %s571_s10, 512, %s573_s11, %s5002_s18, %s3047_s19, %s3047_s19, %s3048_s12  }
  0x6a   : > { %s2361_s13 = sshll.u32 %s3190_s14, 6  ;;  %s2413_s25 = sshll.u32 %s3040_s21, 10 }
  0x6b   : > { %s417_s5 = scalar_lea.hbm %s4972_s0, %s2413_s25  ;;  %s410_s28 = scalar_lea.vmem [#allocation2], %s2361_s13 }
  0x6c   : > { %s418_s3 = sshll.u32 %s410_s28, 4  ;;  %s407_s30 = scalar_lea.sflag [#allocation3], %s3190_s14  ;;  %s419_s3 = int_to_ptr.vmem [resolvable:$true] %s418_s3 }
  0x6d   : > { %s2789_s20 = scalar_lea.vmem %s419_s3, 1024  ;;  %s3052_s27 = smov [#allocation2]  }
  0x6e   : > { %p2790_p4 = scmp.ne.s32.totalorder %s419_s3, %s2789_s20  ;;  %s2794_s7 = sshll.u32 %s3052_s27, 4  ;;  %s2795_s7 = int_to_ptr.vmem [resolvable:$false] %s2794_s7 }
  0x6f   : > { %s2796_s9 = scalar_lea.vmem %s2795_s7, 2048  ;;  %p2797_p7 = scmp.lt.s32.totalorder %s419_s3, %s2795_s7 }
  0x70   : > { %p2792_p5 = pnand %p2790_p4, %p3215_p1  ;;  %p2798_p10 = scmp.lt.s32.totalorder %s2796_s9, %s2789_s20 }
  0x72   : > { %p2793_p6 = pneg %p2792_p5  ;;  %p2799_p13 = por %p2798_p10, %p2797_p7 }
  0x74   : > { %p2800_p2 = pnand %p2799_p13, %p2793_p6 }
  0x76   : > { %2803 = shalt.err (!%p2800_p2)
}
  0x77   : > { %2449 = dma.hbm_to_vmem [thread:$0]  (!%p3194_p0), %s417_s5, 1024, %s419_s3, %s407_s30, %s3047_s19, %s3047_s19, %s3048_s12  }
  0x78   : > { %s461_s22 = scalar_lea.hbm %s4974_s2, %s2413_s25  ;;  %s454_s27 = scalar_lea.vmem [#allocation7], %s2361_s13 }
  0x79   : > { %s462_s29 = sshll.u32 %s454_s27, 4  ;;  %s2373_s7 = sshll.u32 %s3190_s14, 7  ;;  %s463_s29 = int_to_ptr.vmem [resolvable:$true] %s462_s29 }
  0x7a   : > { %s2817_s9 = scalar_lea.vmem %s463_s29, 1024  ;;  %s3053_s28 = smov [#allocation7]  }
  0x7b   : > { %p2818_p4 = scmp.ne.s32.totalorder %s463_s29, %s2817_s9  ;;  %s2822_s20 = sshll.u32 %s3053_s28, 4  ;;  %s2823_s20 = int_to_ptr.vmem [resolvable:$false] %s2822_s20 }
  0x7c   : > { %s2824_s18 = scalar_lea.vmem %s2823_s20, 2048  ;;  %p2825_p7 = scmp.lt.s32.totalorder %s463_s29, %s2823_s20 }
  0x7d   : > { %p2820_p5 = pnand %p2818_p4, %p3215_p1  ;;  %p2826_p10 = scmp.lt.s32.totalorder %s2824_s18, %s2817_s9 }
  0x7f   : > { %p2821_p6 = pneg %p2820_p5  ;;  %p2827_p13 = por %p2826_p10, %p2825_p7 }
  0x81   : > { %p2828_p2 = pnand %p2827_p13, %p2821_p6 }
  0x83   : > { %2831 = shalt.err (!%p2828_p2)
}
  0x84   : > { %s5103_s13 = scalar_lea.sflag [#allocation6], %s3199_s16  ;;  %s2417_s25 = sshll.u32 %s3040_s21, 11 }
  0x85   : > { %2455 = dma.hbm_to_vmem [thread:$0]  (!%p3194_p0), %s461_s22, 1024, %s463_s29, %s5103_s13, %s3047_s19, %s3047_s19, %s3048_s12  }
  0x86   : > { %s505_s30 = scalar_lea.hbm %s4976_s4, %s2417_s25  ;;  %s498_s10 = scalar_lea.vmem [#allocation10], %s2373_s7 }
  0x87   : > { %s506_s18 = sshll.u32 %s498_s10, 4  ;;  %s3054_s27 = smov [#allocation10]   ;;  %s507_s18 = int_to_ptr.vmem [resolvable:$true] %s506_s18 }
  0x88   : > { %s2845_s11 = scalar_lea.vmem %s507_s18, 2048  ;;  %s2850_s9 = sshll.u32 %s3054_s27, 4  ;;  %s2851_s9 = int_to_ptr.vmem [resolvable:$false] %s2850_s9 }
  0x89   : > { %p2846_p4 = scmp.ne.s32.totalorder %s507_s18, %s2845_s11  ;;  %s2852_s28 = scalar_lea.vmem %s2851_s9, 4096 }
  0x8a   : > { %p2853_p7 = scmp.lt.s32.totalorder %s507_s18, %s2851_s9  ;;  %p2854_p10 = scmp.lt.s32.totalorder %s2852_s28, %s2845_s11 }
  0x8b   : > { %p2848_p5 = pnand %p2846_p4, %p3215_p1 }
  0x8c   : > { %p2855_p13 = por %p2854_p10, %p2853_p7 }
  0x8d   : > { %p2849_p6 = pneg %p2848_p5 }
  0x8f   : > { %p2856_p2 = pnand %p2855_p13, %p2849_p6 }
  0x91   : > { %2859 = shalt.err (!%p2856_p2)
}
  0x92   : > { %s5104_s22 = scalar_lea.sflag [#allocation9], %s3199_s16  ;;  %s549_s20 = scalar_lea.hbm %s4978_s6, %s3253_s1 }
  0x93   : > { %2461 = dma.hbm_to_vmem [thread:$0]  (!%p3194_p0), %s505_s30, 2048, %s507_s18, %s5104_s22, %s3047_s19, %s3047_s19, %s3048_s12  }
  0x94   : > { %s542_s13 = scalar_lea.vmem [#allocation13], %s3240_s23  ;;  %s3055_s3 = smov [#allocation13]  }
  0x95   : > { %s550_s25 = sshll.u32 %s542_s13, 4  ;;  %s2878_s10 = sshll.u32 %s3055_s3, 4  ;;  %s551_s25 = int_to_ptr.vmem [resolvable:$true] %s550_s25  ;;  %s2879_s10 = int_to_ptr.vmem [resolvable:$false] %s2878_s10 }
  0x96   : > { %s2873_s5 = scalar_lea.vmem %s551_s25, 512  ;;  %s2880_s11 = scalar_lea.vmem %s2879_s10, 1024 }
  0x97   : > { %p2874_p4 = scmp.ne.s32.totalorder %s551_s25, %s2873_s5  ;;  %p2881_p7 = scmp.lt.s32.totalorder %s551_s25, %s2879_s10 }
  0x98   : > { %p2882_p10 = scmp.lt.s32.totalorder %s2880_s11, %s2873_s5 }
  0x99   : > { %p2876_p5 = pnand %p2874_p4, %p3215_p1 }
  0x9a   : > { %p2883_p13 = por %p2882_p10, %p2881_p7 }
  0x9b   : > { %p2877_p6 = pneg %p2876_p5 }
  0x9d   : > { %p2884_p2 = pnand %p2883_p13, %p2877_p6 }
  0x9f   : > { %2887 = shalt.err (!%p2884_p2)
}
  0xa0   : > { %s5105_s30 = scalar_lea.sflag [#allocation12], %s3199_s16  ;;  %s593_s9 = scalar_lea.hbm %s4980_s8, %s3205_s26 }
  0xa1   : > { %2467 = dma.hbm_to_vmem [thread:$0]  (!%p3194_p0), %s549_s20, 512, %s551_s25, %s5105_s30, %s3047_s19, %s3047_s19, %s3048_s12  }
  0xa2   : > { %s586_s28 = scalar_lea.vmem [#allocation16], %s3202_s24  ;;  %s3056_s7 = smov [#allocation16]  }
  0xa3   : > { %s594_s22 = sshll.u32 %s586_s28, 4  ;;  %s2906_s13 = sshll.u32 %s3056_s7, 4  ;;  %s595_s22 = int_to_ptr.vmem [resolvable:$true] %s594_s22  ;;  %s2907_s13 = int_to_ptr.vmem [resolvable:$false] %s2906_s13 }
  0xa4   : > { %s2901_s29 = scalar_lea.vmem %s595_s22, 256  ;;  %s2908_s5 = scalar_lea.vmem %s2907_s13, 512 }
  0xa5   : > { %p2902_p4 = scmp.ne.s32.totalorder %s595_s22, %s2901_s29  ;;  %p2909_p7 = scmp.lt.s32.totalorder %s595_s22, %s2907_s13 }
  0xa6   : > { %p2910_p10 = scmp.lt.s32.totalorder %s2908_s5, %s2901_s29 }
  0xa7   : > { %p2904_p5 = pnand %p2902_p4, %p3215_p1 }
  0xa8   : > { %p2911_p13 = por %p2910_p10, %p2909_p7 }
  0xa9   : > { %p2905_p6 = pneg %p2904_p5 }
  0xab   : > { %p2912_p2 = pnand %p2911_p13, %p2905_p6 }
  0xad   : > { %2915 = shalt.err (!%p2912_p2)
}
  0xae   : > { %s5106_s24 = scalar_lea.sflag [#allocation15], %s3199_s16  ;;  %s5107_s25 = sld [smem:[#allocation135_spill]] }
  0xaf   : > { %2473 = dma.hbm_to_vmem [thread:$0]  (!%p3194_p0), %s593_s9, 256, %s595_s22, %s5106_s24, %s3047_s19, %s3047_s19, %s3048_s12  }
  0xb0   : > { %s608_s10 = scalar_lea.vmem [#allocation17], %s3240_s23  ;;  %s605_s30 = scalar_lea.sflag [#allocation18], %s3190_s14 }
  0xb1   : > { %s616_s11 = sshll.u32 %s608_s10, 4  ;;  %s3057_s27 = smov [#allocation17]   ;;  %s617_s11 = int_to_ptr.vmem [resolvable:$true] %s616_s11 }
  0xb2   : > { %s2929_s18 = scalar_lea.vmem %s617_s11, 512  ;;  %s2934_s16 = sshll.u32 %s3057_s27, 4  ;;  %s2935_s16 = int_to_ptr.vmem [resolvable:$false] %s2934_s16 }
  0xb3   : > { %p2930_p4 = scmp.ne.s32.totalorder %s617_s11, %s2929_s18  ;;  %s2936_s28 = scalar_lea.vmem %s2935_s16, 1024 }
  0xb4   : > { %s615_s3 = scalar_lea.hbm %s5107_s25, %s3253_s1  ;;  %p2937_p7 = scmp.lt.s32.totalorder %s617_s11, %s2935_s16 }
  0xb5   : > { %p2932_p5 = pnand %p2930_p4, %p3215_p1  ;;  %p2938_p10 = scmp.lt.s32.totalorder %s2936_s28, %s2929_s18 }
  0xb7   : > { %p2933_p6 = pneg %p2932_p5  ;;  %p2939_p13 = por %p2938_p10, %p2937_p7 }
  0xb9   : > { %p2940_p2 = pnand %p2939_p13, %p2933_p6 }
  0xbb   : > { %2943 = shalt.err (!%p2940_p2)
}
  0xbc   : > { %2476 = dma.hbm_to_vmem [thread:$0]  (!%p3194_p0), %s615_s3, 512, %s617_s11, %s605_s30, %s3047_s19, %s3047_s19, %s3048_s12  }
  0xbd   : > { %637 = sbr.rel (%p3230_p3) target bundleno = 541 (0x21d), region = 64 }
  0xc2   : > { %s5109_s17 = sld [smem:[#allocation28_spill]] }
  0xc8   : > { %s3368_s1 = sand.u32 1, %s5109_s17  }
  0xc9   : > { %s2392_s9 = sshll.u32 %s3368_s1, 6  ;;  %s640_s22 = scalar_lea.sflag [#allocation3], %s3368_s1 }
  0xca   : > { %s3372_s29 = scalar_lea.vmem [#allocation2], %s2392_s9 }
  0xcb   : > { %2995 = dma.done.wait (%p3172_p8), %s640_s22, 1024  }
  0xcc   : > { %2997 = vsyncadd (%p3172_p8), %s640_s22, 4294966272  ;;  %s5111_s15 = sld [smem:[#allocation32_spill]]  ;;  %s3380_s12 = sshll.u32 %s3368_s1, 4 }
  0xcd   : > { %s652_s13 = scalar_lea.vmem [#allocation5], %s3380_s12 }
  0xd2   : > { %s648_s19 = sand.u32 1, %s5111_s15  }
  0xd3   : > { %s649_s7 = scalar_lea.sflag [#allocation6], %s648_s19 }
  0xd4   : > { %2999 = dma.done.wait (%p3172_p8), %s649_s7, 1280  }
  0xd5   : > { %3001 = vsyncadd (%p3172_p8), %s649_s7, 4294966016  ;;  %s3387_s5 = scalar_lea.vmem [#allocation7], %s2392_s9  ;;  %s667_s24 = scalar_lea.sflag [#allocation9], %s648_s19 }
  0xd6   : > { %s670_s26 = scalar_lea.vmem [#allocation8], %s3380_s12 }
  0xd7   : > { %3003 = dma.done.wait (%p3172_p8), %s667_s24, 2304  }
  0xd8   : > { %3005 = vsyncadd (%p3172_p8), %s667_s24, 4294964992  ;;  %s2396_s20 = sshll.u32 %s3368_s1, 7  ;;  %s3396_s25 = sshll.u32 %s3368_s1, 5 }
  0xd9   : > { %s3398_s3 = scalar_lea.vmem [#allocation10], %s2396_s20  ;;  %s685_s10 = scalar_lea.sflag [#allocation12], %s648_s19 }
  0xda   : > { %s3401_s11 = scalar_lea.vmem [#allocation11], %s3396_s25 }
  0xdb   : > { %3007 = dma.done.wait (%p3172_p8), %s685_s10, 1024  }
  0xdc   : > { %3009 = vsyncadd (%p3172_p8), %s685_s10, 4294966272  ;;  %s697_s30 = scalar_lea.vmem [#allocation13], %s3396_s25  ;;  %s703_s18 = scalar_lea.sflag [#allocation15], %s648_s19 }
  0xdd   : > { %s706_s27 = scalar_lea.vmem [#allocation14], %s3396_s25 }
  0xde   : > { %3011 = dma.done.wait (%p3172_p8), %s703_s18, 768  }
  0xdf   : > { %3013 = vsyncadd (%p3172_p8), %s703_s18, 4294966528  ;;  %s715_s16 = scalar_lea.vmem [#allocation16], %s3380_s12  ;;  %s721_s28 = scalar_lea.sflag [#allocation18], %s3368_s1 }
  0xe0   : > { %s3416_s23 = scalar_lea.vmem [#allocation17], %s3396_s25 }
  0xe1   : > { %3015 = dma.done.wait (%p3172_p8), %s721_s28, 512  }
  0xe2   : > { %3017 = vsyncadd (%p3172_p8), %s721_s28, 4294966784  ;;  %s5112_s17 = sld [smem:[#allocation30_spill]]  ;;  %v848_v0 = vld [vmem:[%s697_s30] sm:$0xff]  ;;  %v849_v1 = vld [vmem:[%s697_s30 + $0x8] sm:$0xff]  ;;  %s3444_s14 = scalar_lea.vmem [#allocation19], %s3396_s25 }
  0xe3   : > { %s5113_s7 = sld [smem:[#allocation136_spill]]  ;;  %v850_v2 = vld [vmem:[%s697_s30 + $0x10] sm:$0xff]  ;;  %v851_v3 = vld [vmem:[%s697_s30 + $0x18] sm:$0xff]  ;;  %v852_v4 = vld [vmem:[%s706_s27] sm:$0xff]  ;;  %s2046_s10 = scalar_lea.sflag [#allocation4], %s3368_s1 }
  0xe4   : > { %v853_v5 = vld [vmem:[%s706_s27 + $0x8] sm:$0xff]  ;;  %v854_v6 = vld [vmem:[%s706_s27 + $0x10] sm:$0xff]  ;;  %v855_v7 = vld [vmem:[%s706_s27 + $0x18] sm:$0xff]  ;;  %v856_v8 = vsub.f32 %v848_v0, %v852_v4  ;;  %s5459_s20 = sld [smem:[#allocation137_spill]]  ;;  %s3058_s30 = smov [#allocation19]  }
  0xe5   : > { %v857_v9 = vsub.f32 %v849_v1, %v853_v5  ;;  %v858_v11 = vsub.f32 %v850_v2, %v854_v6  ;;  %v859_v12 = vsub.f32 %v851_v3, %v855_v7  ;;  %v912_v46 = vld [vmem:[%s652_s13] sm:$0xff]  ;;  %v913_v47 = vld [vmem:[%s652_s13 + $0x8] sm:$0xff]  ;;  %s2059_s13 = sshll.u32 %s3444_s14, 4  ;;  %s2948_s18 = sshll.u32 %s3058_s30, 4  ;;  %s4923_s13 = int_to_ptr.vmem [resolvable:$true] %s2059_s13  ;;  %s2949_s18 = int_to_ptr.vmem [resolvable:$false] %s2948_s18 }
  0xe6   : > { %v860_v15 = vand.u32 2147483647, %v856_v8  ;;  %v930_v49 = vld [vmem:[%s715_s16] sm:$0xff]  ;;  %v914_v50 = vunpack.c.0.s8 %v912_v46  ;;  %v915_v51 = vunpack.c.1.s8 %v912_v46  ;;  %v916_v52 = vunpack.c.2.s8 %v912_v46  ;;  %v931_v54 = vld [vmem:[%s715_s16 + $0x8] sm:$0xff]  ;;  %s2950_s27 = scalar_lea.vmem %s2949_s18, 1024  ;;  %p2951_p4 = scmp.lt.s32.totalorder %s4923_s13, %s2949_s18 }
  0xe7   : > { %v861_v16 = vand.u32 2147483647, %v857_v9  ;;  %v862_v19 = vand.u32 2147483647, %v858_v11  ;;  %v863_v20 = vand.u32 2147483647, %v859_v12  ;;  %v917_v53 = vunpack.c.3.s8 %v912_v46 }
  0xe8   : > { %p834_p0 = scmp.lt.s32.totalorder %s5112_s17, 1  ;;  %vm864_vm0 = vcmp.lt.f32.partialorder %v860_v15, 0.11111111  ;;  %v868_v23 = vmul.f32 4.5, %v860_v15  ;;  %v2404_v29 = vadd.f32 -0.055555556, %v860_v15  ;;  %v918_v56 = vunpack.c.0.s8 %v913_v47 }
  0xe9   : > { %vm865_vm1 = vcmp.lt.f32.partialorder %v861_v16, 0.11111111  ;;  %v869_v24 = vmul.f32 4.5, %v861_v16  ;;  %vm866_vm2 = vcmp.lt.f32.partialorder %v862_v19, 0.11111111  ;;  %v870_v25 = vmul.f32 4.5, %v862_v19 }
  0xea   : > { %s835_s9 = scalar_select %p834_p0, %s5112_s17, 1  ;;  %vm867_vm3 = vcmp.lt.f32.partialorder %v863_v20, 0.11111111  ;;  %v871_v26 = vmul.f32 4.5, %v863_v20  ;;  %v872_v27 = vmul.f32 %v868_v23, %v860_v15  ;;  %v2405_v30 = vadd.f32 -0.055555556, %v861_v16 }
  0xeb   : > { %v873_v28 = vmul.f32 %v869_v24, %v861_v16  ;;  %v874_v31 = vmul.f32 %v870_v25, %v862_v19  ;;  %v2406_v33 = vadd.f32 -0.055555556, %v862_v19  ;;  %v2407_v34 = vadd.f32 -0.055555556, %v863_v20  ;;  %v3467_v15 = vld [vmem:[%s3372_s29 + $0x8] sm:$0xff]  ;;  %s2423_s12 = sshll.u32 %s5112_s17, 9  ;;  %s5460_s25 = smov %s5459_s20 }
  0xec   : > { %s2403_s22 = sshll.u32 %s835_s9, 3  ;;  %v875_v32 = vmul.f32 %v871_v26, %v863_v20  ;;  %v880_v35 = vsel %vm864_vm0, %v872_v27, %v2404_v29  ;;  %v919_v57 = vunpack.c.1.s8 %v913_v47  ;;  %v920_v58 = vunpack.c.2.s8 %v913_v47  ;;  %v3478_v20 = vld [vmem:[%s3372_s29 + $0x10] sm:$0xff] }
  0xed   : > { %s837_s24 = scalar_lea.vmem %s5113_s7, %s2403_s22  ;;  %v881_v36 = vsel %vm865_vm1, %v873_v28, %v2405_v30  ;;  %v882_v39 = vsel %vm866_vm2, %v874_v31, %v2406_v33  ;;  %v921_v59 = vunpack.c.3.s8 %v913_v47  ;;  %v932_v60 = vunpack.c.0.s8 %v930_v49 }
  0xee   : > { %v884_v10 = vld [vmem:[%s837_s24] sm:$0xff]  ;;  %v883_v40 = vsel %vm867_vm3, %v875_v32, %v2407_v34  ;;  %v933_v61 = vunpack.c.1.s8 %v930_v49  ;;  %v934_v62 = vunpack.c.2.s8 %v930_v49  ;;  %v935_v63 = vunpack.c.3.s8 %v930_v49 }
  0xef   : > { %v885_v13 = vunpack.c.0.s8 %v884_v10  ;;  %v886_v14 = vunpack.c.1.s8 %v884_v10  ;;  %v887_v17 = vunpack.c.2.s8 %v884_v10  ;;  %v888_v18 = vunpack.c.3.s8 %v884_v10 }
  0xf0   : > { %v936_v0 = vunpack.c.0.s8 %v931_v54  ;;  %v937_v1 = vunpack.c.1.s8 %v931_v54  ;;  %v3439_v2 = vcvt.s32.f32 %v914_v50  ;;  %v3441_v3 = vcvt.s32.f32 %v915_v51 }
  0xf1   : > { %v889_v21 = vcvt.s32.f32 %v885_v13  ;;  %v890_v22 = vcvt.s32.f32 %v886_v14  ;;  %v891_v37 = vcvt.s32.f32 %v887_v17  ;;  %v892_v38 = vcvt.s32.f32 %v888_v18  ;;  %v3464_v14 = vld [vmem:[%s3372_s29] sm:$0xff] }
  0xf2   : > { %v938_v4 = vunpack.c.2.s8 %v931_v54  ;;  %v939_v5 = vunpack.c.3.s8 %v931_v54  ;;  %v3447_v6 = vcvt.s32.f32 %v916_v52  ;;  %v3449_v7 = vcvt.s32.f32 %v917_v53 }
  0xf3   : > { %v894_v41 = vmul.f32 %v889_v21, %v880_v35  ;;  %v895_v42 = vmul.f32 %v890_v22, %v881_v36  ;;  %v896_v43 = vmul.f32 %v891_v37, %v882_v39  ;;  %v897_v44 = vmul.f32 %v892_v38, %v883_v40  ;;  %v3481_v21 = vld [vmem:[%s3372_s29 + $0x18] sm:$0xff]  ;;  %v3484_v22 = vld [vmem:[%s3372_s29 + $0x20] sm:$0xff]  ;;  %v3516_v35 = vld [vmem:[%s3372_s29 + $0x28] sm:$0xff] }
  0xf4   : > { %v3451_v8 = vcvt.s32.f32 %v918_v56  ;;  %v3453_v9 = vcvt.s32.f32 %v919_v57  ;;  %v3455_v10 = vcvt.s32.f32 %v920_v58  ;;  %v3457_v11 = vcvt.s32.f32 %v921_v59  ;;  %v3523_v40 = vld [vmem:[%s3372_s29 + $0x30] sm:$0xff] }
  0xf5   : > { %v898_v45 = vadd.f32 %v895_v42, %v894_v41  ;;  %v3459_v12 = vcvt.s32.f32 %v932_v60  ;;  %v3461_v13 = vcvt.s32.f32 %v933_v61  ;;  %v3469_v16 = vcvt.s32.f32 %v934_v62  ;;  %v3526_v41 = vld [vmem:[%s3372_s29 + $0x38] sm:$0xff] }
  0xf6   : > { %v3471_v17 = vcvt.s32.f32 %v935_v63  ;;  %v3473_v18 = vcvt.s32.f32 %v936_v0  ;;  %v3475_v19 = vcvt.s32.f32 %v937_v1  ;;  %v3486_v23 = vcvt.s32.f32 %v938_v4 }
  0xf7   : > { %v899_v48 = vadd.f32 %v898_v45, %v896_v43  ;;  %v3488_v24 = vcvt.s32.f32 %v939_v5  ;;  %v3492_v25 = vmul.f32 %v3439_v2, %v3464_v14  ;;  %v3496_v26 = vmul.f32 %v3441_v3, %v3467_v15 }
  0xf8   : > { %5114 = vst [vmem:[#allocation39_spill] sm:$0xff] %v3486_v23  ;;  %v3500_v27 = vmul.f32 %v3447_v6, %v3478_v20  ;;  %v3504_v28 = vmul.f32 %v3449_v7, %v3481_v21  ;;  %v3508_v29 = vmul.f32 %v3451_v8, %v3484_v22  ;;  %v5003_v30 = vsub.f32 1.0, %v3439_v2 }
  0xf9   : > { %v900_v55 = vadd.f32 %v899_v48, %v897_v44  ;;  %5115 = vst [vmem:[#allocation40_spill] sm:$0xff] %v3488_v24  ;;  %v5004_v31 = vsub.f32 1.0, %v3441_v3  ;;  %v5006_v32 = vsub.f32 1.0, %v3447_v6  ;;  %v5007_v33 = vsub.f32 1.0, %v3449_v7 }
  0xfa   : > { %v5008_v34 = vsub.f32 1.0, %v3451_v8  ;;  %v964_v39 = vmax.f32 %v3464_v14, 0.0  ;;  %v965_v42 = vmax.f32 %v3467_v15, 0.0  ;;  %v966_v43 = vmax.f32 %v3478_v20, 0.0 }
  0xfb   : > { %902 = vst [vmem:[%s3444_s14] sm:$0xff] %v900_v55  ;;  %v967_v44 = vmax.f32 %v3481_v21, 0.0  ;;  %v968_v45 = vmax.f32 %v3484_v22, 0.0  ;;  %v969_v46 = vmax.f32 %v3516_v35, 0.0  ;;  %v970_v47 = vmax.f32 %v3523_v40, 0.0 }
  0xfc   : > { %v980_v48 = vand.u32 2147483647, %v3464_v14  ;;  %v981_v49 = vand.u32 2147483647, %v3467_v15  ;;  %v3538_v50 = vmul.f32 %v3453_v9, %v3516_v35  ;;  %v982_v51 = vand.u32 2147483647, %v3478_v20 }
  0xfd   : > { %v983_v52 = vand.u32 2147483647, %v3481_v21  ;;  %v984_v53 = vand.u32 2147483647, %v3484_v22  ;;  %v3545_v54 = vmul.f32 %v3455_v10, %v3523_v40  ;;  %v985_v55 = vand.u32 2147483647, %v3516_v35 }
  0xfe   : > { %v986_v56 = vand.u32 2147483647, %v3523_v40  ;;  %v987_v57 = vand.u32 2147483647, %v3526_v41  ;;  %v988_v58 = vsub.f32 0.0, %v980_v48  ;;  %v989_v59 = vsub.f32 0.0, %v981_v49 }
  0xff   : > { %v990_v60 = vsub.f32 0.0, %v982_v51  ;;  %v991_v61 = vsub.f32 0.0, %v983_v52  ;;  %v971_v62 = vmax.f32 %v3526_v41, 0.0  ;;  %v992_v63 = vsub.f32 0.0, %v984_v53 }
 0x100   : > { %v993_v0 = vsub.f32 0.0, %v985_v55  ;;  %v994_v1 = vsub.f32 0.0, %v986_v56  ;;  %v3553_v4 = vmul.f32 %v3457_v11, %v3526_v41  ;;  %v996_v5 = vmul.f32 1.442695, %v988_v58 }
 0x101   : > { %v998_v38 = vmul.f32 1.442695, %v989_v59  ;;  %v1000_v37 = vmul.f32 1.442695, %v990_v60  ;;  %v3556_v36 = vsub.f32 %v964_v39, %v3492_v25  ;;  %v3559_v48 = vsub.f32 %v965_v42, %v3496_v26 }
 0x102   : > { %v995_v49 = vsub.f32 0.0, %v987_v57  ;;  %v1002_v51 = vmul.f32 1.442695, %v991_v61  ;;  %v3562_v52 = vsub.f32 %v966_v43, %v3500_v27  ;;  %v3565_v53 = vsub.f32 %v967_v44, %v3504_v28 }
 0x103   : > { %2536 = vpow2.f32 %v996_v5  ;;  %v1004_v55 = vmul.f32 1.442695, %v992_v63  ;;  %v3568_v56 = vsub.f32 %v968_v45, %v3508_v29  ;;  %v3571_v58 = vsub.f32 %v969_v46, %v3538_v50 }
 0x104   : > { %v3574_v39 = vsub.f32 %v970_v47, %v3545_v54  ;;  %2538 = vpow2.f32 %v998_v38  ;;  %v3577_v42 = vsub.f32 %v971_v62, %v3553_v4  ;;  %v1006_v43 = vmul.f32 1.442695, %v993_v0 }
 0x105   : > { %5116 = vst [vmem:[#allocation41_spill] sm:$0xff] %v3571_v58  ;;  %2540 = vpow2.f32 %v1000_v37  ;;  %v1008_v57 = vmul.f32 1.442695, %v994_v1  ;;  %v1010_v44 = vmul.f32 1.442695, %v995_v49  ;;  %v1092_v59 = vmul.f32 0.25, %v3439_v2 }
 0x106   : > { %5117 = vst [vmem:[#allocation42_spill] sm:$0xff] %v3574_v39  ;;  %5118 = vst [vmem:[#allocation43_spill] sm:$0xff] %v3577_v42  ;;  %2542 = vpow2.f32 %v1002_v51  ;;  %v1093_v45 = vmul.f32 0.25, %v3441_v3  ;;  %v1094_v46 = vmul.f32 0.25, %v3447_v6  ;;  %v1095_v60 = vmul.f32 0.25, %v3449_v7 }
 0x107   : > { %2544 = vpow2.f32 %v1004_v55  ;;  %v1096_v47 = vmul.f32 0.25, %v3451_v8  ;;  %v1097_v38 = vmul.f32 0.25, %v3453_v9  ;;  %v1098_v61 = vmul.f32 0.25, %v3455_v10 }
 0x108   : > { %v1099_v37 = vmul.f32 0.25, %v3457_v11  ;;  %v1100_v62 = vmul.f32 0.75, %v5003_v30  ;;  %2546 = vpow2.f32 %v1006_v43  ;;  %v1101_v63 = vmul.f32 0.75, %v5004_v31 }
 0x109   : > { %v1102_v0 = vmul.f32 0.75, %v5006_v32  ;;  %v1103_v1 = vmul.f32 0.75, %v5007_v33  ;;  %2548 = vpow2.f32 %v1008_v57  ;;  %v1104_v5 = vmul.f32 0.75, %v5008_v34 }
 0x10a   : > { %v5119_v49 = vsub.f32 1.0, %v3453_v9  ;;  %v5120_v55 = vsub.f32 1.0, %v3455_v10  ;;  %2550 = vpow2.f32 %v1010_v44  ;;  %v5121_v43 = vsub.f32 1.0, %v3457_v11 }
 0x10b   : > { %v1116_v24 = vsub.f32 1.0, %v3464_v14  ;;  %v1117_v32 = vsub.f32 1.0, %v3467_v15  ;;  %v1118_v33 = vsub.f32 1.0, %v3478_v20  ;;  %v1119_v57 = vsub.f32 1.0, %v3481_v21 }
 0x10c   : > { %v1105_v51 = vmul.f32 0.75, %v5119_v49  ;;  %v1106_v30 = vmul.f32 0.75, %v5120_v55  ;;  %v1107_v31 = vmul.f32 0.75, %v5121_v43  ;;  %v1120_v34 = vsub.f32 1.0, %v3484_v22 }
 0x10d   : > { %v1121_v42 = vsub.f32 1.0, %v3516_v35  ;;  %v3609_v49 = vadd.f32 %v1100_v62, %v1092_v59  ;;  %v3611_v39 = vadd.f32 %v1101_v63, %v1093_v45  ;;  %v1122_v44 = vsub.f32 1.0, %v3523_v40 }
 0x10e   : > { %v1123_v55 = vsub.f32 1.0, %v3526_v41  ;;  %v3615_v43 = vadd.f32 %v1102_v0, %v1094_v46  ;;  %v3617_v14 = vadd.f32 %v1103_v1, %v1095_v60  ;;  %v5122_v15 = vsub.f32 1.0, %v3439_v2 }
 0x10f   : > { %v5123_v21 = vsub.f32 1.0, %v3441_v3  ;;  %v3623_v58 = vadd.f32 %v1104_v5, %v1096_v47  ;;  %v3625_v35 = vadd.f32 %v1105_v51, %v1097_v38  ;;  %v5124_v59 = vsub.f32 1.0, %v3447_v6 }
 0x110   : > { %v1124_v20 = vmul.f32 %v1116_v24, %v5122_v15  ;;  %v5125_v40 = vsub.f32 1.0, %v3449_v7  ;;  %v2537_v46 = vpop.eup %2536  ;;  %v3631_v62 = vadd.f32 %v1106_v30, %v1098_v61  ;;  %v3633_v60 = vadd.f32 %v1107_v31, %v1099_v37 }
 0x111   : > { %v1125_v22 = vmul.f32 %v1117_v32, %v5123_v21  ;;  %v1126_v45 = vmul.f32 %v1118_v33, %v5124_v59  ;;  %v5126_v2 = vsub.f32 1.0, %v3451_v8  ;;  %v5127_v3 = vsub.f32 1.0, %v3453_v9  ;;  %v2539_v47 = vpop.eup %2538 }
 0x112   : > { %v1127_v41 = vmul.f32 %v1119_v57, %v5125_v40  ;;  %v1012_v38 = vadd.f32 1.0, %v2537_v46  ;;  %v1015_v63 = vmul.f32 -0.5, %v2537_v46  ;;  %v5128_v6 = vsub.f32 1.0, %v3455_v10  ;;  %v2541_v1 = vpop.eup %2540 }
 0x113   : > { %v1128_v24 = vmul.f32 %v1120_v34, %v5126_v2  ;;  %v1129_v32 = vmul.f32 %v1121_v42, %v5127_v3  ;;  %v5129_v7 = vsub.f32 1.0, %v3457_v11  ;;  %v1021_v30 = vadd.f32 1.0, %v2539_v47  ;;  %v2543_v9 = vpop.eup %2542 }
 0x114   : > { %v1130_v33 = vmul.f32 %v1122_v44, %v5128_v6  ;;  %v1024_v61 = vmul.f32 -0.5, %v2539_v47  ;;  %v3644_v31 = vadd.f32 %v1124_v20, %v3492_v25  ;;  %v3647_v8 = vadd.f32 %v1125_v22, %v3496_v26  ;;  %v2545_v11 = vpop.eup %2544 }
 0x115   : > { %v1131_v0 = vmul.f32 %v1123_v55, %v5129_v7  ;;  %2552 = vlog2.f32 %v1012_v38  ;;  %v1030_v34 = vadd.f32 1.0, %v2541_v1  ;;  %v3650_v42 = vadd.f32 %v1126_v45, %v3500_v27  ;;  %v2547_v44 = vpop.eup %2546 }
 0x116   : > { %v3653_v10 = vadd.f32 %v1127_v41, %v3504_v28  ;;  %v1016_v37 = vadd.f32 1.0, %v1015_v63  ;;  %2554 = vlog2.f32 %v1021_v30  ;;  %v1033_v5 = vmul.f32 -0.5, %v2541_v1  ;;  %v2549_v20 = vpop.eup %2548 }
 0x117   : > { %v3656_v51 = vadd.f32 %v1128_v24, %v3508_v29  ;;  %v1018_v25 = vand.u32 2147483647, %v2537_v46  ;;  %2556 = vlog2.f32 %v1030_v34  ;;  %v1039_v26 = vadd.f32 1.0, %v2543_v9  ;;  %v2551_v29 = vpop.eup %2550 }
 0x118   : > { %v3659_v57 = vadd.f32 %v1129_v32, %v3538_v50  ;;  %v1025_v55 = vadd.f32 1.0, %v1024_v61  ;;  %v1027_v27 = vand.u32 2147483647, %v2539_v47  ;;  %v1042_v15 = vmul.f32 -0.5, %v2543_v9 }
 0x119   : > { %v3662_v28 = vadd.f32 %v1130_v33, %v3545_v54  ;;  %v1036_v21 = vand.u32 2147483647, %v2541_v1  ;;  %2558 = vlog2.f32 %v1039_v26  ;;  %v1048_v22 = vadd.f32 1.0, %v2545_v11 }
 0x11a   : > { %v1051_v59 = vmul.f32 -0.5, %v2545_v11  ;;  %v3664_v45 = vmul.f32 %v2537_v46, %v1016_v37  ;;  %v1034_v40 = vadd.f32 1.0, %v1033_v5  ;;  %v1045_v41 = vand.u32 2147483647, %v2543_v9 }
 0x11b   : > { %v3667_v50 = vadd.f32 %v1131_v0, %v3553_v4  ;;  %vm3669_vm4 = vcmp.lt.f32.partialorder %v1018_v25, 0.0004427343  ;;  %v1043_v24 = vadd.f32 1.0, %v1042_v15  ;;  %2560 = vlog2.f32 %v1048_v22 }
 0x11c   : > { %v1057_v54 = vadd.f32 1.0, %v2547_v44  ;;  %v1060_v3 = vmul.f32 -0.5, %v2547_v44  ;;  %v3673_v32 = vmul.f32 %v2539_v47, %v1025_v55  ;;  %vm3675_vm5 = vcmp.lt.f32.partialorder %v1027_v27, 0.0004427343 }
 0x11d   : > { %v1052_v46 = vadd.f32 1.0, %v1051_v59  ;;  %v1054_v63 = vand.u32 2147483647, %v2545_v11  ;;  %v1066_v6 = vadd.f32 1.0, %v2549_v20  ;;  %vm3679_vm6 = vcmp.lt.f32.partialorder %v1036_v21, 0.0004427343 }
 0x11e   : > { %2562 = vlog2.f32 %v1057_v54  ;;  %v1061_v33 = vadd.f32 1.0, %v1060_v3  ;;  %v1069_v7 = vmul.f32 -0.5, %v2549_v20  ;;  %v1035_v0 = vmul.f32 %v2541_v1, %v1034_v40 }
 0x11f   : > { %vm3683_vm7 = vcmp.lt.f32.partialorder %v1045_v41, 0.0004427343  ;;  %2564 = vlog2.f32 %v1066_v6  ;;  %v1075_v47 = vadd.f32 1.0, %v2551_v29  ;;  %v3687_v61 = vmul.f32 %v2543_v9, %v1043_v24 }
 0x120   : > { %v1063_v34 = vand.u32 2147483647, %v2547_v44  ;;  %v1072_v37 = vand.u32 2147483647, %v2549_v20  ;;  %v1078_v5 = vmul.f32 -0.5, %v2551_v29  ;;  %v3689_v25 = vmul.f32 %v2545_v11, %v1052_v46 }
 0x121   : > { %vm3691_vm8 = vcmp.lt.f32.partialorder %v1054_v63, 0.0004427343  ;;  %2566 = vlog2.f32 %v1075_v47  ;;  %v1140_v1 = vsub.f32 1.0, %v3644_v31  ;;  %v1141_v55 = vsub.f32 1.0, %v3647_v8  ;;  %v5147_v8 = vld [vmem:[#allocation42_spill] sm:$0xff] }
 0x122   : > { %v3697_v27 = vmul.f32 %v2547_v44, %v1061_v33  ;;  %v1070_v15 = vadd.f32 1.0, %v1069_v7  ;;  %v1081_v21 = vand.u32 2147483647, %v2551_v29  ;;  %v1142_v9 = vsub.f32 1.0, %v3650_v42  ;;  %v2553_v22 = vpop.eup %2552 }
 0x123   : > { %v1079_v59 = vadd.f32 1.0, %v1078_v5  ;;  %v1143_v11 = vsub.f32 1.0, %v3653_v10  ;;  %v1144_v40 = vsub.f32 1.0, %v3656_v51  ;;  %v1145_v41 = vsub.f32 1.0, %v3659_v57  ;;  %v2555_v24 = vpop.eup %2554 }
 0x124   : > { %v1014_v54 = vmul.f32 0.6931472, %v2553_v22  ;;  %vm3703_vm9 = vcmp.lt.f32.partialorder %v1063_v34, 0.0004427343  ;;  %vm3707_vm10 = vcmp.lt.f32.partialorder %v1072_v37, 0.0004427343  ;;  %v1148_v44 = vmul.f32 %v1140_v1, %v1140_v1  ;;  %v2557_v3 = vpop.eup %2556 }
 0x125   : > { %v1146_v42 = vsub.f32 1.0, %v3662_v28  ;;  %v1023_v46 = vmul.f32 0.6931472, %v2555_v24  ;;  %v1147_v10 = vsub.f32 1.0, %v3667_v50  ;;  %v1149_v51 = vmul.f32 %v1141_v55, %v1141_v55 }
 0x126   : > { %v1150_v63 = vmul.f32 %v1142_v9, %v1142_v9  ;;  %v1032_v57 = vmul.f32 0.6931472, %v2557_v3  ;;  %v1071_v6 = vmul.f32 %v2549_v20, %v1070_v15  ;;  %v1151_v33 = vmul.f32 %v1143_v11, %v1143_v11  ;;  %v2559_v47 = vpop.eup %2558 }
 0x127   : > { %v1152_v7 = vmul.f32 %v1144_v40, %v1144_v40  ;;  %v1020_v34 = vsel %vm3669_vm4, %v3664_v45, %v1014_v54  ;;  %v1080_v37 = vmul.f32 %v2551_v29, %v1079_v59  ;;  %vm3716_vm11 = vcmp.lt.f32.partialorder %v1081_v21, 0.0004427343 }
 0x128   : > { %v1153_v28 = vmul.f32 %v1145_v41, %v1145_v41  ;;  %v1029_v50 = vsel %vm3675_vm5, %v3673_v32, %v1023_v46  ;;  %v1038_v20 = vsel %vm3679_vm6, %v1035_v0, %v1032_v57  ;;  %v1041_v1 = vmul.f32 0.6931472, %v2559_v47  ;;  %v2561_v15 = vpop.eup %2560  ;;  %v5148_v47 = vld [vmem:[#allocation43_spill] sm:$0xff] }
 0x129   : > { %v1156_v55 = vmul.f32 %v1148_v44, %v3609_v49  ;;  %v1154_v9 = vmul.f32 %v1146_v42, %v1146_v42  ;;  %v1155_v2 = vmul.f32 %v1147_v10, %v1147_v10  ;;  %v1157_v29 = vmul.f32 %v1149_v51, %v3611_v39 }
 0x12a   : > { %v1158_v45 = vmul.f32 %v1150_v63, %v3615_v43  ;;  %v1047_v21 = vsel %vm3683_vm7, %v3687_v61, %v1041_v1  ;;  %v1050_v22 = vmul.f32 0.6931472, %v2561_v15  ;;  %v1159_v32 = vmul.f32 %v1151_v33, %v3617_v14  ;;  %v1199_v63 = vld [vmem:[%s670_s26 + $0x8] sm:$0xff] }
 0x12b   : > { %v1160_v38 = vmul.f32 %v1152_v7, %v3623_v58  ;;  %v2563_v4 = vpop.eup %2562  ;;  %v1084_v49 = vadd.f32 %v1020_v34, %v3556_v36  ;;  %v1085_v0 = vadd.f32 %v1029_v50, %v3559_v48  ;;  %v1086_v59 = vadd.f32 %v1038_v20, %v3562_v52  ;;  %v1198_v52 = vld [vmem:[%s670_s26] sm:$0xff] }
 0x12c   : > { %v1164_v39 = vmul.f32 %v1156_v55, %v3459_v12  ;;  %v2565_v43 = vpop.eup %2564  ;;  %v1056_v30 = vsel %vm3691_vm8, %v3689_v25, %v1050_v22  ;;  %v1059_v61 = vmul.f32 0.6931472, %v2563_v4  ;;  %v1165_v14 = vmul.f32 %v1157_v29, %v3461_v13 }
 0x12d   : > { %v1166_v11 = vmul.f32 %v1158_v45, %v3469_v16  ;;  %v1068_v58 = vmul.f32 0.6931472, %v2565_v43  ;;  %v1087_v40 = vadd.f32 %v1047_v21, %v3565_v53  ;;  %v1161_v36 = vmul.f32 %v1153_v28, %v3625_v35  ;;  %v5149_v28 = vld [vmem:[#allocation40_spill] sm:$0xff] }
 0x12e   : > { %v1162_v48 = vmul.f32 %v1154_v9, %v3631_v62  ;;  %v2567_v41 = vpop.eup %2566  ;;  %v1088_v24 = vadd.f32 %v1056_v30, %v3568_v56  ;;  %v1163_v25 = vmul.f32 %v1155_v2, %v3633_v60  ;;  %v1167_v26 = vmul.f32 %v1159_v32, %v3471_v17 }
 0x12f   : > { %v1168_v54 = vmul.f32 %v1160_v38, %v3473_v18  ;;  %v1065_v53 = vsel %vm3703_vm9, %v3697_v27, %v1059_v61  ;;  %v1074_v35 = vsel %vm3707_vm10, %v1071_v6, %v1068_v58  ;;  %v1077_v62 = vmul.f32 0.6931472, %v2567_v41  ;;  %v5146_v27 = vld [vmem:[#allocation41_spill] sm:$0xff]  ;;  %v3796_v58 = vld [vmem:[%s3387_s5 + $0x28] sm:$0xff] }
 0x130   : > { %v1172_v42 = vmul.f32 %v1164_v39, %v1084_v49  ;;  %v1173_v44 = vmul.f32 %v1165_v14, %v1085_v0  ;;  %v1174_v3 = vmul.f32 %v1166_v11, %v1086_v59  ;;  %v1200_v46 = vunpack.c.0.s8 %v1198_v52  ;;  %v3775_v0 = vld [vmem:[%s3387_s5] sm:$0xff]  ;;  %v3778_v59 = vld [vmem:[%s3387_s5 + $0x8] sm:$0xff]  ;;  %v3781_v39 = vld [vmem:[%s3387_s5 + $0x10] sm:$0xff] }
 0x131   : > { %v1201_v10 = vunpack.c.1.s8 %v1198_v52  ;;  %v1083_v56 = vsel %vm3716_vm11, %v1080_v37, %v1077_v62  ;;  %v1169_v60 = vmul.f32 %v1161_v36, %v3475_v19  ;;  %v1170_v51 = vmul.f32 %v1162_v48, %v3486_v23  ;;  %v3790_v14 = vld [vmem:[%s3387_s5 + $0x18] sm:$0xff]  ;;  %v3793_v11 = vld [vmem:[%s3387_s5 + $0x20] sm:$0xff] }
 0x132   : > { %v1202_v31 = vunpack.c.2.s8 %v1198_v52  ;;  %v1089_v57 = vadd.f32 %v1065_v53, %v5146_v27  ;;  %v1090_v6 = vadd.f32 %v1074_v35, %v5147_v8  ;;  %v1175_v33 = vmul.f32 %v1167_v26, %v1087_v40  ;;  %v3842_v27 = vld [vmem:[%s3387_s5 + $0x38] sm:$0xff] }
 0x133   : > { %v1180_v7 = vadd.f32 %v1173_v44, %v1172_v42  ;;  %v1091_v34 = vadd.f32 %v1083_v56, %v5148_v47  ;;  %v1171_v50 = vmul.f32 %v1163_v25, %v5149_v28  ;;  %v1176_v20 = vmul.f32 %v1168_v54, %v1088_v24  ;;  %v3813_v24 = vld [vmem:[%s3387_s5 + $0x30] sm:$0xff] }
 0x134   : > { %v1203_v37 = vunpack.c.3.s8 %v1198_v52  ;;  %v1204_v1 = vunpack.c.0.s8 %v1199_v63  ;;  %v1205_v55 = vunpack.c.1.s8 %v1199_v63  ;;  %v1206_v15 = vunpack.c.2.s8 %v1199_v63 }
 0x135   : > { %v1181_v5 = vadd.f32 %v1180_v7, %v1174_v3  ;;  %v1207_v9 = vunpack.c.3.s8 %v1199_v63  ;;  %v1177_v2 = vmul.f32 %v1169_v60, %v1089_v57  ;;  %v1178_v29 = vmul.f32 %v1170_v51, %v1090_v6 }
 0x136   : > { %v3766_v21 = vcvt.s32.f32 %v1200_v46  ;;  %v1179_v22 = vmul.f32 %v1171_v50, %v1091_v34  ;;  %v3768_v32 = vcvt.s32.f32 %v1201_v10  ;;  %v3770_v38 = vcvt.s32.f32 %v1202_v31 }
 0x137   : > { %v1182_v45 = vadd.f32 %v1181_v5, %v1175_v33  ;;  %v3772_v4 = vcvt.s32.f32 %v1203_v37  ;;  %v3783_v43 = vcvt.s32.f32 %v1204_v1  ;;  %v3785_v30 = vcvt.s32.f32 %v1205_v55 }
 0x138   : > { %v3787_v61 = vcvt.s32.f32 %v1206_v15  ;;  %v3798_v40 = vcvt.s32.f32 %v1207_v9  ;;  %v3802_v36 = vmul.f32 %v3766_v21, %v3775_v0  ;;  %v3806_v48 = vmul.f32 %v3768_v32, %v3778_v59 }
 0x139   : > { %v1183_v49 = vadd.f32 %v1182_v45, %v1176_v20  ;;  %v3810_v52 = vmul.f32 %v3770_v38, %v3781_v39  ;;  %v3817_v25 = vmul.f32 %v3772_v4, %v3790_v14  ;;  %v3821_v26 = vmul.f32 %v3783_v43, %v3793_v11 }
 0x13a   : > { %v3825_v54 = vmul.f32 %v3785_v30, %v3796_v58  ;;  %v3829_v53 = vmul.f32 %v3787_v61, %v3813_v24  ;;  %v5009_v35 = vsub.f32 1.0, %v3766_v21  ;;  %v5011_v62 = vsub.f32 1.0, %v3768_v32 }
 0x13b   : > { %v1184_v41 = vadd.f32 %v1183_v49, %v1177_v2  ;;  %v5010_v42 = vsub.f32 1.0, %v3770_v38  ;;  %v1250_v51 = vmax.f32 %v3775_v0, 0.0  ;;  %v1251_v63 = vmax.f32 %v3778_v59, 0.0 }
 0x13c   : > { %v1252_v57 = vmax.f32 %v3781_v39, 0.0  ;;  %v1253_v8 = vmax.f32 %v3790_v14, 0.0  ;;  %v1254_v6 = vmax.f32 %v3793_v11, 0.0  ;;  %v3849_v33 = vmul.f32 %v3798_v40, %v3842_v27 }
 0x13d   : > { %v1185_v44 = vadd.f32 %v1184_v41, %v1178_v29  ;;  %v1266_v7 = vand.u32 2147483647, %v3775_v0  ;;  %v1267_v47 = vand.u32 2147483647, %v3778_v59  ;;  %v1268_v34 = vand.u32 2147483647, %v3781_v39 }
 0x13e   : > { %v1269_v50 = vand.u32 2147483647, %v3790_v14  ;;  %v1270_v20 = vand.u32 2147483647, %v3793_v11  ;;  %v1271_v37 = vand.u32 2147483647, %v3796_v58 }
 0x13f   : > { %v1186_v31 = vadd.f32 %v1185_v44, %v1179_v22  ;;  %v1272_v5 = vand.u32 2147483647, %v3813_v24  ;;  %v1273_v1 = vand.u32 2147483647, %v3842_v27  ;;  %v1274_v55 = vsub.f32 0.0, %v1266_v7 }
 0x140   : > { %v1275_v15 = vsub.f32 0.0, %v1267_v47  ;;  %v1255_v9 = vmax.f32 %v3796_v58, 0.0  ;;  %v1276_v2 = vsub.f32 0.0, %v1268_v34  ;;  %v1277_v29 = vsub.f32 0.0, %v1269_v50 }
 0x141   : > { %1188 = vst [vmem:[%s3444_s14 + $0x8] sm:$0xff] %v1186_v31  ;;  %v1278_v45 = vsub.f32 0.0, %v1270_v20  ;;  %v1256_v22 = vmax.f32 %v3813_v24, 0.0  ;;  %v1279_v49 = vsub.f32 0.0, %v1271_v37  ;;  %v1282_v41 = vmul.f32 1.442695, %v1274_v55 }
 0x142   : > { %v1284_v44 = vmul.f32 1.442695, %v1275_v15  ;;  %v1280_v60 = vsub.f32 0.0, %v1272_v5  ;;  %v1281_v56 = vsub.f32 0.0, %v1273_v1  ;;  %v1286_v10 = vmul.f32 1.442695, %v1276_v2 }
 0x143   : > { %v1288_v46 = vmul.f32 1.442695, %v1277_v29  ;;  %v3864_v7 = vsub.f32 %v1250_v51, %v3802_v36  ;;  %2568 = vpow2.f32 %v1282_v41  ;;  %v1290_v31 = vmul.f32 1.442695, %v1278_v45 }
 0x144   : > { %v3867_v47 = vsub.f32 %v1251_v63, %v3806_v48  ;;  %v3870_v34 = vsub.f32 %v1252_v57, %v3810_v52  ;;  %v3873_v50 = vsub.f32 %v1253_v8, %v3817_v25  ;;  %2570 = vpow2.f32 %v1284_v44 }
 0x145   : > { %v3876_v20 = vsub.f32 %v1254_v6, %v3821_v26  ;;  %v3879_v37 = vsub.f32 %v1255_v9, %v3825_v54  ;;  %2572 = vpow2.f32 %v1286_v10  ;;  %v1292_v51 = vmul.f32 1.442695, %v1279_v49 }
 0x146   : > { %v3882_v5 = vsub.f32 %v1256_v22, %v3829_v53  ;;  %2574 = vpow2.f32 %v1288_v46  ;;  %v1294_v63 = vmul.f32 1.442695, %v1280_v60  ;;  %v1296_v1 = vmul.f32 1.442695, %v1281_v56 }
 0x147   : > { %2576 = vpow2.f32 %v1290_v31  ;;  %v1378_v57 = vmul.f32 0.25, %v3766_v21  ;;  %v1379_v8 = vmul.f32 0.25, %v3768_v32  ;;  %v1380_v55 = vmul.f32 0.25, %v3770_v38 }
 0x148   : > { %5150 = vst [vmem:[#allocation41_spill] sm:$0xff] %v3882_v5  ;;  %v1381_v6 = vmul.f32 0.25, %v3772_v4  ;;  %v1382_v15 = vmul.f32 0.25, %v3783_v43  ;;  %v1383_v10 = vmul.f32 0.25, %v3785_v30  ;;  %v1384_v9 = vmul.f32 0.25, %v3787_v61 }
 0x149   : > { %2578 = vpow2.f32 %v1292_v51  ;;  %v1385_v46 = vmul.f32 0.25, %v3798_v40  ;;  %v1386_v56 = vmul.f32 0.75, %v5009_v35  ;;  %v1387_v60 = vmul.f32 0.75, %v5011_v62 }
 0x14a   : > { %2580 = vpow2.f32 %v1294_v63  ;;  %v1388_v2 = vmul.f32 0.75, %v5010_v42  ;;  %v5151_v29 = vsub.f32 1.0, %v3772_v4  ;;  %v5152_v22 = vsub.f32 1.0, %v3783_v43 }
 0x14b   : > { %v5153_v41 = vsub.f32 1.0, %v3785_v30  ;;  %v5154_v31 = vsub.f32 1.0, %v3787_v61  ;;  %v5155_v3 = vsub.f32 1.0, %v3798_v40  ;;  %v1402_v63 = vsub.f32 1.0, %v3775_v0 }
 0x14c   : > { %v1389_v45 = vmul.f32 0.75, %v5151_v29  ;;  %v1390_v49 = vmul.f32 0.75, %v5152_v22  ;;  %2582 = vpow2.f32 %v1296_v1  ;;  %v1403_v42 = vsub.f32 1.0, %v3778_v59 }
 0x14d   : > { %v1391_v44 = vmul.f32 0.75, %v5153_v41  ;;  %v1392_v51 = vmul.f32 0.75, %v5154_v31  ;;  %v1393_v35 = vmul.f32 0.75, %v5155_v3  ;;  %v1404_v62 = vsub.f32 1.0, %v3781_v39 }
 0x14e   : > { %v1405_v29 = vsub.f32 1.0, %v3790_v14  ;;  %v3912_v28 = vadd.f32 %v1386_v56, %v1378_v57  ;;  %v1406_v22 = vsub.f32 1.0, %v3793_v11  ;;  %v1407_v41 = vsub.f32 1.0, %v3796_v58 }
 0x14f   : > { %v1408_v31 = vsub.f32 1.0, %v3813_v24  ;;  %v3917_v23 = vadd.f32 %v1387_v60, %v1379_v8  ;;  %v1409_v3 = vsub.f32 1.0, %v3842_v27  ;;  %v5156_v0 = vsub.f32 1.0, %v3766_v21 }
 0x150   : > { %v5157_v59 = vsub.f32 1.0, %v3768_v32  ;;  %v3924_v5 = vadd.f32 %v1388_v2, %v1380_v55  ;;  %v3926_v14 = vadd.f32 %v1389_v45, %v1381_v6  ;;  %v3928_v57 = vadd.f32 %v1390_v49, %v1382_v15  ;;  %v2569_v24 = vpop.eup %2568 }
 0x151   : > { %v1410_v1 = vmul.f32 %v1402_v63, %v5156_v0  ;;  %v5158_v11 = vsub.f32 1.0, %v3770_v38  ;;  %v3932_v8 = vadd.f32 %v1391_v44, %v1383_v10  ;;  %v3934_v56 = vadd.f32 %v1392_v51, %v1384_v9 }
 0x152   : > { %v1411_v39 = vmul.f32 %v1403_v42, %v5157_v59  ;;  %v3936_v60 = vadd.f32 %v1393_v35, %v1385_v46  ;;  %v5159_v21 = vsub.f32 1.0, %v3772_v4  ;;  %v2571_v42 = vpop.eup %2570  ;;  %v1298_v55 = vadd.f32 1.0, %v2569_v24 }
 0x153   : > { %v1412_v58 = vmul.f32 %v1404_v62, %v5158_v11  ;;  %v5160_v6 = vsub.f32 1.0, %v3783_v43  ;;  %v5161_v15 = vsub.f32 1.0, %v3785_v30  ;;  %v5162_v38 = vsub.f32 1.0, %v3787_v61  ;;  %v2573_v10 = vpop.eup %2572 }
 0x154   : > { %v1413_v32 = vmul.f32 %v1405_v29, %v5159_v21  ;;  %v1307_v49 = vadd.f32 1.0, %v2571_v42  ;;  %v5163_v9 = vsub.f32 1.0, %v3798_v40  ;;  %v3951_v4 = vadd.f32 %v1410_v1, %v3802_v36  ;;  %v2575_v43 = vpop.eup %2574 }
 0x155   : > { %v1414_v2 = vmul.f32 %v1406_v22, %v5160_v6  ;;  %v1415_v45 = vmul.f32 %v1407_v41, %v5161_v15  ;;  %v1416_v62 = vmul.f32 %v1408_v31, %v5162_v38  ;;  %v3954_v46 = vadd.f32 %v1411_v39, %v3806_v48  ;;  %v2577_v61 = vpop.eup %2576 }
 0x156   : > { %v3948_v35 = vmul.f32 %v1409_v3, %v5163_v9  ;;  %2584 = vlog2.f32 %v1298_v55  ;;  %v1301_v44 = vmul.f32 -0.5, %v2569_v24  ;;  %v1316_v30 = vadd.f32 1.0, %v2573_v10  ;;  %v2579_v41 = vpop.eup %2578 }
 0x157   : > { %v3957_v51 = vadd.f32 %v1412_v58, %v3810_v52  ;;  %v1304_v63 = vand.u32 2147483647, %v2569_v24  ;;  %2586 = vlog2.f32 %v1307_v49  ;;  %v1310_v29 = vmul.f32 -0.5, %v2571_v42  ;;  %v2581_v1 = vpop.eup %2580 }
 0x158   : > { %v1319_v40 = vmul.f32 -0.5, %v2573_v10  ;;  %2588 = vlog2.f32 %v1316_v30  ;;  %v1325_v22 = vadd.f32 1.0, %v2575_v43  ;;  %v3960_v36 = vadd.f32 %v1413_v32, %v3817_v25 }
 0x159   : > { %v3963_v48 = vadd.f32 %v1414_v2, %v3821_v26  ;;  %v1313_v31 = vand.u32 2147483647, %v2571_v42  ;;  %v1328_v3 = vmul.f32 -0.5, %v2575_v43  ;;  %v3966_v0 = vadd.f32 %v1415_v45, %v3825_v54  ;;  %v3975_v55 = vpop.eup %2582 }
 0x15a   : > { %v3969_v52 = vadd.f32 %v1416_v62, %v3829_v53  ;;  %v1302_v59 = vadd.f32 1.0, %v1301_v44  ;;  %2590 = vlog2.f32 %v1325_v22  ;;  %v1334_v39 = vadd.f32 1.0, %v2577_v61 }
 0x15b   : > { %v1337_v11 = vmul.f32 -0.5, %v2577_v61  ;;  %vm3971_vm12 = vcmp.lt.f32.partialorder %v1304_v63, 0.0004427343  ;;  %v1311_v26 = vadd.f32 1.0, %v1310_v29  ;;  %v1320_v58 = vadd.f32 1.0, %v1319_v40 }
 0x15c   : > { %v1322_v21 = vand.u32 2147483647, %v2573_v10  ;;  %v1331_v32 = vand.u32 2147483647, %v2575_v43  ;;  %v1329_v54 = vadd.f32 1.0, %v1328_v3  ;;  %2592 = vlog2.f32 %v1334_v39 }
 0x15d   : > { %v1343_v6 = vadd.f32 1.0, %v2579_v41  ;;  %v1346_v53 = vmul.f32 -0.5, %v2579_v41  ;;  %vm3977_vm13 = vcmp.lt.f32.partialorder %v1313_v31, 0.0004427343  ;;  %v1338_v15 = vadd.f32 1.0, %v1337_v11 }
 0x15e   : > { %v1340_v45 = vand.u32 2147483647, %v2577_v61  ;;  %v1352_v38 = vadd.f32 1.0, %v2581_v1  ;;  %v1303_v62 = vmul.f32 %v2569_v24, %v1302_v59  ;;  %v1355_v9 = vmul.f32 -0.5, %v2581_v1 }
 0x15f   : > { %2594 = vlog2.f32 %v1343_v6  ;;  %v1347_v49 = vadd.f32 1.0, %v1346_v53  ;;  %v1312_v44 = vmul.f32 %v2571_v42, %v1311_v26  ;;  %vm3981_vm14 = vcmp.lt.f32.partialorder %v1322_v21, 0.0004427343 }
 0x160   : > { %2596 = vlog2.f32 %v1352_v38  ;;  %v1361_v63 = vadd.f32 1.0, %v3975_v55  ;;  %v1321_v29 = vmul.f32 %v2573_v10, %v1320_v58  ;;  %v3986_v40 = vmul.f32 %v2575_v43, %v1329_v54 }
 0x161   : > { %vm3988_vm15 = vcmp.lt.f32.partialorder %v1331_v32, 0.0004427343  ;;  %v1349_v31 = vand.u32 2147483647, %v2579_v41  ;;  %v3992_v24 = vmul.f32 %v2577_v61, %v1338_v15  ;;  %vm3994_vm0 = vcmp.lt.f32.partialorder %v1340_v45, 0.0004427343 }
 0x162   : > { %2598 = vlog2.f32 %v1361_v63  ;;  %v1426_v42 = vsub.f32 1.0, %v3951_v4  ;;  %v3999_v59 = vmul.f32 %v2579_v41, %v1347_v49  ;;  %v1356_v39 = vadd.f32 1.0, %v1355_v9 }
 0x163   : > { %v1358_v10 = vand.u32 2147483647, %v2581_v1  ;;  %v1427_v43 = vsub.f32 1.0, %v3954_v46  ;;  %v2585_v11 = vpop.eup %2584  ;;  %v1364_v26 = vmul.f32 -0.5, %v3975_v55  ;;  %v1428_v58 = vsub.f32 1.0, %v3957_v51 }
 0x164   : > { %v1429_v61 = vsub.f32 1.0, %v3960_v36  ;;  %v1430_v21 = vsub.f32 1.0, %v3963_v48  ;;  %v2587_v32 = vpop.eup %2586  ;;  %v1300_v54 = vmul.f32 0.6931472, %v2585_v11  ;;  %vm4006_vm1 = vcmp.lt.f32.partialorder %v1349_v31, 0.0004427343 }
 0x165   : > { %v1367_v4 = vand.u32 2147483647, %v3975_v55  ;;  %v1425_v46 = vadd.f32 %v3948_v35, %v3849_v33  ;;  %v1431_v41 = vsub.f32 1.0, %v3966_v0  ;;  %v2589_v53 = vpop.eup %2588  ;;  %v1309_v15 = vmul.f32 0.6931472, %v2587_v32 }
 0x166   : > { %v1434_v51 = vmul.f32 %v1426_v42, %v1426_v42  ;;  %v1435_v45 = vmul.f32 %v1427_v43, %v1427_v43  ;;  %v1436_v36 = vmul.f32 %v1428_v58, %v1428_v58  ;;  %v1306_v48 = vsel %vm3971_vm12, %v1303_v62, %v1300_v54 }
 0x167   : > { %v1318_v38 = vmul.f32 0.6931472, %v2589_v53  ;;  %v1432_v49 = vsub.f32 1.0, %v3969_v52  ;;  %v1437_v9 = vmul.f32 %v1429_v61, %v1429_v61  ;;  %v2591_v63 = vpop.eup %2590  ;;  %v1357_v31 = vmul.f32 %v2581_v1, %v1356_v39 }
 0x168   : > { %vm4017_vm2 = vcmp.lt.f32.partialorder %v1358_v10, 0.0004427343  ;;  %v1365_v35 = vadd.f32 1.0, %v1364_v26  ;;  %v1438_v0 = vmul.f32 %v1430_v21, %v1430_v21  ;;  %v1315_v42 = vsel %vm3977_vm13, %v1312_v44, %v1309_v15 }
 0x169   : > { %v1324_v43 = vsel %vm3981_vm14, %v1321_v29, %v1318_v38  ;;  %v1327_v25 = vmul.f32 0.6931472, %v2591_v63  ;;  %v1433_v62 = vsub.f32 1.0, %v1425_v46  ;;  %v2593_v58 = vpop.eup %2592  ;;  %v1370_v52 = vadd.f32 %v1306_v48, %v3864_v7 }
 0x16a   : > { %v1442_v61 = vmul.f32 %v1434_v51, %v3912_v28  ;;  %v1443_v1 = vmul.f32 %v1435_v45, %v3917_v23  ;;  %v1444_v39 = vmul.f32 %v1436_v36, %v3924_v5  ;;  %v1336_v10 = vmul.f32 0.6931472, %v2593_v58  ;;  %v5181_v36 = vld [vmem:[#allocation41_spill] sm:$0xff] }
 0x16b   : > { %v1439_v26 = vmul.f32 %v1431_v41, %v1431_v41  ;;  %v1440_v21 = vmul.f32 %v1432_v49, %v1432_v49  ;;  %v1445_v2 = vmul.f32 %v1437_v9, %v3926_v14  ;;  %v1333_v30 = vsel %vm3988_vm15, %v3986_v40, %v1327_v25  ;;  %v1492_v25 = vld [vmem:[%s3401_s11] sm:$0xff]  ;;  %v1494_v58 = vld [vmem:[%s3401_s11 + $0x10] sm:$0xff] }
 0x16c   : > { %v2595_v44 = vpop.eup %2594  ;;  %v1371_v29 = vadd.f32 %v1315_v42, %v3867_v47  ;;  %v1372_v7 = vadd.f32 %v1324_v43, %v3870_v34  ;;  %v1446_v28 = vmul.f32 %v1438_v0, %v3928_v57  ;;  %v1342_v23 = vsel %vm3994_vm0, %v3992_v24, %v1336_v10 }
 0x16d   : > { %v2597_v32 = vpop.eup %2596  ;;  %v1345_v5 = vmul.f32 0.6931472, %v2595_v44  ;;  %v1450_v54 = vmul.f32 %v1442_v61, %v3459_v12  ;;  %v1451_v14 = vmul.f32 %v1443_v1, %v3461_v13  ;;  %vm4041_vm3 = vcmp.lt.f32.partialorder %v1367_v4, 0.0004427343 }
 0x16e   : > { %v1354_v46 = vmul.f32 0.6931472, %v2597_v32  ;;  %v1441_v47 = vmul.f32 %v1433_v62, %v1433_v62  ;;  %v1452_v34 = vmul.f32 %v1444_v39, %v3469_v16  ;;  %v1366_v57 = vmul.f32 %v3975_v55, %v1365_v35  ;;  %v1493_v62 = vld [vmem:[%s3401_s11 + $0x8] sm:$0xff] }
 0x16f   : > { %v2599_v40 = vpop.eup %2598  ;;  %v1373_v41 = vadd.f32 %v1333_v30, %v3873_v50  ;;  %v1447_v24 = vmul.f32 %v1439_v26, %v3932_v8  ;;  %v1453_v3 = vmul.f32 %v1445_v2, %v3471_v17  ;;  %v1351_v12 = vsel %vm4006_vm1, %v3999_v59, %v1345_v5 }
 0x170   : > { %v1363_v13 = vmul.f32 0.6931472, %v2599_v40  ;;  %v1374_v4 = vadd.f32 %v1342_v23, %v3876_v20  ;;  %v1448_v53 = vmul.f32 %v1440_v21, %v3934_v56  ;;  %v1454_v16 = vmul.f32 %v1446_v28, %v3473_v18 }
 0x171   : > { %v1458_v15 = vmul.f32 %v1450_v54, %v1370_v52  ;;  %v1459_v51 = vmul.f32 %v1451_v14, %v1371_v29  ;;  %v1460_v55 = vmul.f32 %v1452_v34, %v1372_v7  ;;  %v5180_v50 = vmax.f32 %v3842_v27, 0.0  ;;  %v5182_v27 = vld [vmem:[#allocation39_spill] sm:$0xff]  ;;  %v1495_v52 = vld [vmem:[%s3401_s11 + $0x18] sm:$0xff]  ;;  %s2944_s11 = scalar_lea.vmem %s4923_s13, 512 }
 0x172   : > { %v1360_v17 = vsel %vm4017_vm2, %v1357_v31, %v1354_v46  ;;  %v1449_v6 = vmul.f32 %v1441_v47, %v3936_v60  ;;  %v1375_v59 = vadd.f32 %v1351_v12, %v3879_v37  ;;  %v1455_v20 = vmul.f32 %v1447_v24, %v3475_v19  ;;  %v5183_v37 = vld [vmem:[#allocation40_spill] sm:$0xff]  ;;  %p2945_p8 = scmp.ne.s32.totalorder %s4923_s13, %s2944_s11  ;;  %p2952_p5 = scmp.lt.s32.totalorder %s2950_s27, %s2944_s11 }
 0x173   : > { %v1265_v8 = vsub.f32 %v5180_v50, %v3849_v33  ;;  %v1461_v45 = vmul.f32 %v1453_v3, %v1373_v41  ;;  %v1466_v56 = vadd.f32 %v1459_v51, %v1458_v15  ;;  %v1369_v18 = vsel %vm4041_vm3, %v1366_v57, %v1363_v13  ;;  %v1528_v57 = vld [vmem:[%s3416_s23] sm:$0xff]  ;;  %v1529_v13 = vld [vmem:[%s3416_s23 + $0x8] sm:$0xff]  ;;  %v1530_v51 = vld [vmem:[%s3416_s23 + $0x10] sm:$0xff] }
 0x174   : > { %v1376_v48 = vadd.f32 %v1360_v17, %v5181_v36  ;;  %v1456_v33 = vmul.f32 %v1448_v53, %v5182_v27  ;;  %v1462_v38 = vmul.f32 %v1454_v16, %v1374_v4  ;;  %v1457_v9 = vmul.f32 %v1449_v6, %v5183_v37  ;;  %p2946_p1 = pnand %p2945_p8, %p3176_p9  ;;  %p2953_p6 = por %p2952_p5, %p2951_p4 }
 0x175   : > { %v1467_v60 = vadd.f32 %v1466_v56, %v1460_v55  ;;  %v1377_v49 = vadd.f32 %v1369_v18, %v1265_v8  ;;  %v1463_v19 = vmul.f32 %v1455_v20, %v1375_v59  ;;  %v1496_v61 = vunpack.c.0.s8 %v1492_v25  ;;  %v4110_v8 = vld [vmem:[%s3416_s23 + $0x18] sm:$0xff] }
 0x176   : > { %v1464_v31 = vmul.f32 %v1456_v33, %v1376_v48  ;;  %v1497_v1 = vunpack.c.1.s8 %v1492_v25  ;;  %v1498_v39 = vunpack.c.2.s8 %v1492_v25  ;;  %v1499_v10 = vunpack.c.3.s8 %v1492_v25  ;;  %5195 = vst [vmem:[#allocation50_spill] sm:$0xff] %v4110_v8  ;;  %v4135_v25 = vld [vmem:[%s3398_s3 + $0x10] sm:$0xff]  ;;  %p2947_p3 = pneg %p2946_p1 }
 0x177   : > { %v1468_v63 = vadd.f32 %v1467_v60, %v1461_v45  ;;  %v1465_v35 = vmul.f32 %v1457_v9, %v1377_v49  ;;  %v1500_v26 = vunpack.c.0.s8 %v1493_v62  ;;  %v1501_v21 = vunpack.c.1.s8 %v1493_v62  ;;  %5204 = vst [vmem:[#allocation59_spill] sm:$0xff] %v4135_v25 }
 0x178   : > { %v1502_v2 = vunpack.c.2.s8 %v1493_v62  ;;  %v1503_v44 = vunpack.c.3.s8 %v1493_v62  ;;  %v1504_v30 = vunpack.c.0.s8 %v1494_v58  ;;  %v1505_v29 = vunpack.c.1.s8 %v1494_v58  ;;  %p2954_p7 = pnand %p2953_p6, %p2947_p3 }
 0x179   : > { %v1469_v11 = vadd.f32 %v1468_v63, %v1462_v38  ;;  %v1506_v7 = vunpack.c.2.s8 %v1494_v58  ;;  %v1507_v28 = vunpack.c.3.s8 %v1494_v58  ;;  %v1508_v32 = vunpack.c.0.s8 %v1495_v52 }
 0x17a   : > { %v1509_v23 = vunpack.c.1.s8 %v1495_v52  ;;  %v1510_v5 = vunpack.c.2.s8 %v1495_v52  ;;  %v1511_v54 = vunpack.c.3.s8 %v1495_v52  ;;  %v4074_v14 = vcvt.s32.f32 %v1496_v61 }
 0x17b   : > { %v1470_v0 = vadd.f32 %v1469_v11, %v1463_v19  ;;  %v4076_v46 = vcvt.s32.f32 %v1497_v1  ;;  %v4078_v22 = vcvt.s32.f32 %v1498_v39  ;;  %v4080_v47 = vcvt.s32.f32 %v1499_v10  ;;  %v4146_v1 = vld [vmem:[%s3398_s3 + $0x18] sm:$0xff]  ;;  %v4149_v39 = vld [vmem:[%s3398_s3 + $0x20] sm:$0xff]  ;;  %v4152_v10 = vld [vmem:[%s3398_s3 + $0x28] sm:$0xff] }
 0x17c   : > { %v4082_v34 = vcvt.s32.f32 %v1500_v26  ;;  %v4084_v40 = vcvt.s32.f32 %v1501_v21  ;;  %v4087_v41 = vcvt.s32.f32 %v1502_v2  ;;  %v4089_v24 = vcvt.s32.f32 %v1503_v44  ;;  %5209 = vst [vmem:[#allocation64_spill] sm:$0xff] %v4146_v1  ;;  %5210 = vst [vmem:[#allocation65_spill] sm:$0xff] %v4149_v39 }
 0x17d   : > { %v1471_v42 = vadd.f32 %v1470_v0, %v1464_v31  ;;  %v4091_v3 = vcvt.s32.f32 %v1504_v30  ;;  %v4093_v12 = vcvt.s32.f32 %v1505_v29  ;;  %v4096_v4 = vcvt.s32.f32 %v1506_v7  ;;  %5211 = vst [vmem:[#allocation66_spill] sm:$0xff] %v4152_v10  ;;  %v4163_v30 = vld [vmem:[%s3398_s3 + $0x30] sm:$0xff]  ;;  %v4166_v29 = vld [vmem:[%s3398_s3 + $0x38] sm:$0xff]  ;;  %v4169_v7 = vld [vmem:[%s3398_s3 + $0x40] sm:$0xff] }
 0x17e   : > { %5184 = vst [vmem:[#allocation42_spill] sm:$0xff] %v4084_v40  ;;  %5185 = vst [vmem:[#allocation43_spill] sm:$0xff] %v4087_v41  ;;  %v4098_v53 = vcvt.s32.f32 %v1507_v28  ;;  %v4100_v16 = vcvt.s32.f32 %v1508_v32  ;;  %v4102_v15 = vcvt.s32.f32 %v1509_v23  ;;  %v4105_v55 = vcvt.s32.f32 %v1510_v5 }
 0x17f   : > { %v1472_v43 = vadd.f32 %v1471_v42, %v1465_v35  ;;  %5186 = vst [vmem:[#allocation41_spill] sm:$0xff] %v4089_v24  ;;  %5187 = vst [vmem:[#allocation39_spill] sm:$0xff] %v4091_v3  ;;  %v4107_v50 = vcvt.s32.f32 %v1511_v54  ;;  %v1532_v17 = vunpack.c.0.s8 %v1528_v57  ;;  %v1533_v6 = vunpack.c.1.s8 %v1528_v57  ;;  %v4129_v42 = vld [vmem:[%s3398_s3] sm:$0xff]  ;;  %v4186_v54 = vld [vmem:[%s3398_s3 + $0x48] sm:$0xff] }
 0x180   : > { %5188 = vst [vmem:[#allocation40_spill] sm:$0xff] %v4093_v12  ;;  %5189 = vst [vmem:[#allocation44_spill] sm:$0xff] %v4096_v4  ;;  %v1534_v59 = vunpack.c.2.s8 %v1528_v57  ;;  %v1535_v20 = vunpack.c.3.s8 %v1528_v57  ;;  %v1536_v45 = vunpack.c.0.s8 %v1529_v13  ;;  %v1537_v56 = vunpack.c.1.s8 %v1529_v13  ;;  %v4189_v57 = vld [vmem:[%s3398_s3 + $0x50] sm:$0xff] }
 0x181   : > { %1474 = vst [vmem:[%s3444_s14 + $0x10] sm:$0xff] %v1472_v43  ;;  %5190 = vst [vmem:[#allocation45_spill] sm:$0xff] %v4098_v53  ;;  %v1538_v18 = vunpack.c.2.s8 %v1529_v13  ;;  %v1539_v36 = vunpack.c.3.s8 %v1529_v13  ;;  %v1540_v48 = vunpack.c.0.s8 %v1530_v51  ;;  %v1541_v27 = vunpack.c.1.s8 %v1530_v51  ;;  %v4132_v43 = vld [vmem:[%s3398_s3 + $0x8] sm:$0xff]  ;;  %v4192_v13 = vld [vmem:[%s3398_s3 + $0x58] sm:$0xff] }
 0x182   : > { %5191 = vst [vmem:[#allocation46_spill] sm:$0xff] %v4100_v16  ;;  %5192 = vst [vmem:[#allocation47_spill] sm:$0xff] %v4102_v15  ;;  %v1542_v33 = vunpack.c.2.s8 %v1530_v51  ;;  %v1543_v38 = vunpack.c.3.s8 %v1530_v51  ;;  %v1544_v60 = vunpack.c.0.s8 %v4110_v8  ;;  %v1545_v49 = vunpack.c.1.s8 %v4110_v8 }
 0x183   : > { %5193 = vst [vmem:[#allocation48_spill] sm:$0xff] %v4105_v55  ;;  %5194 = vst [vmem:[#allocation49_spill] sm:$0xff] %v4107_v50  ;;  %v1546_v37 = vunpack.c.2.s8 %v4110_v8  ;;  %v4116_v19 = vcvt.s32.f32 %v1532_v17  ;;  %v4118_v63 = vcvt.s32.f32 %v1533_v6  ;;  %v4120_v31 = vcvt.s32.f32 %v1534_v59 }
 0x184   : > { %v4122_v11 = vcvt.s32.f32 %v1535_v20  ;;  %v4124_v35 = vcvt.s32.f32 %v1536_v45  ;;  %v4126_v0 = vcvt.s32.f32 %v1537_v56  ;;  %5202 = vst [vmem:[#allocation57_spill] sm:$0xff] %v4129_v42  ;;  %5203 = vst [vmem:[#allocation58_spill] sm:$0xff] %v4132_v43  ;;  %v4137_v62 = vcvt.s32.f32 %v1538_v18  ;;  %v4211_v20 = vld [vmem:[%s3398_s3 + $0x60] sm:$0xff]  ;;  %v4214_v45 = vld [vmem:[%s3398_s3 + $0x68] sm:$0xff] }
 0x185   : > { %5196 = vst [vmem:[#allocation51_spill] sm:$0xff] %v4116_v19  ;;  %5197 = vst [vmem:[#allocation52_spill] sm:$0xff] %v4118_v63  ;;  %v4139_v58 = vcvt.s32.f32 %v1539_v36  ;;  %v4141_v52 = vcvt.s32.f32 %v1540_v48  ;;  %v4143_v61 = vcvt.s32.f32 %v1541_v27  ;;  %v4154_v26 = vcvt.s32.f32 %v1542_v33  ;;  %v4217_v56 = vld [vmem:[%s3398_s3 + $0x70] sm:$0xff]  ;;  %v4236_v33 = vld [vmem:[%s3398_s3 + $0x78] sm:$0xff]  ;;  %s4921_s3 = scalar_lea.hbm %s5459_s20, %s2423_s12 }
 0x186   : > { %5198 = vst [vmem:[#allocation53_spill] sm:$0xff] %v4120_v31  ;;  %5199 = vst [vmem:[#allocation54_spill] sm:$0xff] %v4122_v11  ;;  %v4156_v21 = vcvt.s32.f32 %v1543_v38  ;;  %v4158_v2 = vcvt.s32.f32 %v1544_v60  ;;  %v4160_v44 = vcvt.s32.f32 %v1545_v49  ;;  %v4171_v28 = vcvt.s32.f32 %v1546_v37 }
 0x187   : > { %5200 = vst [vmem:[#allocation55_spill] sm:$0xff] %v4124_v35  ;;  %5201 = vst [vmem:[#allocation56_spill] sm:$0xff] %v4126_v0  ;;  %v4175_v32 = vmul.f32 %v4074_v14, %v4129_v42  ;;  %v4179_v23 = vmul.f32 %v4076_v46, %v4132_v43  ;;  %v4183_v5 = vmul.f32 %v4078_v22, %v4135_v25  ;;  %v1631_v8 = vand.u32 2147483647, %v4146_v1 }
 0x188   : > { %5205 = vst [vmem:[#allocation60_spill] sm:$0xff] %v4137_v62  ;;  %5206 = vst [vmem:[#allocation61_spill] sm:$0xff] %v4139_v58  ;;  %v4196_v51 = vmul.f32 %v4080_v47, %v4146_v1  ;;  %v4200_v17 = vmul.f32 %v4082_v34, %v4149_v39  ;;  %v4204_v6 = vmul.f32 %v4084_v40, %v4152_v10  ;;  %v1630_v58 = vand.u32 2147483647, %v4135_v25 }
 0x189   : > { %5207 = vst [vmem:[#allocation62_spill] sm:$0xff] %v4141_v52  ;;  %5208 = vst [vmem:[#allocation63_spill] sm:$0xff] %v4143_v61  ;;  %v4208_v59 = vmul.f32 %v4087_v41, %v4163_v30  ;;  %v4221_v18 = vmul.f32 %v4089_v24, %v4166_v29  ;;  %v4225_v36 = vmul.f32 %v4091_v3, %v4169_v7  ;;  %v1597_v62 = vmax.f32 %v4132_v43, 0.0 }
 0x18a   : > { %5212 = vst [vmem:[#allocation67_spill] sm:$0xff] %v4154_v26  ;;  %5213 = vst [vmem:[#allocation68_spill] sm:$0xff] %v4156_v21  ;;  %v4229_v48 = vmul.f32 %v4093_v12, %v4186_v54  ;;  %v4233_v27 = vmul.f32 %v4096_v4, %v4189_v57  ;;  %v4240_v38 = vmul.f32 %v4098_v53, %v4192_v13  ;;  %v1629_v21 = vand.u32 2147483647, %v4132_v43 }
 0x18b   : > { %5214 = vst [vmem:[#allocation69_spill] sm:$0xff] %v4158_v2  ;;  %5215 = vst [vmem:[#allocation70_spill] sm:$0xff] %v4160_v44  ;;  %v4244_v60 = vmul.f32 %v4100_v16, %v4211_v20  ;;  %v4248_v49 = vmul.f32 %v4102_v15, %v4214_v45  ;;  %v4252_v37 = vmul.f32 %v4105_v55, %v4217_v56  ;;  %v1598_v44 = vmax.f32 %v4135_v25, 0.0 }
 0x18c   : > { %5216 = vst [vmem:[#allocation71_spill] sm:$0xff] %v4166_v29  ;;  %5217 = vst [vmem:[#allocation72_spill] sm:$0xff] %v4169_v7  ;;  %v4256_v9 = vmul.f32 %v4107_v50, %v4236_v33  ;;  %v1599_v2 = vmax.f32 %v4146_v1, 0.0  ;;  %v1600_v0 = vmax.f32 %v4149_v39, 0.0  ;;  %v1632_v26 = vand.u32 2147483647, %v4149_v39 }
 0x18d   : > { %5218 = vst [vmem:[#allocation73_spill] sm:$0xff] %v4171_v28  ;;  %5219 = vst [vmem:[#allocation74_spill] sm:$0xff] %v4186_v54  ;;  %v1628_v28 = vand.u32 2147483647, %v4129_v42  ;;  %v1601_v61 = vmax.f32 %v4152_v10, 0.0  ;;  %v1602_v52 = vmax.f32 %v4163_v30, 0.0  ;;  %v4302_v12 = vsub.f32 %v1597_v62, %v4179_v23 }
 0x18e   : > { %5220 = vst [vmem:[#allocation75_spill] sm:$0xff] %v4189_v57  ;;  %5221 = vst [vmem:[#allocation76_spill] sm:$0xff] %v4192_v13  ;;  %v1603_v11 = vmax.f32 %v4166_v29, 0.0  ;;  %v1645_v31 = vsub.f32 0.0, %v1629_v21  ;;  %v1604_v63 = vmax.f32 %v4169_v7, 0.0  ;;  %v1605_v19 = vmax.f32 %v4186_v54, 0.0 }
 0x18f   : > { %5222 = vst [vmem:[#allocation77_spill] sm:$0xff] %v4196_v51  ;;  %5223 = vst [vmem:[#allocation78_spill] sm:$0xff] %v4200_v17  ;;  %v1644_v35 = vsub.f32 0.0, %v1628_v28  ;;  %v1633_v25 = vand.u32 2147483647, %v4152_v10  ;;  %v1646_v43 = vsub.f32 0.0, %v1630_v58  ;;  %v4305_v24 = vsub.f32 %v1598_v44, %v4183_v5 }
 0x190   : > { %5224 = vst [vmem:[#allocation79_spill] sm:$0xff] %v4204_v6  ;;  %5225 = vst [vmem:[#allocation80_spill] sm:$0xff] %v4208_v59  ;;  %v1606_v1 = vmax.f32 %v4189_v57, 0.0  ;;  %v1608_v28 = vmax.f32 %v4211_v20, 0.0  ;;  %v1647_v39 = vsub.f32 0.0, %v1631_v8  ;;  %v1609_v50 = vmax.f32 %v4214_v45, 0.0 }
 0x191   : > { %5226 = vst [vmem:[#allocation81_spill] sm:$0xff] %v4211_v20  ;;  %5227 = vst [vmem:[#allocation82_spill] sm:$0xff] %v4214_v45  ;;  %v1634_v55 = vand.u32 2147483647, %v4163_v30  ;;  %v1648_v15 = vsub.f32 0.0, %v1632_v26  ;;  %v1610_v16 = vmax.f32 %v4217_v56, 0.0 }
 0x192   : > { %5228 = vst [vmem:[#allocation83_spill] sm:$0xff] %v4217_v56  ;;  %5229 = vst [vmem:[#allocation84_spill] sm:$0xff] %v4221_v18  ;;  %v1660_v21 = vmul.f32 1.442695, %v1644_v35  ;;  %v1635_v10 = vand.u32 2147483647, %v4166_v29  ;;  %v4308_v35 = vsub.f32 %v1599_v2, %v4196_v51  ;;  %v4312_v29 = vsub.f32 %v1600_v0, %v4200_v17 }
 0x193   : > { %5230 = vst [vmem:[#allocation85_spill] sm:$0xff] %v4225_v36  ;;  %5231 = vst [vmem:[#allocation86_spill] sm:$0xff] %v4229_v48  ;;  %v1662_v58 = vmul.f32 1.442695, %v1645_v31  ;;  %v1649_v8 = vsub.f32 0.0, %v1633_v25  ;;  %v1650_v31 = vsub.f32 0.0, %v1634_v55 }
 0x194   : > { %5232 = vst [vmem:[#allocation87_spill] sm:$0xff] %v4233_v27  ;;  %5233 = vst [vmem:[#allocation88_spill] sm:$0xff] %v4236_v33  ;;  %v1664_v3 = vmul.f32 1.442695, %v1646_v43  ;;  %v1636_v26 = vand.u32 2147483647, %v4169_v7  ;;  %2600 = vpow2.f32 %v1660_v21  ;;  %v4325_v21 = vsub.f32 %v1602_v52, %v4208_v59 }
 0x195   : > { %5234 = vst [vmem:[#allocation89_spill] sm:$0xff] %v4240_v38  ;;  %5235 = vst [vmem:[#allocation90_spill] sm:$0xff] %v4244_v60  ;;  %v1666_v53 = vmul.f32 1.442695, %v1647_v39  ;;  %v1637_v62 = vand.u32 2147483647, %v4186_v54  ;;  %2602 = vpow2.f32 %v1662_v58  ;;  %v4328_v58 = vsub.f32 %v1603_v11, %v4221_v18 }
 0x196   : > { %5236 = vst [vmem:[#allocation91_spill] sm:$0xff] %v4248_v49  ;;  %5237 = vst [vmem:[#allocation92_spill] sm:$0xff] %v4252_v37  ;;  %v1638_v25 = vand.u32 2147483647, %v4189_v57  ;;  %v1651_v43 = vsub.f32 0.0, %v1635_v10  ;;  %2604 = vpow2.f32 %v1664_v3  ;;  %v1652_v17 = vsub.f32 0.0, %v1636_v26 }
 0x197   : > { %5238 = vst [vmem:[#allocation93_spill] sm:$0xff] %v4256_v9  ;;  %v1596_v9 = vmax.f32 %v4129_v42, 0.0  ;;  %v1607_v42 = vmax.f32 %v4192_v13, 0.0  ;;  %v1639_v44 = vand.u32 2147483647, %v4192_v13  ;;  %2606 = vpow2.f32 %v1666_v53 }
 0x198   : > { %v1640_v2 = vand.u32 2147483647, %v4211_v20  ;;  %v1670_v51 = vmul.f32 1.442695, %v1649_v8  ;;  %v1641_v39 = vand.u32 2147483647, %v4214_v45  ;;  %v4331_v3 = vsub.f32 %v1604_v63, %v4225_v36 }
 0x199   : > { %v4299_v4 = vsub.f32 %v1596_v9, %v4175_v32  ;;  %v1668_v9 = vmul.f32 1.442695, %v1648_v15  ;;  %v1642_v0 = vand.u32 2147483647, %v4217_v56  ;;  %v4321_v15 = vsub.f32 %v1601_v61, %v4204_v6 }
 0x19a   : > { %v1643_v55 = vand.u32 2147483647, %v4236_v33  ;;  %v1672_v10 = vmul.f32 1.442695, %v1650_v31  ;;  %v1674_v8 = vmul.f32 1.442695, %v1651_v43  ;;  %v4334_v31 = vsub.f32 %v1605_v19, %v4229_v48 }
 0x19b   : > { %2608 = vpow2.f32 %v1668_v9  ;;  %v1653_v56 = vsub.f32 0.0, %v1637_v62  ;;  %v1654_v26 = vsub.f32 0.0, %v1638_v25  ;;  %v1655_v53 = vsub.f32 0.0, %v1639_v44 }
 0x19c   : > { %2610 = vpow2.f32 %v1670_v51  ;;  %v1656_v61 = vsub.f32 0.0, %v1640_v2  ;;  %v1657_v45 = vsub.f32 0.0, %v1641_v39  ;;  %v1658_v20 = vsub.f32 0.0, %v1642_v0  ;;  %v5251_v0 = vld [vmem:[#allocation41_spill] sm:$0xff] }
 0x19d   : > { %v1676_v33 = vmul.f32 1.442695, %v1652_v17  ;;  %v4337_v52 = vsub.f32 %v1606_v1, %v4233_v27  ;;  %v1659_v11 = vsub.f32 0.0, %v1643_v55  ;;  %2612 = vpow2.f32 %v1672_v10  ;;  %v5253_v10 = vld [vmem:[#allocation39_spill] sm:$0xff]  ;;  %v5265_v27 = vld [vmem:[#allocation48_spill] sm:$0xff] }
 0x19e   : > { %v4340_v63 = vsub.f32 %v1607_v42, %v4240_v38  ;;  %v4343_v9 = vsub.f32 %v1608_v28, %v4244_v60  ;;  %v4346_v51 = vsub.f32 %v1609_v50, %v4248_v49  ;;  %2614 = vpow2.f32 %v1674_v8 }
 0x19f   : > { %5239 = vst [vmem:[#allocation94_spill] sm:$0xff] %v4337_v52  ;;  %v4349_v17 = vsub.f32 %v1610_v16, %v4252_v37  ;;  %v1678_v19 = vmul.f32 1.442695, %v1653_v56  ;;  %v1680_v62 = vmul.f32 1.442695, %v1654_v26  ;;  %2616 = vpow2.f32 %v1676_v33  ;;  %v5255_v26 = vld [vmem:[#allocation40_spill] sm:$0xff] }
 0x1a0   : > { %5240 = vst [vmem:[#allocation95_spill] sm:$0xff] %v4340_v63  ;;  %5241 = vst [vmem:[#allocation96_spill] sm:$0xff] %v4343_v9  ;;  %v1682_v25 = vmul.f32 1.442695, %v1655_v53  ;;  %v1684_v1 = vmul.f32 1.442695, %v1656_v61 }
 0x1a1   : > { %5242 = vst [vmem:[#allocation97_spill] sm:$0xff] %v4346_v51  ;;  %5243 = vst [vmem:[#allocation98_spill] sm:$0xff] %v4349_v17  ;;  %v1686_v43 = vmul.f32 1.442695, %v1657_v45  ;;  %v1688_v44 = vmul.f32 1.442695, %v1658_v20  ;;  %v4362_v16 = vpop.eup %2600  ;;  %2618 = vpow2.f32 %v1678_v19 }
 0x1a2   : > { %v4351_v2 = vmul.f32 1.442695, %v1659_v11  ;;  %v4354_v42 = vmul.f32 0.25, %v4074_v14  ;;  %v4357_v28 = vmul.f32 0.25, %v4076_v46  ;;  %v4360_v50 = vmul.f32 0.25, %v4078_v22  ;;  %v4376_v39 = vpop.eup %2602  ;;  %v5257_v11 = vld [vmem:[#allocation44_spill] sm:$0xff] }
 0x1a3   : > { %v4365_v56 = vmul.f32 0.25, %v4080_v47  ;;  %v4368_v33 = vmul.f32 0.25, %v4082_v34  ;;  %v4371_v20 = vmul.f32 0.25, %v4084_v40  ;;  %v4374_v45 = vmul.f32 0.25, %v4087_v41  ;;  %v4387_v61 = vpop.eup %2604  ;;  %v5259_v51 = vld [vmem:[#allocation45_spill] sm:$0xff]  ;;  %v5261_v63 = vld [vmem:[#allocation46_spill] sm:$0xff] }
 0x1a4   : > { %5244 = vst [vmem:[#allocation99_spill] sm:$0xff] %v4354_v42  ;;  %5245 = vst [vmem:[#allocation100_spill] sm:$0xff] %v4357_v28  ;;  %v4379_v55 = vmul.f32 0.25, %v5251_v0  ;;  %v4382_v8 = vmul.f32 0.25, %v5253_v10  ;;  %v4385_v53 = vmul.f32 0.25, %v5255_v26  ;;  %v4390_v17 = vmul.f32 0.25, %v5257_v11  ;;  %v4401_v60 = vpop.eup %2606 }
 0x1a5   : > { %5246 = vst [vmem:[#allocation101_spill] sm:$0xff] %v4360_v50  ;;  %5247 = vst [vmem:[#allocation102_spill] sm:$0xff] %v4365_v56  ;;  %v4393_v9 = vmul.f32 0.25, %v5259_v51  ;;  %v4396_v37 = vmul.f32 0.25, %v5261_v63  ;;  %v5263_v19 = vld [vmem:[#allocation47_spill] sm:$0xff]  ;;  %2620 = vpow2.f32 %v1680_v62  ;;  %v1692_v38 = vadd.f32 1.0, %v4362_v16 }
 0x1a6   : > { %5248 = vst [vmem:[#allocation103_spill] sm:$0xff] %v4368_v33  ;;  %5249 = vst [vmem:[#allocation104_spill] sm:$0xff] %v4371_v20  ;;  %v4399_v49 = vmul.f32 0.25, %v5263_v19  ;;  %v4405_v48 = vmul.f32 0.25, %v5265_v27  ;;  %2622 = vpow2.f32 %v1682_v25  ;;  %v1710_v18 = vadd.f32 1.0, %v4387_v61 }
 0x1a7   : > { %5250 = vst [vmem:[#allocation105_spill] sm:$0xff] %v4374_v45  ;;  %5252 = vst [vmem:[#allocation106_spill] sm:$0xff] %v4379_v55  ;;  %2624 = vpow2.f32 %v1684_v1  ;;  %v5277_v45 = vsub.f32 1.0, %v4082_v34  ;;  %v5279_v1 = vsub.f32 1.0, %v4084_v40  ;;  %v5281_v57 = vsub.f32 1.0, %v4087_v41 }
 0x1a8   : > { %5254 = vst [vmem:[#allocation107_spill] sm:$0xff] %v4382_v8  ;;  %5256 = vst [vmem:[#allocation108_spill] sm:$0xff] %v4385_v53  ;;  %v5267_v53 = vld [vmem:[#allocation49_spill] sm:$0xff]  ;;  %2626 = vpow2.f32 %v1686_v43  ;;  %v5283_v20 = vsub.f32 1.0, %v5251_v0 }
 0x1a9   : > { %5258 = vst [vmem:[#allocation109_spill] sm:$0xff] %v4390_v17  ;;  %5260 = vst [vmem:[#allocation110_spill] sm:$0xff] %v4393_v9  ;;  %v4408_v36 = vmul.f32 0.25, %v5267_v53  ;;  %v4410_v17 = vpop.eup %2608  ;;  %v1701_v9 = vadd.f32 1.0, %v4376_v39  ;;  %v4439_v59 = vmul.f32 0.75, %v5279_v1  ;;  %2628 = vlog2.f32 %v1692_v38 }
 0x1aa   : > { %5262 = vst [vmem:[#allocation111_spill] sm:$0xff] %v4396_v37  ;;  %5264 = vst [vmem:[#allocation112_spill] sm:$0xff] %v4399_v49  ;;  %v5269_v37 = vsub.f32 1.0, %v4074_v14  ;;  %v5271_v49 = vsub.f32 1.0, %v4076_v46  ;;  %v4430_v55 = vpop.eup %2610  ;;  %v4448_v43 = vmul.f32 0.75, %v5283_v20  ;;  %v5287_v38 = vsub.f32 1.0, %v5255_v26 }
 0x1ab   : > { %5266 = vst [vmem:[#allocation113_spill] sm:$0xff] %v4405_v48  ;;  %5268 = vst [vmem:[#allocation114_spill] sm:$0xff] %v4408_v36  ;;  %v5273_v48 = vsub.f32 1.0, %v4078_v22  ;;  %v5275_v36 = vsub.f32 1.0, %v4080_v47  ;;  %v4450_v33 = vpop.eup %2612  ;;  %2630 = vlog2.f32 %v1701_v9  ;;  %v1737_v20 = vadd.f32 1.0, %v4430_v55 }
 0x1ac   : > { %v4415_v8 = vmul.f32 0.75, %v5269_v37  ;;  %v4419_v62 = vmul.f32 0.75, %v5271_v49  ;;  %v1719_v37 = vadd.f32 1.0, %v4401_v60  ;;  %v4435_v49 = vmul.f32 0.75, %v5277_v45  ;;  %5280 = vst [vmem:[#allocation120_spill] sm:$0xff] %v4439_v59  ;;  %5284 = vst [vmem:[#allocation122_spill] sm:$0xff] %v4448_v43  ;;  %v4461_v6 = vpop.eup %2614 }
 0x1ad   : > { %v4424_v13 = vmul.f32 0.75, %v5273_v48  ;;  %v4428_v25 = vmul.f32 0.75, %v5275_v36  ;;  %v1728_v48 = vadd.f32 1.0, %v4410_v17  ;;  %v4444_v36 = vmul.f32 0.75, %v5281_v57 }
 0x1ae   : > { %5270 = vst [vmem:[#allocation115_spill] sm:$0xff] %v4415_v8  ;;  %5272 = vst [vmem:[#allocation116_spill] sm:$0xff] %v4419_v62  ;;  %v1695_v45 = vmul.f32 -0.5, %v4362_v16  ;;  %v4459_v59 = vmul.f32 0.75, %v5287_v38  ;;  %v1704_v57 = vmul.f32 -0.5, %v4376_v39  ;;  %2632 = vlog2.f32 %v1710_v18  ;;  %v4481_v18 = vpop.eup %2616 }
 0x1af   : > { %5274 = vst [vmem:[#allocation117_spill] sm:$0xff] %v4424_v13  ;;  %5276 = vst [vmem:[#allocation118_spill] sm:$0xff] %v4428_v25  ;;  %v5289_v43 = vsub.f32 1.0, %v5257_v11  ;;  %2634 = vlog2.f32 %v1719_v37  ;;  %v5291_v9 = vsub.f32 1.0, %v5259_v51  ;;  %v5297_v37 = vsub.f32 1.0, %v5265_v27 }
 0x1b0   : > { %5278 = vst [vmem:[#allocation119_spill] sm:$0xff] %v4435_v49  ;;  %5282 = vst [vmem:[#allocation121_spill] sm:$0xff] %v4444_v36  ;;  %v5285_v49 = vsub.f32 1.0, %v5253_v10  ;;  %v1713_v10 = vmul.f32 -0.5, %v4387_v61  ;;  %2636 = vlog2.f32 %v1728_v48  ;;  %v1716_v48 = vand.u32 2147483647, %v4387_v61 }
 0x1b1   : > { %5288 = vst [vmem:[#allocation124_spill] sm:$0xff] %v4459_v59  ;;  %v4467_v36 = vmul.f32 0.75, %v5289_v43  ;;  %v5295_v59 = vsub.f32 1.0, %v5263_v19  ;;  %v1746_v43 = vadd.f32 1.0, %v4450_v33  ;;  %2638 = vpow2.f32 %v1688_v44  ;;  %v4493_v19 = vpop.eup %2618 }
 0x1b2   : > { %v4455_v1 = vmul.f32 0.75, %v5285_v49  ;;  %v4471_v49 = vmul.f32 0.75, %v5291_v9  ;;  %v1696_v9 = vadd.f32 1.0, %v1695_v45  ;;  %2640 = vlog2.f32 %v1737_v20  ;;  %v4501_v27 = vpop.eup %2620 }
 0x1b3   : > { %5290 = vst [vmem:[#allocation125_spill] sm:$0xff] %v4467_v36  ;;  %v4479_v26 = vmul.f32 0.75, %v5295_v59  ;;  %v4487_v36 = vmul.f32 0.75, %v5297_v37  ;;  %v1707_v59 = vand.u32 2147483647, %v4376_v39  ;;  %2642 = vpow2.f32 %v4351_v2  ;;  %v4511_v51 = vpop.eup %2622 }
 0x1b4   : > { %5286 = vst [vmem:[#allocation123_spill] sm:$0xff] %v4455_v1  ;;  %5292 = vst [vmem:[#allocation126_spill] sm:$0xff] %v4471_v49  ;;  %v5293_v1 = vsub.f32 1.0, %v5261_v63  ;;  %v1705_v49 = vadd.f32 1.0, %v1704_v57  ;;  %v1731_v37 = vmul.f32 -0.5, %v4410_v17  ;;  %v1764_v44 = vadd.f32 1.0, %v4481_v18 }
 0x1b5   : > { %5296 = vst [vmem:[#allocation128_spill] sm:$0xff] %v4479_v26  ;;  %5298 = vst [vmem:[#allocation129_spill] sm:$0xff] %v4487_v36  ;;  %v1722_v26 = vmul.f32 -0.5, %v4401_v60  ;;  %v1714_v45 = vadd.f32 1.0, %v1713_v10  ;;  %v1725_v36 = vand.u32 2147483647, %v4401_v60  ;;  %2644 = vlog2.f32 %v1746_v43 }
 0x1b6   : > { %v4475_v38 = vmul.f32 0.75, %v5293_v1  ;;  %v1698_v1 = vand.u32 2147483647, %v4362_v16  ;;  %v1740_v57 = vmul.f32 -0.5, %v4430_v55  ;;  %v4504_v20 = vmul.f32 %v4362_v16, %v1696_v9 }
 0x1b7   : > { %v1749_v2 = vmul.f32 -0.5, %v4450_v33  ;;  %v4514_v10 = vmul.f32 %v4376_v39, %v1705_v49  ;;  %vm4516_vm5 = vcmp.lt.f32.partialorder %v1707_v59, 0.0004427343  ;;  %v1723_v43 = vadd.f32 1.0, %v1722_v26 }
 0x1b8   : > { %5294 = vst [vmem:[#allocation127_spill] sm:$0xff] %v4475_v38  ;;  %v1755_v38 = vadd.f32 1.0, %v4461_v6  ;;  %vm4506_vm4 = vcmp.lt.f32.partialorder %v1698_v1, 0.0004427343  ;;  %v1734_v16 = vand.u32 2147483647, %v4410_v17  ;;  %v4522_v1 = vpop.eup %2624  ;;  %v4529_v39 = vmul.f32 %v4387_v61, %v1714_v45 }
 0x1b9   : > { %v1773_v9 = vadd.f32 1.0, %v4493_v19  ;;  %v1732_v0 = vadd.f32 1.0, %v1731_v37  ;;  %v1743_v54 = vand.u32 2147483647, %v4430_v55  ;;  %v4526_v25 = vpop.eup %2626  ;;  %vm4531_vm6 = vcmp.lt.f32.partialorder %v1716_v48, 0.0004427343 }
 0x1ba   : > { %2646 = vlog2.f32 %v1755_v38  ;;  %v1758_v38 = vmul.f32 -0.5, %v4461_v6  ;;  %vm4535_vm7 = vcmp.lt.f32.partialorder %v1725_v36, 0.0004427343  ;;  %v1741_v59 = vadd.f32 1.0, %v1740_v57  ;;  %v2629_v56 = vpop.eup %2628 }
 0x1bb   : > { %2648 = vlog2.f32 %v1764_v44  ;;  %v1767_v37 = vmul.f32 -0.5, %v4481_v18  ;;  %v1750_v13 = vadd.f32 1.0, %v1749_v2  ;;  %v1752_v44 = vand.u32 2147483647, %v4450_v33  ;;  %v2631_v45 = vpop.eup %2630 }
 0x1bc   : > { %v1776_v50 = vmul.f32 -0.5, %v4493_v19  ;;  %v1782_v61 = vadd.f32 1.0, %v4501_v27  ;;  %v4544_v48 = vmul.f32 %v4401_v60, %v1723_v43  ;;  %vm4546_vm8 = vcmp.lt.f32.partialorder %v1734_v16, 0.0004427343  ;;  %v2633_v41 = vpop.eup %2632 }
 0x1bd   : > { %v1761_v57 = vand.u32 2147483647, %v4461_v6  ;;  %2650 = vlog2.f32 %v1773_v9  ;;  %v4552_v2 = vmul.f32 %v4410_v17, %v1732_v0  ;;  %vm4554_vm9 = vcmp.lt.f32.partialorder %v1743_v54, 0.0004427343  ;;  %v2635_v60 = vpop.eup %2634 }
 0x1be   : > { %v1759_v62 = vadd.f32 1.0, %v1758_v38  ;;  %v1785_v28 = vmul.f32 -0.5, %v4501_v27  ;;  %v4559_v43 = vmul.f32 0.6931472, %v2629_v56  ;;  %v4562_v16 = vmul.f32 %v4430_v55, %v1741_v59  ;;  %v2637_v42 = vpop.eup %2636 }
 0x1bf   : > { %v1768_v8 = vadd.f32 1.0, %v1767_v37  ;;  %v1770_v9 = vand.u32 2147483647, %v4481_v18  ;;  %v4565_v52 = vmul.f32 0.6931472, %v2631_v45  ;;  %v4568_v54 = vmul.f32 %v4450_v33, %v1750_v13  ;;  %v4574_v56 = vpop.eup %2638 }
 0x1c0   : > { %vm4570_vm10 = vcmp.lt.f32.partialorder %v1752_v44, 0.0004427343  ;;  %v1777_v0 = vadd.f32 1.0, %v1776_v50  ;;  %2652 = vlog2.f32 %v1782_v61  ;;  %vm4576_vm11 = vcmp.lt.f32.partialorder %v1761_v57, 0.0004427343  ;;  %v2641_v13 = vpop.eup %2640 }
 0x1c1   : > { %v1779_v38 = vand.u32 2147483647, %v4493_v19  ;;  %v1791_v59 = vadd.f32 1.0, %v4511_v51  ;;  %v1794_v37 = vmul.f32 -0.5, %v4511_v51  ;;  %v4583_v33 = vmul.f32 0.6931472, %v2633_v41  ;;  %v4590_v45 = vpop.eup %2642 }
 0x1c2   : > { %v4585_v44 = vmul.f32 0.6931472, %v2635_v60  ;;  %v4588_v50 = vmul.f32 %v4461_v6, %v1759_v62  ;;  %v1786_v61 = vadd.f32 1.0, %v1785_v28  ;;  %5315 = vst [vmem:[#allocation130_spill] sm:$0xff] %v4590_v45  ;;  %v1700_v57 = vsel %vm4506_vm4, %v4504_v20, %v4559_v43  ;;  %v2645_v62 = vpop.eup %2644 }
 0x1c3   : > { %v4596_v40 = vmul.f32 0.6931472, %v2637_v42  ;;  %v4599_v53 = vmul.f32 %v4481_v18, %v1768_v8  ;;  %vm4601_vm12 = vcmp.lt.f32.partialorder %v1770_v9, 0.0004427343  ;;  %v1800_v6 = vadd.f32 1.0, %v4522_v1 }
 0x1c4   : > { %v1709_v28 = vsel %vm4516_vm5, %v4514_v10, %v4565_v52  ;;  %v4611_v63 = vmul.f32 %v4493_v19, %v1777_v0  ;;  %v1788_v42 = vand.u32 2147483647, %v4501_v27  ;;  %v1803_v8 = vmul.f32 -0.5, %v4522_v1  ;;  %v5338_v19 = vld [vmem:[#allocation49_spill] sm:$0xff] }
 0x1c5   : > { %v4615_v20 = vmul.f32 0.6931472, %v2641_v13  ;;  %2654 = vlog2.f32 %v1791_v59  ;;  %v1795_v60 = vadd.f32 1.0, %v1794_v37  ;;  %v1812_v43 = vmul.f32 -0.5, %v4526_v25 }
 0x1c6   : > { %v1718_v11 = vsel %vm4531_vm6, %v4529_v39, %v4583_v33  ;;  %v1727_v52 = vsel %vm4535_vm7, %v4544_v48, %v4585_v44  ;;  %vm4626_vm13 = vcmp.lt.f32.partialorder %v1779_v38, 0.0004427343  ;;  %v4631_v10 = vmul.f32 %v4501_v27, %v1786_v61 }
 0x1c7   : > { %v2647_v18 = vpop.eup %2646  ;;  %v1797_v9 = vand.u32 2147483647, %v4511_v51  ;;  %v1736_v39 = vsel %vm4546_vm8, %v4552_v2, %v4596_v40  ;;  %v1748_v49 = vmul.f32 0.6931472, %v2645_v62  ;;  %2656 = vlog2.f32 %v1800_v6  ;;  %v5322_v62 = vld [vmem:[#allocation57_spill] sm:$0xff] }
 0x1c8   : > { %v2649_v0 = vpop.eup %2648  ;;  %v1821_v26 = vmul.f32 -0.5, %v4574_v56  ;;  %v1757_v48 = vmul.f32 0.6931472, %v2647_v18  ;;  %v1804_v38 = vadd.f32 1.0, %v1803_v8  ;;  %v1809_v37 = vadd.f32 1.0, %v4526_v25 }
 0x1c9   : > { %v1745_v27 = vsel %vm4554_vm9, %v4562_v16, %v4615_v20  ;;  %vm4645_vm14 = vcmp.lt.f32.partialorder %v1788_v42, 0.0004427343  ;;  %v4650_v40 = vmul.f32 %v4511_v51, %v1795_v60  ;;  %v1813_v36 = vadd.f32 1.0, %v1812_v43  ;;  %v5323_v51 = vld [vmem:[#allocation58_spill] sm:$0xff]  ;;  %v5324_v43 = vld [vmem:[#allocation59_spill] sm:$0xff] }
 0x1ca   : > { %v1818_v2 = vadd.f32 1.0, %v4574_v56  ;;  %v2651_v33 = vpop.eup %2650  ;;  %v1766_v44 = vmul.f32 0.6931472, %v2649_v0  ;;  %v1827_v6 = vadd.f32 1.0, %v4590_v45  ;;  %v1900_v8 = vsub.f32 1.0, %v5322_v62 }
 0x1cb   : > { %v1754_v7 = vsel %vm4570_vm10, %v4568_v54, %v1748_v49  ;;  %v1822_v16 = vadd.f32 1.0, %v1821_v26  ;;  %v1830_v42 = vmul.f32 -0.5, %v4590_v45  ;;  %v1901_v18 = vsub.f32 1.0, %v5323_v51  ;;  %v5374_v54 = vld [vmem:[#allocation122_spill] sm:$0xff]  ;;  %v5382_v45 = vld [vmem:[#allocation44_spill] sm:$0xff] }
 0x1cc   : > { %v1763_v20 = vsel %vm4576_vm11, %v4588_v50, %v1757_v48  ;;  %v4665_v60 = vmul.f32 %v4522_v1, %v1804_v38  ;;  %2658 = vlog2.f32 %v1809_v37  ;;  %v1902_v0 = vsub.f32 1.0, %v5324_v43  ;;  %v5327_v50 = vld [vmem:[#allocation64_spill] sm:$0xff] }
 0x1cd   : > { %v2653_v62 = vpop.eup %2652  ;;  %v1775_v61 = vmul.f32 0.6931472, %v2651_v33  ;;  %v4669_v17 = vmul.f32 %v4526_v25, %v1813_v36  ;;  %2660 = vlog2.f32 %v1818_v2  ;;  %v1772_v49 = vsel %vm4601_vm12, %v4599_v53, %v1766_v44  ;;  %v5332_v44 = vld [vmem:[#allocation65_spill] sm:$0xff] }
 0x1ce   : > { %vm4675_vm15 = vcmp.lt.f32.partialorder %v1797_v9, 0.0004427343  ;;  %2662 = vlog2.f32 %v1827_v6  ;;  %v1903_v26 = vsub.f32 1.0, %v5327_v50  ;;  %v5328_v48 = vsub.f32 1.0, %v4074_v14 }
 0x1cf   : > { %v4683_v37 = vmul.f32 %v4574_v56, %v1822_v16  ;;  %v4685_v36 = vadd.f32 1.0, %v1830_v42  ;;  %v5331_v41 = vsub.f32 1.0, %v4076_v46  ;;  %v1784_v9 = vmul.f32 0.6931472, %v2653_v62  ;;  %v5344_v62 = vld [vmem:[#allocation94_spill] sm:$0xff] }
 0x1d0   : > { %v1916_v38 = vmul.f32 %v1900_v8, %v5328_v48  ;;  %v4691_v33 = vadd.f32 %v1700_v57, %v4299_v4  ;;  %v1904_v6 = vsub.f32 1.0, %v5332_v44  ;;  %v5333_v51 = vsub.f32 1.0, %v4078_v22  ;;  %v5349_v48 = vld [vmem:[#allocation116_spill] sm:$0xff]  ;;  %v5351_v44 = vld [vmem:[#allocation43_spill] sm:$0xff] }
 0x1d1   : > { %5329 = vst [vmem:[#allocation57_spill] sm:$0xff] %v4683_v37  ;;  %5330 = vst [vmem:[#allocation58_spill] sm:$0xff] %v4685_v36  ;;  %v1917_v53 = vmul.f32 %v1901_v18, %v5331_v41  ;;  %v1781_v8 = vsel %vm4626_vm13, %v4611_v63, %v1775_v61  ;;  %v4700_v16 = vadd.f32 %v1709_v28, %v4302_v12  ;;  %v5334_v18 = vld [vmem:[#allocation66_spill] sm:$0xff]  ;;  %v5335_v43 = vsub.f32 1.0, %v4080_v47  ;;  %v5376_v37 = vld [vmem:[#allocation40_spill] sm:$0xff] }
 0x1d2   : > { %v1918_v14 = vmul.f32 %v1902_v0, %v5333_v51  ;;  %v4703_v42 = vadd.f32 %v1718_v11, %v4305_v24  ;;  %v4706_v46 = vadd.f32 %v1727_v52, %v4308_v35  ;;  %v2655_v4 = vpop.eup %2654  ;;  %v4709_v57 = vadd.f32 %v1736_v39, %v4312_v29 }
 0x1d3   : > { %v1905_v22 = vsub.f32 1.0, %v5334_v18  ;;  %v1919_v0 = vmul.f32 %v1903_v26, %v5335_v43  ;;  %v1932_v63 = vadd.f32 %v1916_v38, %v4175_v32  ;;  %v4716_v12 = vadd.f32 %v1745_v27, %v4321_v15  ;;  %v5354_v43 = vld [vmem:[#allocation101_spill] sm:$0xff] }
 0x1d4   : > { %v4719_v24 = vadd.f32 %v1754_v7, %v4325_v21  ;;  %v4722_v35 = vadd.f32 %v1763_v20, %v4328_v58  ;;  %v1933_v28 = vadd.f32 %v1917_v53, %v4179_v23  ;;  %v4725_v29 = vpop.eup %2656  ;;  %v1790_v47 = vsel %vm4645_vm14, %v4631_v10, %v1784_v9  ;;  %v5340_v10 = vld [vmem:[#allocation71_spill] sm:$0xff]  ;;  %v5343_v7 = vld [vmem:[#allocation77_spill] sm:$0xff]  ;;  %v5350_v53 = vld [vmem:[#allocation72_spill] sm:$0xff] }
 0x1d5   : > { %v1906_v11 = vsub.f32 1.0, %v4163_v30  ;;  %v5336_v32 = vsub.f32 1.0, %v4082_v34  ;;  %v1934_v52 = vadd.f32 %v1918_v14, %v4183_v5  ;;  %v4734_v21 = vmul.f32 0.6931472, %v2655_v4  ;;  %v5341_v30 = vld [vmem:[#allocation42_spill] sm:$0xff] }
 0x1d6   : > { %v4737_v58 = vadd.f32 %v1772_v49, %v4331_v3  ;;  %v4740_v23 = vadd.f32 %v1781_v8, %v4334_v31  ;;  %v5339_v39 = vsub.f32 1.0, %v5338_v19  ;;  %v1907_v13 = vsub.f32 1.0, %v5340_v10  ;;  %v5346_v3 = vld [vmem:[#allocation99_spill] sm:$0xff]  ;;  %v5348_v31 = vld [vmem:[#allocation100_spill] sm:$0xff]  ;;  %v5353_v14 = vld [vmem:[#allocation78_spill] sm:$0xff] }
 0x1d7   : > { %v1920_v15 = vmul.f32 %v1904_v6, %v5336_v32  ;;  %v5342_v61 = vsub.f32 1.0, %v5341_v30  ;;  %v1935_v20 = vadd.f32 %v1919_v0, %v5343_v7  ;;  %v1948_v5 = vsub.f32 1.0, %v1932_v63  ;;  %v5347_v49 = vld [vmem:[#allocation115_spill] sm:$0xff]  ;;  %v5355_v0 = vld [vmem:[#allocation117_spill] sm:$0xff] }
 0x1d8   : > { %5337 = vst [vmem:[#allocation59_spill] sm:$0xff] %v4740_v23  ;;  %v4744_v27 = vmul.f32 0.75, %v5339_v39  ;;  %v4751_v50 = vadd.f32 %v1790_v47, %v5344_v62  ;;  %v1884_v26 = vadd.f32 %v5347_v49, %v5346_v3  ;;  %v1885_v38 = vadd.f32 %v5349_v48, %v5348_v31  ;;  %v5356_v47 = vld [vmem:[#allocation102_spill] sm:$0xff]  ;;  %v5363_v31 = vld [vmem:[#allocation103_spill] sm:$0xff] }
 0x1d9   : > { %v1921_v34 = vmul.f32 %v1905_v22, %v5342_v61  ;;  %v1949_v41 = vsub.f32 1.0, %v1933_v28  ;;  %v1908_v9 = vsub.f32 1.0, %v5350_v53  ;;  %v5352_v6 = vsub.f32 1.0, %v5351_v44  ;;  %v4761_v18 = vpop.eup %2658  ;;  %v5357_v28 = vld [vmem:[#allocation118_spill] sm:$0xff]  ;;  %v5361_v61 = vld [vmem:[#allocation79_spill] sm:$0xff]  ;;  %v5365_v44 = vld [vmem:[#allocation104_spill] sm:$0xff] }
 0x1da   : > { %5345 = vst [vmem:[#allocation64_spill] sm:$0xff] %v4751_v50  ;;  %v1936_v8 = vadd.f32 %v1920_v15, %v5353_v14  ;;  %v1950_v4 = vsub.f32 1.0, %v1934_v52  ;;  %v1886_v63 = vadd.f32 %v5355_v0, %v5354_v43  ;;  %v1887_v32 = vadd.f32 %v5357_v28, %v5356_v47  ;;  %v5358_v39 = vld [vmem:[#allocation74_spill] sm:$0xff]  ;;  %v4772_v30 = vpop.eup %2660  ;;  %v5364_v48 = vld [vmem:[#allocation119_spill] sm:$0xff] }
 0x1db   : > { %v1922_v51 = vmul.f32 %v1906_v11, %v5352_v6  ;;  %v1909_v10 = vsub.f32 1.0, %v5358_v39  ;;  %v5359_v11 = vld [vmem:[#allocation41_spill] sm:$0xff]  ;;  %v1937_v7 = vadd.f32 %v1921_v34, %v5361_v61  ;;  %v1951_v62 = vsub.f32 1.0, %v1935_v20  ;;  %v4777_v49 = vpop.eup %2662  ;;  %v5366_v6 = vld [vmem:[#allocation120_spill] sm:$0xff]  ;;  %v5367_v43 = vld [vmem:[#allocation75_spill] sm:$0xff] }
 0x1dc   : > { %v5360_v15 = vsub.f32 1.0, %v5359_v11  ;;  %v1964_v3 = vmul.f32 %v1948_v5, %v1948_v5  ;;  %5362 = vst [vmem:[#allocation65_spill] sm:$0xff] %v4777_v49  ;;  %v1888_v53 = vadd.f32 %v5364_v48, %v5363_v31  ;;  %v1889_v14 = vadd.f32 %v5366_v6, %v5365_v44  ;;  %v5368_v28 = vld [vmem:[#allocation39_spill] sm:$0xff]  ;;  %v5370_v11 = vld [vmem:[#allocation80_spill] sm:$0xff]  ;;  %v5371_v20 = vld [vmem:[#allocation105_spill] sm:$0xff] }
 0x1dd   : > { %v1910_v0 = vsub.f32 1.0, %v5367_v43  ;;  %v1965_v47 = vmul.f32 %v1949_v41, %v1949_v41  ;;  %v5369_v39 = vsub.f32 1.0, %v5368_v28  ;;  %v1966_v34 = vmul.f32 %v1950_v4, %v1950_v4  ;;  %v5372_v5 = vld [vmem:[#allocation121_spill] sm:$0xff]  ;;  %v5373_v22 = vld [vmem:[#allocation106_spill] sm:$0xff]  ;;  %v5375_v31 = vld [vmem:[#allocation76_spill] sm:$0xff] }
 0x1de   : > { %v1923_v52 = vmul.f32 %v1907_v13, %v5360_v15  ;;  %v1938_v13 = vadd.f32 %v1922_v51, %v5370_v11  ;;  %v1952_v15 = vsub.f32 1.0, %v1936_v8  ;;  %v1890_v61 = vadd.f32 %v5372_v5, %v5371_v20  ;;  %v5378_v43 = vld [vmem:[#allocation84_spill] sm:$0xff]  ;;  %v5380_v51 = vld [vmem:[#allocation123_spill] sm:$0xff]  ;;  %v5381_v4 = vld [vmem:[#allocation81_spill] sm:$0xff] }
 0x1df   : > { %v1924_v2 = vmul.f32 %v1908_v9, %v5369_v39  ;;  %v1891_v59 = vadd.f32 %v5374_v54, %v5373_v22  ;;  %v1911_v48 = vsub.f32 1.0, %v5375_v31  ;;  %v5377_v44 = vsub.f32 1.0, %v5376_v37  ;;  %v5379_v39 = vld [vmem:[#allocation107_spill] sm:$0xff]  ;;  %v5384_v54 = vld [vmem:[#allocation85_spill] sm:$0xff] }
 0x1e0   : > { %v1939_v41 = vadd.f32 %v1923_v52, %v5378_v43  ;;  %v1953_v50 = vsub.f32 1.0, %v1937_v7  ;;  %v1967_v28 = vmul.f32 %v1951_v62, %v1951_v62  ;;  %v1980_v9 = vmul.f32 %v1964_v3, %v1884_v26  ;;  %v5387_v7 = vld [vmem:[#allocation82_spill] sm:$0xff]  ;;  %v5388_v26 = vld [vmem:[#allocation45_spill] sm:$0xff] }
 0x1e1   : > { %v1925_v6 = vmul.f32 %v1909_v10, %v5377_v44  ;;  %v1892_v8 = vadd.f32 %v5380_v51, %v5379_v39  ;;  %v1912_v11 = vsub.f32 1.0, %v5381_v4  ;;  %v5383_v20 = vsub.f32 1.0, %v5382_v45  ;;  %v5385_v10 = vld [vmem:[#allocation108_spill] sm:$0xff]  ;;  %v5390_v39 = vld [vmem:[#allocation86_spill] sm:$0xff] }
 0x1e2   : > { %v1981_v36 = vmul.f32 %v1965_v47, %v1885_v38  ;;  %v1940_v22 = vadd.f32 %v1924_v2, %v5384_v54  ;;  %v1954_v31 = vsub.f32 1.0, %v1938_v13  ;;  %v1968_v49 = vmul.f32 %v1952_v15, %v1952_v15  ;;  %v5386_v44 = vld [vmem:[#allocation124_spill] sm:$0xff]  ;;  %v5392_v47 = vld [vmem:[#allocation83_spill] sm:$0xff]  ;;  %v5393_v13 = vld [vmem:[#allocation46_spill] sm:$0xff] }
 0x1e3   : > { %v1926_v5 = vmul.f32 %v1910_v0, %v5383_v20  ;;  %v1982_v37 = vmul.f32 %v1966_v34, %v1886_v63  ;;  %v1893_v52 = vadd.f32 %v5386_v44, %v5385_v10  ;;  %v1913_v62 = vsub.f32 1.0, %v5387_v7  ;;  %v5391_v0 = vld [vmem:[#allocation51_spill] sm:$0xff]  ;;  %v5396_v54 = vld [vmem:[#allocation52_spill] sm:$0xff] }
 0x1e4   : > { %v5389_v3 = vsub.f32 1.0, %v5388_v26  ;;  %v1941_v51 = vadd.f32 %v1925_v6, %v5390_v39  ;;  %v1955_v4 = vsub.f32 1.0, %v1939_v41  ;;  %v1969_v23 = vmul.f32 %v1953_v50, %v1953_v50  ;;  %v5395_v34 = vld [vmem:[#allocation87_spill] sm:$0xff]  ;;  %v5398_v6 = vld [vmem:[#allocation88_spill] sm:$0xff] }
 0x1e5   : > { %v1983_v45 = vmul.f32 %v1967_v28, %v1887_v32  ;;  %v1996_v38 = vmul.f32 %v1980_v9, %v5391_v0  ;;  %v1914_v2 = vsub.f32 1.0, %v5392_v47  ;;  %v5394_v15 = vsub.f32 1.0, %v5393_v13  ;;  %v5399_v50 = vld [vmem:[#allocation47_spill] sm:$0xff]  ;;  %v5401_v9 = vld [vmem:[#allocation89_spill] sm:$0xff] }
 0x1e6   : > { %v1927_v43 = vmul.f32 %v1911_v48, %v5389_v3  ;;  %v1942_v20 = vadd.f32 %v1926_v5, %v5395_v34  ;;  %v1997_v10 = vmul.f32 %v1981_v36, %v5396_v54  ;;  %v1956_v44 = vsub.f32 1.0, %v1940_v22  ;;  %v5397_v48 = vld [vmem:[#allocation53_spill] sm:$0xff]  ;;  %v5403_v36 = vld [vmem:[#allocation48_spill] sm:$0xff] }
 0x1e7   : > { %v1928_v63 = vmul.f32 %v1912_v11, %v5394_v15  ;;  %v1970_v7 = vmul.f32 %v1954_v31, %v1954_v31  ;;  %v1984_v26 = vmul.f32 %v1968_v49, %v1888_v53  ;;  %v1998_v3 = vmul.f32 %v1982_v37, %v5397_v48  ;;  %v5402_v11 = vld [vmem:[#allocation54_spill] sm:$0xff]  ;;  %v5417_v48 = vld [vmem:[#allocation125_spill] sm:$0xff] }
 0x1e8   : > { %v1915_v41 = vsub.f32 1.0, %v5398_v6  ;;  %v5400_v32 = vsub.f32 1.0, %v5399_v50  ;;  %v1943_v39 = vadd.f32 %v1927_v43, %v5401_v9  ;;  %v1957_v0 = vsub.f32 1.0, %v1941_v51  ;;  %v5405_v49 = vld [vmem:[#allocation90_spill] sm:$0xff]  ;;  %v5419_v9 = vld [vmem:[#allocation60_spill] sm:$0xff] }
 0x1e9   : > { %v1971_v47 = vmul.f32 %v1955_v4, %v1955_v4  ;;  %v1985_v13 = vmul.f32 %v1969_v23, %v1889_v14  ;;  %v1999_v15 = vmul.f32 %v1983_v45, %v5402_v11  ;;  %v2012_v5 = vmul.f32 %v1996_v38, %v4691_v33  ;;  %v5409_v14 = vld [vmem:[#allocation55_spill] sm:$0xff]  ;;  %v5420_v11 = vld [vmem:[#allocation110_spill] sm:$0xff] }
 0x1ea   : > { %v1929_v28 = vmul.f32 %v1913_v62, %v5400_v32  ;;  %v5404_v22 = vsub.f32 1.0, %v5403_v36  ;;  %v1944_v53 = vadd.f32 %v1928_v63, %v5405_v49  ;;  %v1958_v37 = vsub.f32 1.0, %v1942_v20  ;;  %v5411_v38 = vld [vmem:[#allocation91_spill] sm:$0xff]  ;;  %v5438_v62 = vld [vmem:[#allocation114_spill] sm:$0xff] }
 0x1eb   : > { %v2013_v34 = vmul.f32 %v1997_v10, %v4700_v16  ;;  %v5406_v54 = vand.u32 2147483647, %v4522_v1  ;;  %v1972_v43 = vmul.f32 %v1956_v44, %v1956_v44  ;;  %v1986_v23 = vmul.f32 %v1970_v7, %v1890_v61  ;;  %v5415_v44 = vld [vmem:[#allocation56_spill] sm:$0xff] }
 0x1ec   : > { %v1930_v31 = vmul.f32 %v1914_v2, %v5404_v22  ;;  %v2000_v51 = vmul.f32 %v1984_v26, %v5409_v14  ;;  %v2014_v33 = vmul.f32 %v1998_v3, %v4703_v42  ;;  %v5410_v4 = vsub.f32 1.0, %v5338_v19  ;;  %v5416_v42 = vld [vmem:[#allocation109_spill] sm:$0xff]  ;;  %v5418_v3 = vld [vmem:[#allocation92_spill] sm:$0xff] }
 0x1ed   : > { %vm4826_vm0 = vcmp.lt.f32.partialorder %v5406_v54, 0.0004427343  ;;  %v1945_v2 = vadd.f32 %v1929_v28, %v5411_v38  ;;  %v1959_v63 = vsub.f32 1.0, %v1943_v39  ;;  %v1973_v20 = vmul.f32 %v1957_v0, %v1957_v0  ;;  %v5428_v54 = vld [vmem:[#allocation127_spill] sm:$0xff]  ;;  %v5430_v38 = vld [vmem:[#allocation112_spill] sm:$0xff] }
 0x1ee   : > { %v1931_v45 = vmul.f32 %v1915_v41, %v5410_v4  ;;  %v5412_v16 = vand.u32 2147483647, %v4526_v25  ;;  %v1987_v10 = vmul.f32 %v1971_v47, %v1891_v59  ;;  %v2001_v61 = vmul.f32 %v1985_v13, %v5415_v44  ;;  %v5421_v59 = vld [vmem:[#allocation126_spill] sm:$0xff]  ;;  %v5422_v13 = vld [vmem:[#allocation93_spill] sm:$0xff] }
 0x1ef   : > { %v2015_v7 = vmul.f32 %v1999_v15, %v4706_v46  ;;  %v2028_v26 = vadd.f32 %v2013_v34, %v2012_v5  ;;  %v1894_v19 = vadd.f32 %v5417_v48, %v5416_v42  ;;  %v1946_v41 = vadd.f32 %v1930_v31, %v5418_v3  ;;  %v5427_v34 = vld [vmem:[#allocation111_spill] sm:$0xff]  ;;  %v5435_v42 = vld [vmem:[#allocation113_spill] sm:$0xff] }
 0x1f0   : > { %vm4837_vm1 = vcmp.lt.f32.partialorder %v5412_v16, 0.0004427343  ;;  %v1960_v50 = vsub.f32 1.0, %v1944_v53  ;;  %v1974_v32 = vmul.f32 %v1958_v37, %v1958_v37  ;;  %v1988_v28 = vmul.f32 %v1972_v43, %v1892_v8  ;;  %v5426_v8 = vld [vmem:[#allocation61_spill] sm:$0xff] }
 0x1f1   : > { %v2002_v25 = vmul.f32 %v1986_v23, %v5419_v9  ;;  %v2016_v39 = vmul.f32 %v2000_v51, %v4709_v57  ;;  %v2029_v0 = vadd.f32 %v2028_v26, %v2014_v33  ;;  %v1895_v47 = vadd.f32 %v5421_v59, %v5420_v11  ;;  %v5429_v33 = vld [vmem:[#allocation62_spill] sm:$0xff]  ;;  %v5433_v26 = vld [vmem:[#allocation95_spill] sm:$0xff]  ;;  %v5436_v48 = vld [vmem:[#allocation129_spill] sm:$0xff] }
 0x1f2   : > { %v1947_v36 = vadd.f32 %v1931_v45, %v5422_v13  ;;  %v1961_v46 = vsub.f32 1.0, %v1945_v2  ;;  %v1975_v15 = vmul.f32 %v1959_v63, %v1959_v63  ;;  %v5423_v5 = vand.u32 2147483647, %v4574_v56  ;;  %v5431_v2 = vld [vmem:[#allocation128_spill] sm:$0xff] }
 0x1f3   : > { %v1989_v31 = vmul.f32 %v1973_v20, %v1893_v52  ;;  %v2003_v49 = vmul.f32 %v1987_v10, %v5426_v8  ;;  %v2017_v53 = vmul.f32 %v2001_v61, %v4716_v12  ;;  %v2030_v57 = vadd.f32 %v2029_v0, %v2015_v7  ;;  %v5440_v0 = vld [vmem:[#allocation59_spill] sm:$0xff] }
 0x1f4   : > { %vm4853_vm2 = vcmp.lt.f32.partialorder %v5423_v5, 0.0004427343  ;;  %v1802_v37 = vmul.f32 0.6931472, %v4725_v29  ;;  %v1896_v43 = vadd.f32 %v5428_v54, %v5427_v34  ;;  %v1962_v23 = vsub.f32 1.0, %v1946_v41  ;;  %v5432_v29 = vld [vmem:[#allocation63_spill] sm:$0xff] }
 0x1f5   : > { %v1976_v14 = vmul.f32 %v1960_v50, %v1960_v50  ;;  %v1990_v51 = vmul.f32 %v1974_v32, %v1894_v19  ;;  %v2004_v56 = vmul.f32 %v1988_v28, %v5429_v33  ;;  %v2018_v4 = vmul.f32 %v2002_v25, %v4719_v24  ;;  %v5437_v50 = vld [vmem:[#allocation67_spill] sm:$0xff]  ;;  %v5439_v25 = vld [vmem:[#allocation68_spill] sm:$0xff]  ;;  %v5454_v33 = vld [vmem:[#allocation97_spill] sm:$0xff] }
 0x1f6   : > { %v2031_v45 = vadd.f32 %v2030_v57, %v2016_v39  ;;  %v1811_v52 = vmul.f32 0.6931472, %v4761_v18  ;;  %v1897_v63 = vadd.f32 %v5431_v2, %v5430_v38  ;;  %v1963_v12 = vsub.f32 1.0, %v1947_v36 }
 0x1f7   : > { %v1977_v20 = vmul.f32 %v1961_v46, %v1961_v46  ;;  %v1991_v16 = vmul.f32 %v1975_v15, %v1895_v47  ;;  %v2005_v10 = vmul.f32 %v1989_v31, %v5432_v29  ;;  %v2019_v44 = vmul.f32 %v2003_v49, %v4722_v35  ;;  %v5441_v47 = vld [vmem:[#allocation65_spill] sm:$0xff]  ;;  %v5443_v46 = vld [vmem:[#allocation130_spill] sm:$0xff]  ;;  %v5449_v49 = vld [vmem:[#allocation64_spill] sm:$0xff] }
 0x1f8   : > { %v2032_v61 = vadd.f32 %v2031_v45, %v2017_v53  ;;  %v1808_v7 = vsel %vm4826_vm0, %v4665_v60, %v1802_v37  ;;  %v5434_v24 = vsel %vm4675_vm15, %v4650_v40, %v4734_v21  ;;  %v1898_v19 = vadd.f32 %v5436_v48, %v5435_v42  ;;  %v5448_v31 = vld [vmem:[#allocation69_spill] sm:$0xff]  ;;  %v5450_v37 = vld [vmem:[#allocation50_spill] sm:$0xff] }
 0x1f9   : > { %v1847_v18 = vadd.f32 %v5434_v24, %v5433_v26  ;;  %v1978_v3 = vmul.f32 %v1962_v23, %v1962_v23  ;;  %v1992_v41 = vmul.f32 %v1976_v14, %v1896_v43  ;;  %v2006_v32 = vmul.f32 %v1990_v51, %v5437_v50  ;;  %v5453_v14 = vld [vmem:[#allocation57_spill] sm:$0xff]  ;;  %v5455_v45 = vld [vmem:[#allocation70_spill] sm:$0xff] }
 0x1fa   : > { %v2020_v35 = vmul.f32 %v2004_v56, %v4737_v58  ;;  %v2033_v28 = vadd.f32 %v2032_v61, %v2018_v4  ;;  %v1817_v60 = vsel %vm4837_vm1, %v4669_v17, %v1811_v52  ;;  %v1820_v55 = vmul.f32 0.6931472, %v4772_v30  ;;  %v5442_v58 = vld [vmem:[#allocation58_spill] sm:$0xff]  ;;  %v5447_v30 = vld [vmem:[#allocation96_spill] sm:$0xff] }
 0x1fb   : > { %v1899_v40 = vadd.f32 %v4744_v27, %v5438_v62  ;;  %v1979_v21 = vmul.f32 %v1963_v12, %v1963_v12  ;;  %v1993_v9 = vmul.f32 %v1977_v20, %v1897_v63  ;;  %v2007_v39 = vmul.f32 %v1991_v16, %v5439_v25  ;;  %v5456_v12 = vld [vmem:[#allocation98_spill] sm:$0xff] }
 0x1fc   : > { %v2021_v11 = vmul.f32 %v2005_v10, %v5440_v0  ;;  %v2034_v59 = vadd.f32 %v2033_v28, %v2019_v44  ;;  %v1829_v36 = vmul.f32 0.6931472, %v5441_v47  ;;  %v1832_v15 = vmul.f32 %v5443_v46, %v5442_v58 }
 0x1fd   : > { %v5444_v1 = vand.u32 2147483647, %v5443_v46  ;;  %v1848_v27 = vadd.f32 %v1808_v7, %v5447_v30  ;;  %v1994_v5 = vmul.f32 %v1978_v3, %v1898_v19  ;;  %v2008_v8 = vmul.f32 %v1992_v41, %v5448_v31 }
 0x1fe   : > { %v2022_v53 = vmul.f32 %v2006_v32, %v5449_v49  ;;  %v2035_v57 = vadd.f32 %v2034_v59, %v2020_v35  ;;  %v5451_v34 = vunpack.c.3.s8 %v5450_v37  ;;  %v5452_v43 = vmax.f32 %v5398_v6, 0.0  ;;  %v5457_v6 = vld [vmem:[#allocation73_spill] sm:$0xff] }
 0x1ff   : > { %vm4895_vm3 = vcmp.lt.f32.partialorder %v5444_v1, 0.0004427343  ;;  %v1826_v51 = vsel %vm4853_vm2, %v5453_v14, %v1820_v55  ;;  %v1849_v56 = vadd.f32 %v1817_v60, %v5454_v33  ;;  %v1995_v4 = vmul.f32 %v1979_v21, %v1899_v40 }
 0x200   : > { %v1563_v54 = vcvt.s32.f32 %v5451_v34  ;;  %v1627_v23 = vsub.f32 %v5452_v43, %v5422_v13  ;;  %v2009_v52 = vmul.f32 %v1993_v9, %v5455_v45  ;;  %v2023_v38 = vmul.f32 %v2007_v39, %v1847_v18 }
 0x201   : > { %v2036_v2 = vadd.f32 %v2035_v57, %v2021_v11  ;;  %v1835_v63 = vsel %vm4895_vm3, %v1832_v15, %v1829_v36  ;;  %v1850_v20 = vadd.f32 %v1826_v51, %v5456_v12  ;;  %v2010_v13 = vmul.f32 %v1994_v5, %v5457_v6 }
 0x202   : > { %v2024_v16 = vmul.f32 %v2008_v8, %v1848_v27  ;;  %v1851_v29 = vadd.f32 %v1835_v63, %v1627_v23  ;;  %v2011_v10 = vmul.f32 %v1995_v4, %v1563_v54  ;;  %v2025_v44 = vmul.f32 %v2009_v52, %v1849_v56 }
 0x203   : > { %v2037_v22 = vadd.f32 %v2036_v2, %v2022_v53  ;;  %v2026_v7 = vmul.f32 %v2010_v13, %v1850_v20 }
 0x204   : > { %v2027_v24 = vmul.f32 %v2011_v10, %v1851_v29 }
 0x205   : > { %v2038_v61 = vadd.f32 %v2037_v22, %v2023_v38 }
 0x207   : > { %v2039_v26 = vadd.f32 %v2038_v61, %v2024_v16 }
 0x209   : > { %v2040_v18 = vadd.f32 %v2039_v26, %v2025_v44 }
 0x20b   : > { %v2041_v42 = vadd.f32 %v2040_v18, %v2026_v7 }
 0x20d   : > { %v2042_v48 = vadd.f32 %v2041_v42, %v2027_v24 }
 0x20f   : > { %2044 = vst [vmem:[%s3444_s14 + $0x18] sm:$0xff] %v2042_v48 }
 0x210   : > { %2957 = shalt.err (!%p2954_p7)
}
 0x211   : > { %s2958_s16 = scalar_lea.hbm %s4921_s3, 512  ;;  %s2962_s17 = scalar_lea.hbm %s5460_s25, 1024 }
 0x212   : > { %p2959_p10 = scmp.ne.s32.totalorder %s4921_s3, %s2958_s16  ;;  %p2963_p0 = scmp.lt.s32.totalorder %s4921_s3, %s5460_s25 }
 0x213   : > { %p2964_p8 = scmp.lt.s32.totalorder %s2962_s17, %s2958_s16 }
 0x214   : > { %p2960_p13 = pnand %p2959_p10, %p3176_p9 }
 0x215   : > { %p2965_p1 = por %p2964_p8, %p2963_p0 }
 0x216   : > { %p2961_p2 = pneg %p2960_p13 }
 0x218   : > { %p2966_p3 = pnand %p2965_p1, %p2961_p2 }
 0x21a   : > { %2969 = shalt.err (!%p2966_p3)
}
 0x21b   : > { %s3059_s15 = smov 128   ;;  %s3060_s19 = smov 8  }
 0x21c   : > { %2444 = dma.vmem_to_hbm [thread:$0]  (%p3176_p9), %s4923_s13, 512, %s4921_s3, %s2046_s10, %s3059_s15, %s3059_s15, %s3060_s19  }
 0x21d PF: > { %s5461_s7 = sld [smem:[#allocation27_spill]]  ;;  %p2478_p4 = pnand %p2360_p12, %p3183_p11 }
 0x21e   : > { %s5463_s14 = sld [smem:[#allocation31_spill]] }
 0x21f   : > { %p2479_p5 = pneg %p2478_p4 }
 0x223   : > { %s2074_s12 = sand.u32 1, %s5461_s7  }
 0x224   : > { %s2075_s5 = scalar_lea.sflag [#allocation4], %s2074_s12 }
 0x225   : > { %3019 = dma.done.wait (%p2479_p5), %s2075_s5, 512  }
 0x226   : > { %3021 = vsyncadd (%p2479_p5), %s2075_s5, 4294966784  ;;  %s42_s22 = sadd.s32 1, %s5463_s14   ;;  %s5464_s17 = sld [smem:[#allocation28_spill]] }
 0x227   : > { %p39_p6 = scmp.ge.s32.totalorder %s42_s22, 4   ;;  %s5465_s18 = sld [smem:[#allocation29_spill]] }
 0x228   : > { %s5466_s19 = sld [smem:[#allocation36_spill]]  ;;  %s5468_s20 = smov %s3040_s21 }
 0x229   : > { %s5467_s1 = sld [smem:[#allocation33_spill]] }
 0x22b   :  { %41 = sbr.rel (!%p39_p6) target bundleno = 24 (0x18), region = 225 }
 0x22f   : > { %s5469_s21 = smov %s5467_s1 }
 0x230   :  { %2080 = vsyncpa [#allocation3], 1 }
 0x231   :  { %2082 = vsyncpa [#allocation3 + $0x1], 1 }
 0x232   :  { %2083 = vsyncpa [#allocation6], 1 }
 0x233   :  { %2085 = vsyncpa [#allocation6 + $0x1], 1 }
 0x234   :  { %2086 = vsyncpa [#allocation9], 1 }
 0x235   :  { %2088 = vsyncpa [#allocation9 + $0x1], 1 }
 0x236   :  { %2089 = vsyncpa [#allocation12], 1 }
 0x237   :  { %2091 = vsyncpa [#allocation12 + $0x1], 1 }
 0x238   :  { %2092 = vsyncpa [#allocation15], 1 }
 0x239   :  { %2094 = vsyncpa [#allocation15 + $0x1], 1 }
 0x23a   :  { %2095 = vsyncpa [#allocation18], 1 }
 0x23b   :  { %2097 = vsyncpa [#allocation18 + $0x1], 1 }
 0x23c   :  { %2098 = vsyncpa [#allocation4], 1 }
 0x23d   :  { %2100 = vsyncpa [#allocation4 + $0x1], 1 }

</bundles_post_ra>
